<compile_context>
chip_gen: v5e
topology: v5e:2x2
jax: 0.10.0
libtpu: 0.0.40
codegen_flags: <defaults>
</compile_context>

<pallas_src>
import functools

import jax
import jax.numpy as jnp
import numpy as np
from jax.experimental import pallas as pl
from jax.experimental.pallas import tpu as pltpu


# ----------------------------- Pallas kernel ---------------------------------
def bilstm_kernel(x_ref,        # (T*Bp, Cin)         off-chain dtype (bf16/f32)
                  wih_ref,      # (Cin, 8Hp)          fused-gate layout, off-chain dtype
                  bih_ref,      # (1, 8Hp)            f32
                  whh_ref,      # (2Hp, 8Hp)          block-diagonal fused, f32
                  wcomb_ref,    # (4Hp, n_out_pad)    combined Linear weight, off-chain dtype
                  bemb_ref,     # (1, n_out_pad)      f32
                  out_ref,      # (T*Bp, n_out_pad)   f32
                  gin_ref,      # VMEM scratch (T*Bp, 8Hp)  f32
                  rec_ref,      # VMEM scratch (T*Bp, 4Hp)  f32
                  *, T, Bp, Hp):
    D2 = 2 * Hp          # fused hidden width  [fwd Hp | bwd Hp]  (multiple of 128)
    G8 = 8 * Hp          # fused gate width    [i | f | g | o] blocks of D2 each

    # ---- hoisted input projection: one big off-chain matmul + bias ----
    gin_ref[...] = (jnp.dot(x_ref[...], wih_ref[...],
                            preferred_element_type=jnp.float32) + bih_ref[...])

    whh = whh_ref[...]

    # Loop-invariant lane mask: within each fused gate block, the first Hp lanes are
    # the forward direction (time t), the next Hp lanes the backward one (time T-1-t).
    lane = jax.lax.broadcasted_iota(jnp.int32, (Bp, G8), 1)
    fwd_mask = (lane % D2) < Hp

    h0 = jnp.zeros((Bp, D2), jnp.float32)

    # ---- fused recurrence: fwd step t and bwd step T-1-t in one body,
    #      single block-diagonal matmul + single sigmoid pass per step ----
    def step(t, carry):
        h, c = carry
        rt = T - 1 - t
        row_t = pl.multiple_of(t * Bp, 8)
        row_rt = pl.multiple_of(rt * Bp, 8)

        gin_t = gin_ref[pl.ds(row_t, Bp), :]       # (Bp, 8Hp) full-vreg loads
        gin_rt = gin_ref[pl.ds(row_rt, Bp), :]
        gin_step = jnp.where(fwd_mask, gin_t, gin_rt)   # vselect, no lane moves

        gates = gin_step + jnp.dot(h, whh, preferred_element_type=jnp.float32)

        sig = jax.nn.sigmoid(gates)                # one EUP pass over the whole slab
        i = sig[:, 0 * D2:1 * D2]                  # each slice is whole 128-lane vregs
        f = sig[:, 1 * D2:2 * D2]
        o = sig[:, 3 * D2:4 * D2]
        g = jnp.tanh(gates[:, 2 * D2:3 * D2])

        c = f * c + i * g
        h = o * jnp.tanh(c)                        # (Bp, D2) fused [h_fwd(t) | h_bwd(rt)]

        # Lane-dense (unmasked) stores of the full fused carry; the "wrong direction"
        # half of each write is annihilated by zero rows of wcomb in the final Linear.
        rec_ref[pl.ds(row_t, Bp), pl.ds(0, D2)] = h
        rec_ref[pl.ds(row_rt, Bp), pl.ds(D2, D2)] = h
        return h, c

    jax.lax.fori_loop(0, T, step, (h0, h0),
                      unroll=(True if T <= 32 else 8))

    # ---- final Linear: single off-chain matmul over the rec slab ----
    rec = rec_ref[...].astype(wcomb_ref.dtype)
    out_ref[...] = (jnp.dot(rec, wcomb_ref[...],
                            preferred_element_type=jnp.float32) + bemb_ref[...])


# ------------------------------- Wrapper --------------------------------------
def bilstm_forward(x, params, *, offchain_dtype=jnp.bfloat16):
    T, B, Cin = x.shape
    H = params["whh_f"].shape[0]
    n_out = params["w_emb"].shape[1]

    # Padding: batch to sublane width, hidden so that 2*Hp is a multiple of 128
    # (whole-vreg gate blocks), output columns to 128 (lane-dense stores).
    Bp = max(8, ((B + 7) // 8) * 8)
    Hp = max(64, ((H + 63) // 64) * 64)
    D2 = 2 * Hp
    G8 = 8 * Hp
    NP = max(128, ((n_out + 127) // 128) * 128)

    if Bp != B:
        x = jnp.pad(x, ((0, 0), (0, Bp - B), (0, 0)))
    x2 = x.reshape(T * Bp, Cin).astype(offchain_dtype)

    # ---- fused-direction, per-gate-block weight layout ----
    # Gate slab columns: 4 blocks of width D2; block g = [fwd gate g (H valid) | pad |
    # bwd gate g (H valid) | pad].  Padded columns stay exactly zero through the
    # recurrence (gate=0 -> i=f=o=0.5, g=0 -> c,h stay 0) and hit zero Linear rows.
    def fuse_gate_cols(wf, wb, rows):
        out = jnp.zeros((rows, 4, D2), jnp.float32)
        out = out.at[:, :, :H].set(wf.reshape(rows, 4, H))
        out = out.at[:, :, Hp:Hp + H].set(wb.reshape(rows, 4, H))
        return out.reshape(rows, 4 * D2)

    wih_fused = fuse_gate_cols(params["wih_f"], params["wih_b"], Cin).astype(offchain_dtype)
    b_fused = fuse_gate_cols(params["b_f"], params["b_b"], 1)            # f32

    # Block-diagonal recurrent weight: fwd h rows feed fwd gate columns only, bwd h
    # rows feed bwd gate columns only -> one matmul per step for both directions.
    whh_fused = jnp.zeros((D2, 4, D2), jnp.float32)
    whh_fused = whh_fused.at[:H, :, :H].set(params["whh_f"].reshape(H, 4, H))
    whh_fused = whh_fused.at[Hp:Hp + H, :, Hp:Hp + H].set(params["whh_b"].reshape(H, 4, H))
    whh_fused = whh_fused.reshape(D2, G8)

    # Combined Linear weight consuming the (4Hp)-wide rec slab written by the kernel:
    # valid fwd hidden sits in rows [0:H], valid bwd hidden in rows [D2+Hp : D2+Hp+H];
    # everything else (padding + wrong-direction carry halves) gets zero rows.
    w_comb = jnp.zeros((2 * D2, NP), jnp.float32)
    w_comb = w_comb.at[:H, :n_out].set(params["w_emb"][:H])
    w_comb = w_comb.at[D2 + Hp:D2 + Hp + H, :n_out].set(params["w_emb"][H:])
    w_comb = w_comb.astype(offchain_dtype)
    b_emb = jnp.zeros((1, NP), jnp.float32).at[:, :n_out].set(params["b_emb"])

    # Explicit VMEM budget sized from the actual footprint (+ headroom).
    f32b = 4
    ocb = jnp.dtype(offchain_dtype).itemsize
    operand_bytes = (T * Bp * Cin * ocb + Cin * G8 * ocb + G8 * f32b
                     + D2 * G8 * f32b + 2 * D2 * NP * ocb + NP * f32b)
    scratch_bytes = T * Bp * G8 * f32b + T * Bp * 2 * D2 * f32b
    out_bytes = T * Bp * NP * f32b
    vmem_limit = int(min(64 * 1024 * 1024,
                         max(32 * 1024 * 1024,
                             2 * (operand_bytes + scratch_bytes + out_bytes) + (4 << 20))))

    vmem = pl.BlockSpec(memory_space=pltpu.MemorySpace.VMEM)

    out = pl.pallas_call(
        functools.partial(bilstm_kernel, T=T, Bp=Bp, Hp=Hp),
        out_shape=jax.ShapeDtypeStruct((T * Bp, NP), jnp.float32),
        in_specs=[vmem] * 6,
        out_specs=vmem,
        scratch_shapes=[
            pltpu.VMEM((T * Bp, G8), jnp.float32),       # staged input-projected gates
            pltpu.VMEM((T * Bp, 2 * D2), jnp.float32),   # rec slab for the fused Linear
        ],
        compiler_params=pltpu.CompilerParams(vmem_limit_bytes=vmem_limit),
    )(x2, wih_fused, b_fused, whh_fused, w_comb, b_emb)

    return out.reshape(T, Bp, NP)[:, :B, :n_out]


# -------------------------- Parameter construction ----------------------------
def init_params(key, n_in, n_hidden, n_out):
    """Deterministic init matching PyTorch nn.LSTM / nn.Linear shapes.

    Weights are stored pre-transposed for right-multiplication:
      PyTorch weight_ih (4H, n_in)  ->  wih (n_in, 4H)
      PyTorch weight_hh (4H, H)     ->  whh (H, 4H)
      bias_ih + bias_hh (4H,)       ->  b   (1, 4H)
      Linear weight (n_out, 2H)     ->  w_emb (2H, n_out); bias -> (1, n_out)
    """
    H = n_hidden
    stdv = 1.0 / np.sqrt(H)
    keys = jax.random.split(key, 11)
    u = lambda k, shape, s: jax.random.uniform(k, shape, jnp.float32, -s, s)

    params = {
        "wih_f": u(keys[0], (n_in, 4 * H), stdv),
        "whh_f": u(keys[1], (H, 4 * H), stdv),
        "b_f":   u(keys[2], (1, 4 * H), stdv) + u(keys[3], (1, 4 * H), stdv),
        "wih_b": u(keys[4], (n_in, 4 * H), stdv),
        "whh_b": u(keys[5], (H, 4 * H), stdv),
        "b_b":   u(keys[6], (1, 4 * H), stdv) + u(keys[7], (1, 4 * H), stdv),
    }
    lin_stdv = 1.0 / np.sqrt(2 * H)
    params["w_emb"] = u(keys[8], (2 * H, n_out), lin_stdv)
    params["b_emb"] = u(keys[9], (1, n_out), lin_stdv)
    return params


# ---------------------------- Pure-JAX reference -------------------------------
def bilstm_reference(x, params):
    T, B, _ = x.shape
    H = params["whh_f"].shape[0]
    hi = jax.lax.Precision.HIGHEST
    dot = lambda a, b: jnp.dot(a, b, precision=hi)

    def cell(x_t, h, c, wih, whh, b):
        gates = dot(x_t, wih) + dot(h, whh) + b
        i = jax.nn.sigmoid(gates[:, 0 * H:1 * H])
        f = jax.nn.sigmoid(gates[:, 1 * H:2 * H])
        g = jnp.tanh(gates[:, 2 * H:3 * H])
        o = jax.nn.sigmoid(gates[:, 3 * H:4 * H])
        c = f * c + i * g
        h = o * jnp.tanh(c)
        return h, c

    h = jnp.zeros((B, H), jnp.float32)
    c = jnp.zeros((B, H), jnp.float32)
    hf = []
    for t in range(T):
        h, c = cell(x[t], h, c, params["wih_f"], params["whh_f"], params["b_f"])
        hf.append(h)
    h = jnp.zeros((B, H), jnp.float32)
    c = jnp.zeros((B, H), jnp.float32)
    hb = [None] * T
    for t in range(T - 1, -1, -1):
        h, c = cell(x[t], h, c, params["wih_b"], params["whh_b"], params["b_b"])
        hb[t] = h
    rec = jnp.concatenate([jnp.stack(hf), jnp.stack(hb)], axis=-1)  # (T, B, 2H)
    out = dot(rec.reshape(T * B, 2 * H), params["w_emb"]) + params["b_emb"]
    return out.reshape(T, B, -1)


# ----------------------------------- Main --------------------------------------
if __name__ == "__main__":
    T, B, n_in, n_hidden, n_out = 8, 2, 16, 32, 16

    key = jax.random.PRNGKey(0)
    k_x, k_p = jax.random.split(key)
    x = jax.random.normal(k_x, (T, B, n_in), jnp.float32)
    params = init_params(k_p, n_in, n_hidden, n_out)

    out = jax.block_until_ready(jax.jit(bilstm_forward)(x, params))
    ref = jax.block_until_ready(bilstm_reference(x, params))

    assert out.shape == (T, B, n_out), out.shape
    # Tolerance bounded by the bf16 off-chain matmuls (input projection + Linear);
    # the recurrence / gate math are full f32.
    np.testing.assert_allclose(np.asarray(out), np.asarray(ref), atol=2e-2, rtol=2e-2)

    print("KERNEL_OK")
</pallas_src>

<mosaic_0001>
module attributes {stable_mosaic.version = 11 : i64} {
  func.func @bilstm_kernel(%arg0: memref<64x16xbf16, #tpu.memory_space<vmem>>, %arg1: memref<16x512xbf16, #tpu.memory_space<vmem>>, %arg2: memref<1x512xf32, #tpu.memory_space<vmem>>, %arg3: memref<128x512xf32, #tpu.memory_space<vmem>>, %arg4: memref<256x128xbf16, #tpu.memory_space<vmem>>, %arg5: memref<1x128xf32, #tpu.memory_space<vmem>>, %arg6: memref<64x128xf32, #tpu.memory_space<vmem>>, %arg7: memref<64x512xf32, #tpu.memory_space<vmem>>, %arg8: memref<64x256xf32, #tpu.memory_space<vmem>>) attributes {dimension_semantics = [], scalar_prefetch = 0 : i64, scratch_operands = 2 : i64, tpu.core_type = #tpu.core_type<tc>} {
    %c0 = arith.constant 0 : index
    %c0_0 = arith.constant 0 : index
    %0 = vector.load %arg0[%c0, %c0_0] : memref<64x16xbf16, #tpu.memory_space<vmem>>, vector<64x16xbf16>
    %c0_1 = arith.constant 0 : index
    %c0_2 = arith.constant 0 : index
    %1 = vector.load %arg1[%c0_1, %c0_2] : memref<16x512xbf16, #tpu.memory_space<vmem>>, vector<16x512xbf16>
    %cst = arith.constant dense<0.000000e+00> : vector<64x512xf32>
    %2 = tpu.matmul %0, %1, %cst {dimension_numbers = #tpu.dot_dimension_numbers<[1], [0], [0], [1], [0, 0, 1, 1], [], []>} : vector<64x16xbf16>, vector<16x512xbf16>, vector<64x512xf32> -> vector<64x512xf32>
    %c0_3 = arith.constant 0 : index
    %c0_4 = arith.constant 0 : index
    %3 = vector.load %arg2[%c0_3, %c0_4] : memref<1x512xf32, #tpu.memory_space<vmem>>, vector<1x512xf32>
    %4 = vector.broadcast %3 : vector<1x512xf32> to vector<64x512xf32>
    %5 = arith.addf %2, %4 : vector<64x512xf32>
    %c0_5 = arith.constant 0 : index
    %c0_6 = arith.constant 0 : index
    %6 = vector.load %arg7[%c0_5, %c0_6] : memref<64x512xf32, #tpu.memory_space<vmem>>, vector<64x512xf32>
    tpu.vector_store %arg7[%c0_5, %c0_6], %5 {strides = array<i32>} : memref<64x512xf32, #tpu.memory_space<vmem>>, vector<64x512xf32>,
    %c0_7 = arith.constant 0 : index
    %c0_8 = arith.constant 0 : index
    %7 = vector.load %arg3[%c0_7, %c0_8] : memref<128x512xf32, #tpu.memory_space<vmem>>, vector<128x512xf32>
    %8 = tpu.iota {dimensions = array<i32: 1>} : vector<8x512xi32>
    %c128_i32 = arith.constant 128 : i32
    %c0_i32 = arith.constant 0 : i32
    %9 = arith.cmpi eq, %c128_i32, %c0_i32 : i32
    %c1_i32 = arith.constant 1 : i32
    %10 = arith.select %9, %c1_i32, %c128_i32 : i32
    %11 = vector.broadcast %10 : i32 to vector<8x512xi32>
    %12 = arith.remsi %8, %11 : vector<8x512xi32>
    %c0_i32_9 = arith.constant 0 : i32
    %13 = vector.broadcast %c0_i32_9 : i32 to vector<8x512xi32>
    %14 = arith.cmpi ne, %12, %13 : vector<8x512xi32>
    %c0_i32_10 = arith.constant 0 : i32
    %15 = vector.broadcast %c0_i32_10 : i32 to vector<8x512xi32>
    %16 = arith.cmpi slt, %12, %15 : vector<8x512xi32>
    %c0_i32_11 = arith.constant 0 : i32
    %17 = arith.cmpi slt, %10, %c0_i32_11 : i32
    %18 = vector.broadcast %17 : i1 to vector<8x512xi1>
    %19 = vector.broadcast %18 : vector<8x512xi1> to vector<8x512xi1>
    %20 = arith.xori %16, %19 : vector<8x512xi1>
    %21 = arith.andi %20, %14 : vector<8x512xi1>
    %22 = vector.broadcast %10 : i32 to vector<8x512xi32>
    %23 = arith.addi %12, %22 : vector<8x512xi32>
    %24 = arith.select %21, %23, %12 : vector<8x512xi1>, vector<8x512xi32>
    %c64_i32 = arith.constant 64 : i32
    %25 = vector.broadcast %c64_i32 : i32 to vector<8x512xi32>
    %26 = arith.cmpi slt, %24, %25 : vector<8x512xi32>
    %cst_12 = arith.constant 0.000000e+00 : f32
    %27 = vector.broadcast %cst_12 : f32 to vector<8x128xf32>
    %c0_i32_13 = arith.constant 0 : i32
    %c7_i32 = arith.constant 7 : i32
    %28 = arith.subi %c7_i32, %c0_i32_13 : i32
    %c8_i32 = arith.constant 8 : i32
    %29 = arith.muli %c0_i32_13, %c8_i32 : i32
    %30 = tpu.assume_multiple %29, 8 : i32
    %c8_i32_14 = arith.constant 8 : i32
    %31 = arith.muli %28, %c8_i32_14 : i32
    %32 = tpu.assume_multiple %31, 8 : i32
    %33 = arith.index_cast %30 : i32 to index
    %c0_15 = arith.constant 0 : index
    %34 = vector.load %arg7[%33, %c0_15] : memref<64x512xf32, #tpu.memory_space<vmem>>, vector<8x512xf32>
    %35 = arith.index_cast %32 : i32 to index
    %c0_16 = arith.constant 0 : index
    %36 = vector.load %arg7[%35, %c0_16] : memref<64x512xf32, #tpu.memory_space<vmem>>, vector<8x512xf32>
    %37 = arith.select %26, %34, %36 : vector<8x512xi1>, vector<8x512xf32>
    %cst_17 = arith.constant dense<0.000000e+00> : vector<8x512xf32>
    %38 = tpu.matmul %27, %7, %cst_17 {dimension_numbers = #tpu.dot_dimension_numbers<[1], [0], [0], [1], [0, 0, 1, 1], [], []>} : vector<8x128xf32>, vector<128x512xf32>, vector<8x512xf32> -> vector<8x512xf32>
    %39 = arith.addf %37, %38 : vector<8x512xf32>
    %40 = arith.negf %39 : vector<8x512xf32>
    %41 = math.exp %40 : vector<8x512xf32>
    %cst_18 = arith.constant 1.000000e+00 : f32
    %42 = vector.broadcast %cst_18 : f32 to vector<8x512xf32>
    %43 = arith.addf %42, %41 : vector<8x512xf32>
    %44 = arith.divf %42, %43 : vector<8x512xf32>
    %45 = vector.extract_strided_slice %44 {offsets = [0, 0], sizes = [8, 128], strides = [1, 1]} : vector<8x512xf32> to vector<8x128xf32>
    %46 = vector.extract_strided_slice %44 {offsets = [0, 128], sizes = [8, 128], strides = [1, 1]} : vector<8x512xf32> to vector<8x128xf32>
    %47 = vector.extract_strided_slice %44 {offsets = [0, 384], sizes = [8, 128], strides = [1, 1]} : vector<8x512xf32> to vector<8x128xf32>
    %48 = vector.extract_strided_slice %39 {offsets = [0, 256], sizes = [8, 128], strides = [1, 1]} : vector<8x512xf32> to vector<8x128xf32>
    %49 = math.tanh %48 : vector<8x128xf32>
    %50 = arith.mulf %46, %27 : vector<8x128xf32>
    %51 = arith.mulf %45, %49 : vector<8x128xf32>
    %52 = arith.addf %50, %51 : vector<8x128xf32>
    %53 = math.tanh %52 : vector<8x128xf32>
    %54 = arith.mulf %47, %53 : vector<8x128xf32>
    %55 = arith.index_cast %30 : i32 to index
    %c0_19 = arith.constant 0 : index
    %56 = vector.load %arg8[%55, %c0_19] : memref<64x256xf32, #tpu.memory_space<vmem>>, vector<8x128xf32>
    tpu.vector_store %arg8[%55, %c0_19], %54 {strides = array<i32>} : memref<64x256xf32, #tpu.memory_space<vmem>>, vector<8x128xf32>,
    %57 = arith.index_cast %32 : i32 to index
    %c128 = arith.constant 128 : index
    %58 = vector.load %arg8[%57, %c128] : memref<64x256xf32, #tpu.memory_space<vmem>>, vector<8x128xf32>
    tpu.vector_store %arg8[%57, %c128], %54 {strides = array<i32>} : memref<64x256xf32, #tpu.memory_space<vmem>>, vector<8x128xf32>,
    %c1_i32_20 = arith.constant 1 : i32
    %c7_i32_21 = arith.constant 7 : i32
    %59 = arith.subi %c7_i32_21, %c1_i32_20 : i32
    %c8_i32_22 = arith.constant 8 : i32
    %60 = arith.muli %c1_i32_20, %c8_i32_22 : i32
    %61 = tpu.assume_multiple %60, 8 : i32
    %c8_i32_23 = arith.constant 8 : i32
    %62 = arith.muli %59, %c8_i32_23 : i32
    %63 = tpu.assume_multiple %62, 8 : i32
    %64 = arith.index_cast %61 : i32 to index
    %c0_24 = arith.constant 0 : index
    %65 = vector.load %arg7[%64, %c0_24] : memref<64x512xf32, #tpu.memory_space<vmem>>, vector<8x512xf32>
    %66 = arith.index_cast %63 : i32 to index
    %c0_25 = arith.constant 0 : index
    %67 = vector.load %arg7[%66, %c0_25] : memref<64x512xf32, #tpu.memory_space<vmem>>, vector<8x512xf32>
    %68 = arith.select %26, %65, %67 : vector<8x512xi1>, vector<8x512xf32>
    %cst_26 = arith.constant dense<0.000000e+00> : vector<8x512xf32>
    %69 = tpu.matmul %54, %7, %cst_26 {dimension_numbers = #tpu.dot_dimension_numbers<[1], [0], [0], [1], [0, 0, 1, 1], [], []>} : vector<8x128xf32>, vector<128x512xf32>, vector<8x512xf32> -> vector<8x512xf32>
    %70 = arith.addf %68, %69 : vector<8x512xf32>
    %71 = arith.negf %70 : vector<8x512xf32>
    %72 = math.exp %71 : vector<8x512xf32>
    %cst_27 = arith.constant 1.000000e+00 : f32
    %73 = vector.broadcast %cst_27 : f32 to vector<8x512xf32>
    %74 = arith.addf %73, %72 : vector<8x512xf32>
    %75 = arith.divf %73, %74 : vector<8x512xf32>
    %76 = vector.extract_strided_slice %75 {offsets = [0, 0], sizes = [8, 128], strides = [1, 1]} : vector<8x512xf32> to vector<8x128xf32>
    %77 = vector.extract_strided_slice %75 {offsets = [0, 128], sizes = [8, 128], strides = [1, 1]} : vector<8x512xf32> to vector<8x128xf32>
    %78 = vector.extract_strided_slice %75 {offsets = [0, 384], sizes = [8, 128], strides = [1, 1]} : vector<8x512xf32> to vector<8x128xf32>
    %79 = vector.extract_strided_slice %70 {offsets = [0, 256], sizes = [8, 128], strides = [1, 1]} : vector<8x512xf32> to vector<8x128xf32>
    %80 = math.tanh %79 : vector<8x128xf32>
    %81 = arith.mulf %77, %52 : vector<8x128xf32>
    %82 = arith.mulf %76, %80 : vector<8x128xf32>
    %83 = arith.addf %81, %82 : vector<8x128xf32>
    %84 = math.tanh %83 : vector<8x128xf32>
    %85 = arith.mulf %78, %84 : vector<8x128xf32>
    %86 = arith.index_cast %61 : i32 to index
    %c0_28 = arith.constant 0 : index
    %87 = vector.load %arg8[%86, %c0_28] : memref<64x256xf32, #tpu.memory_space<vmem>>, vector<8x128xf32>
    tpu.vector_store %arg8[%86, %c0_28], %85 {strides = array<i32>} : memref<64x256xf32, #tpu.memory_space<vmem>>, vector<8x128xf32>,
    %88 = arith.index_cast %63 : i32 to index
    %c128_29 = arith.constant 128 : index
    %89 = vector.load %arg8[%88, %c128_29] : memref<64x256xf32, #tpu.memory_space<vmem>>, vector<8x128xf32>
    tpu.vector_store %arg8[%88, %c128_29], %85 {strides = array<i32>} : memref<64x256xf32, #tpu.memory_space<vmem>>, vector<8x128xf32>,
    %c2_i32 = arith.constant 2 : i32
    %c7_i32_30 = arith.constant 7 : i32
    %90 = arith.subi %c7_i32_30, %c2_i32 : i32
    %c8_i32_31 = arith.constant 8 : i32
    %91 = arith.muli %c2_i32, %c8_i32_31 : i32
    %92 = tpu.assume_multiple %91, 8 : i32
    %c8_i32_32 = arith.constant 8 : i32
    %93 = arith.muli %90, %c8_i32_32 : i32
    %94 = tpu.assume_multiple %93, 8 : i32
    %95 = arith.index_cast %92 : i32 to index
    %c0_33 = arith.constant 0 : index
    %96 = vector.load %arg7[%95, %c0_33] : memref<64x512xf32, #tpu.memory_space<vmem>>, vector<8x512xf32>
    %97 = arith.index_cast %94 : i32 to index
    %c0_34 = arith.constant 0 : index
    %98 = vector.load %arg7[%97, %c0_34] : memref<64x512xf32, #tpu.memory_space<vmem>>, vector<8x512xf32>
    %99 = arith.select %26, %96, %98 : vector<8x512xi1>, vector<8x512xf32>
    %cst_35 = arith.constant dense<0.000000e+00> : vector<8x512xf32>
    %100 = tpu.matmul %85, %7, %cst_35 {dimension_numbers = #tpu.dot_dimension_numbers<[1], [0], [0], [1], [0, 0, 1, 1], [], []>} : vector<8x128xf32>, vector<128x512xf32>, vector<8x512xf32> -> vector<8x512xf32>
    %101 = arith.addf %99, %100 : vector<8x512xf32>
    %102 = arith.negf %101 : vector<8x512xf32>
    %103 = math.exp %102 : vector<8x512xf32>
    %cst_36 = arith.constant 1.000000e+00 : f32
    %104 = vector.broadcast %cst_36 : f32 to vector<8x512xf32>
    %105 = arith.addf %104, %103 : vector<8x512xf32>
    %106 = arith.divf %104, %105 : vector<8x512xf32>
    %107 = vector.extract_strided_slice %106 {offsets = [0, 0], sizes = [8, 128], strides = [1, 1]} : vector<8x512xf32> to vector<8x128xf32>
    %108 = vector.extract_strided_slice %106 {offsets = [0, 128], sizes = [8, 128], strides = [1, 1]} : vector<8x512xf32> to vector<8x128xf32>
    %109 = vector.extract_strided_slice %106 {offsets = [0, 384], sizes = [8, 128], strides = [1, 1]} : vector<8x512xf32> to vector<8x128xf32>
    %110 = vector.extract_strided_slice %101 {offsets = [0, 256], sizes = [8, 128], strides = [1, 1]} : vector<8x512xf32> to vector<8x128xf32>
    %111 = math.tanh %110 : vector<8x128xf32>
    %112 = arith.mulf %108, %83 : vector<8x128xf32>
    %113 = arith.mulf %107, %111 : vector<8x128xf32>
    %114 = arith.addf %112, %113 : vector<8x128xf32>
    %115 = math.tanh %114 : vector<8x128xf32>
    %116 = arith.mulf %109, %115 : vector<8x128xf32>
    %117 = arith.index_cast %92 : i32 to index
    %c0_37 = arith.constant 0 : index
    %118 = vector.load %arg8[%117, %c0_37] : memref<64x256xf32, #tpu.memory_space<vmem>>, vector<8x128xf32>
    tpu.vector_store %arg8[%117, %c0_37], %116 {strides = array<i32>} : memref<64x256xf32, #tpu.memory_space<vmem>>, vector<8x128xf32>,
    %119 = arith.index_cast %94 : i32 to index
    %c128_38 = arith.constant 128 : index
    %120 = vector.load %arg8[%119, %c128_38] : memref<64x256xf32, #tpu.memory_space<vmem>>, vector<8x128xf32>
    tpu.vector_store %arg8[%119, %c128_38], %116 {strides = array<i32>} : memref<64x256xf32, #tpu.memory_space<vmem>>, vector<8x128xf32>,
    %c3_i32 = arith.constant 3 : i32
    %c7_i32_39 = arith.constant 7 : i32
    %121 = arith.subi %c7_i32_39, %c3_i32 : i32
    %c8_i32_40 = arith.constant 8 : i32
    %122 = arith.muli %c3_i32, %c8_i32_40 : i32
    %123 = tpu.assume_multiple %122, 8 : i32
    %c8_i32_41 = arith.constant 8 : i32
    %124 = arith.muli %121, %c8_i32_41 : i32
    %125 = tpu.assume_multiple %124, 8 : i32
    %126 = arith.index_cast %123 : i32 to index
    %c0_42 = arith.constant 0 : index
    %127 = vector.load %arg7[%126, %c0_42] : memref<64x512xf32, #tpu.memory_space<vmem>>, vector<8x512xf32>
    %128 = arith.index_cast %125 : i32 to index
    %c0_43 = arith.constant 0 : index
    %129 = vector.load %arg7[%128, %c0_43] : memref<64x512xf32, #tpu.memory_space<vmem>>, vector<8x512xf32>
    %130 = arith.select %26, %127, %129 : vector<8x512xi1>, vector<8x512xf32>
    %cst_44 = arith.constant dense<0.000000e+00> : vector<8x512xf32>
    %131 = tpu.matmul %116, %7, %cst_44 {dimension_numbers = #tpu.dot_dimension_numbers<[1], [0], [0], [1], [0, 0, 1, 1], [], []>} : vector<8x128xf32>, vector<128x512xf32>, vector<8x512xf32> -> vector<8x512xf32>
    %132 = arith.addf %130, %131 : vector<8x512xf32>
    %133 = arith.negf %132 : vector<8x512xf32>
    %134 = math.exp %133 : vector<8x512xf32>
    %cst_45 = arith.constant 1.000000e+00 : f32
    %135 = vector.broadcast %cst_45 : f32 to vector<8x512xf32>
    %136 = arith.addf %135, %134 : vector<8x512xf32>
    %137 = arith.divf %135, %136 : vector<8x512xf32>
    %138 = vector.extract_strided_slice %137 {offsets = [0, 0], sizes = [8, 128], strides = [1, 1]} : vector<8x512xf32> to vector<8x128xf32>
    %139 = vector.extract_strided_slice %137 {offsets = [0, 128], sizes = [8, 128], strides = [1, 1]} : vector<8x512xf32> to vector<8x128xf32>
    %140 = vector.extract_strided_slice %137 {offsets = [0, 384], sizes = [8, 128], strides = [1, 1]} : vector<8x512xf32> to vector<8x128xf32>
    %141 = vector.extract_strided_slice %132 {offsets = [0, 256], sizes = [8, 128], strides = [1, 1]} : vector<8x512xf32> to vector<8x128xf32>
    %142 = math.tanh %141 : vector<8x128xf32>
    %143 = arith.mulf %139, %114 : vector<8x128xf32>
    %144 = arith.mulf %138, %142 : vector<8x128xf32>
    %145 = arith.addf %143, %144 : vector<8x128xf32>
    %146 = math.tanh %145 : vector<8x128xf32>
    %147 = arith.mulf %140, %146 : vector<8x128xf32>
    %148 = arith.index_cast %123 : i32 to index
    %c0_46 = arith.constant 0 : index
    %149 = vector.load %arg8[%148, %c0_46] : memref<64x256xf32, #tpu.memory_space<vmem>>, vector<8x128xf32>
    tpu.vector_store %arg8[%148, %c0_46], %147 {strides = array<i32>} : memref<64x256xf32, #tpu.memory_space<vmem>>, vector<8x128xf32>,
    %150 = arith.index_cast %125 : i32 to index
    %c128_47 = arith.constant 128 : index
    %151 = vector.load %arg8[%150, %c128_47] : memref<64x256xf32, #tpu.memory_space<vmem>>, vector<8x128xf32>
    tpu.vector_store %arg8[%150, %c128_47], %147 {strides = array<i32>} : memref<64x256xf32, #tpu.memory_space<vmem>>, vector<8x128xf32>,
    %c4_i32 = arith.constant 4 : i32
    %c7_i32_48 = arith.constant 7 : i32
    %152 = arith.subi %c7_i32_48, %c4_i32 : i32
    %c8_i32_49 = arith.constant 8 : i32
    %153 = arith.muli %c4_i32, %c8_i32_49 : i32
    %154 = tpu.assume_multiple %153, 8 : i32
    %c8_i32_50 = arith.constant 8 : i32
    %155 = arith.muli %152, %c8_i32_50 : i32
    %156 = tpu.assume_multiple %155, 8 : i32
    %157 = arith.index_cast %154 : i32 to index
    %c0_51 = arith.constant 0 : index
    %158 = vector.load %arg7[%157, %c0_51] : memref<64x512xf32, #tpu.memory_space<vmem>>, vector<8x512xf32>
    %159 = arith.index_cast %156 : i32 to index
    %c0_52 = arith.constant 0 : index
    %160 = vector.load %arg7[%159, %c0_52] : memref<64x512xf32, #tpu.memory_space<vmem>>, vector<8x512xf32>
    %161 = arith.select %26, %158, %160 : vector<8x512xi1>, vector<8x512xf32>
    %cst_53 = arith.constant dense<0.000000e+00> : vector<8x512xf32>
    %162 = tpu.matmul %147, %7, %cst_53 {dimension_numbers = #tpu.dot_dimension_numbers<[1], [0], [0], [1], [0, 0, 1, 1], [], []>} : vector<8x128xf32>, vector<128x512xf32>, vector<8x512xf32> -> vector<8x512xf32>
    %163 = arith.addf %161, %162 : vector<8x512xf32>
    %164 = arith.negf %163 : vector<8x512xf32>
    %165 = math.exp %164 : vector<8x512xf32>
    %cst_54 = arith.constant 1.000000e+00 : f32
    %166 = vector.broadcast %cst_54 : f32 to vector<8x512xf32>
    %167 = arith.addf %166, %165 : vector<8x512xf32>
    %168 = arith.divf %166, %167 : vector<8x512xf32>
    %169 = vector.extract_strided_slice %168 {offsets = [0, 0], sizes = [8, 128], strides = [1, 1]} : vector<8x512xf32> to vector<8x128xf32>
    %170 = vector.extract_strided_slice %168 {offsets = [0, 128], sizes = [8, 128], strides = [1, 1]} : vector<8x512xf32> to vector<8x128xf32>
    %171 = vector.extract_strided_slice %168 {offsets = [0, 384], sizes = [8, 128], strides = [1, 1]} : vector<8x512xf32> to vector<8x128xf32>
    %172 = vector.extract_strided_slice %163 {offsets = [0, 256], sizes = [8, 128], strides = [1, 1]} : vector<8x512xf32> to vector<8x128xf32>
    %173 = math.tanh %172 : vector<8x128xf32>
    %174 = arith.mulf %170, %145 : vector<8x128xf32>
    %175 = arith.mulf %169, %173 : vector<8x128xf32>
    %176 = arith.addf %174, %175 : vector<8x128xf32>
    %177 = math.tanh %176 : vector<8x128xf32>
    %178 = arith.mulf %171, %177 : vector<8x128xf32>
    %179 = arith.index_cast %154 : i32 to index
    %c0_55 = arith.constant 0 : index
    %180 = vector.load %arg8[%179, %c0_55] : memref<64x256xf32, #tpu.memory_space<vmem>>, vector<8x128xf32>
    tpu.vector_store %arg8[%179, %c0_55], %178 {strides = array<i32>} : memref<64x256xf32, #tpu.memory_space<vmem>>, vector<8x128xf32>,
    %181 = arith.index_cast %156 : i32 to index
    %c128_56 = arith.constant 128 : index
    %182 = vector.load %arg8[%181, %c128_56] : memref<64x256xf32, #tpu.memory_space<vmem>>, vector<8x128xf32>
    tpu.vector_store %arg8[%181, %c128_56], %178 {strides = array<i32>} : memref<64x256xf32, #tpu.memory_space<vmem>>, vector<8x128xf32>,
    %c5_i32 = arith.constant 5 : i32
    %c7_i32_57 = arith.constant 7 : i32
    %183 = arith.subi %c7_i32_57, %c5_i32 : i32
    %c8_i32_58 = arith.constant 8 : i32
    %184 = arith.muli %c5_i32, %c8_i32_58 : i32
    %185 = tpu.assume_multiple %184, 8 : i32
    %c8_i32_59 = arith.constant 8 : i32
    %186 = arith.muli %183, %c8_i32_59 : i32
    %187 = tpu.assume_multiple %186, 8 : i32
    %188 = arith.index_cast %185 : i32 to index
    %c0_60 = arith.constant 0 : index
    %189 = vector.load %arg7[%188, %c0_60] : memref<64x512xf32, #tpu.memory_space<vmem>>, vector<8x512xf32>
    %190 = arith.index_cast %187 : i32 to index
    %c0_61 = arith.constant 0 : index
    %191 = vector.load %arg7[%190, %c0_61] : memref<64x512xf32, #tpu.memory_space<vmem>>, vector<8x512xf32>
    %192 = arith.select %26, %189, %191 : vector<8x512xi1>, vector<8x512xf32>
    %cst_62 = arith.constant dense<0.000000e+00> : vector<8x512xf32>
    %193 = tpu.matmul %178, %7, %cst_62 {dimension_numbers = #tpu.dot_dimension_numbers<[1], [0], [0], [1], [0, 0, 1, 1], [], []>} : vector<8x128xf32>, vector<128x512xf32>, vector<8x512xf32> -> vector<8x512xf32>
    %194 = arith.addf %192, %193 : vector<8x512xf32>
    %195 = arith.negf %194 : vector<8x512xf32>
    %196 = math.exp %195 : vector<8x512xf32>
    %cst_63 = arith.constant 1.000000e+00 : f32
    %197 = vector.broadcast %cst_63 : f32 to vector<8x512xf32>
    %198 = arith.addf %197, %196 : vector<8x512xf32>
    %199 = arith.divf %197, %198 : vector<8x512xf32>
    %200 = vector.extract_strided_slice %199 {offsets = [0, 0], sizes = [8, 128], strides = [1, 1]} : vector<8x512xf32> to vector<8x128xf32>
    %201 = vector.extract_strided_slice %199 {offsets = [0, 128], sizes = [8, 128], strides = [1, 1]} : vector<8x512xf32> to vector<8x128xf32>
    %202 = vector.extract_strided_slice %199 {offsets = [0, 384], sizes = [8, 128], strides = [1, 1]} : vector<8x512xf32> to vector<8x128xf32>
    %203 = vector.extract_strided_slice %194 {offsets = [0, 256], sizes = [8, 128], strides = [1, 1]} : vector<8x512xf32> to vector<8x128xf32>
    %204 = math.tanh %203 : vector<8x128xf32>
    %205 = arith.mulf %201, %176 : vector<8x128xf32>
    %206 = arith.mulf %200, %204 : vector<8x128xf32>
    %207 = arith.addf %205, %206 : vector<8x128xf32>
    %208 = math.tanh %207 : vector<8x128xf32>
    %209 = arith.mulf %202, %208 : vector<8x128xf32>
    %210 = arith.index_cast %185 : i32 to index
    %c0_64 = arith.constant 0 : index
    %211 = vector.load %arg8[%210, %c0_64] : memref<64x256xf32, #tpu.memory_space<vmem>>, vector<8x128xf32>
    tpu.vector_store %arg8[%210, %c0_64], %209 {strides = array<i32>} : memref<64x256xf32, #tpu.memory_space<vmem>>, vector<8x128xf32>,
    %212 = arith.index_cast %187 : i32 to index
    %c128_65 = arith.constant 128 : index
    %213 = vector.load %arg8[%212, %c128_65] : memref<64x256xf32, #tpu.memory_space<vmem>>, vector<8x128xf32>
    tpu.vector_store %arg8[%212, %c128_65], %209 {strides = array<i32>} : memref<64x256xf32, #tpu.memory_space<vmem>>, vector<8x128xf32>,
    %c6_i32 = arith.constant 6 : i32
    %c7_i32_66 = arith.constant 7 : i32
    %214 = arith.subi %c7_i32_66, %c6_i32 : i32
    %c8_i32_67 = arith.constant 8 : i32
    %215 = arith.muli %c6_i32, %c8_i32_67 : i32
    %216 = tpu.assume_multiple %215, 8 : i32
    %c8_i32_68 = arith.constant 8 : i32
    %217 = arith.muli %214, %c8_i32_68 : i32
    %218 = tpu.assume_multiple %217, 8 : i32
    %219 = arith.index_cast %216 : i32 to index
    %c0_69 = arith.constant 0 : index
    %220 = vector.load %arg7[%219, %c0_69] : memref<64x512xf32, #tpu.memory_space<vmem>>, vector<8x512xf32>
    %221 = arith.index_cast %218 : i32 to index
    %c0_70 = arith.constant 0 : index
    %222 = vector.load %arg7[%221, %c0_70] : memref<64x512xf32, #tpu.memory_space<vmem>>, vector<8x512xf32>
    %223 = arith.select %26, %220, %222 : vector<8x512xi1>, vector<8x512xf32>
    %cst_71 = arith.constant dense<0.000000e+00> : vector<8x512xf32>
    %224 = tpu.matmul %209, %7, %cst_71 {dimension_numbers = #tpu.dot_dimension_numbers<[1], [0], [0], [1], [0, 0, 1, 1], [], []>} : vector<8x128xf32>, vector<128x512xf32>, vector<8x512xf32> -> vector<8x512xf32>
    %225 = arith.addf %223, %224 : vector<8x512xf32>
    %226 = arith.negf %225 : vector<8x512xf32>
    %227 = math.exp %226 : vector<8x512xf32>
    %cst_72 = arith.constant 1.000000e+00 : f32
    %228 = vector.broadcast %cst_72 : f32 to vector<8x512xf32>
    %229 = arith.addf %228, %227 : vector<8x512xf32>
    %230 = arith.divf %228, %229 : vector<8x512xf32>
    %231 = vector.extract_strided_slice %230 {offsets = [0, 0], sizes = [8, 128], strides = [1, 1]} : vector<8x512xf32> to vector<8x128xf32>
    %232 = vector.extract_strided_slice %230 {offsets = [0, 128], sizes = [8, 128], strides = [1, 1]} : vector<8x512xf32> to vector<8x128xf32>
    %233 = vector.extract_strided_slice %230 {offsets = [0, 384], sizes = [8, 128], strides = [1, 1]} : vector<8x512xf32> to vector<8x128xf32>
    %234 = vector.extract_strided_slice %225 {offsets = [0, 256], sizes = [8, 128], strides = [1, 1]} : vector<8x512xf32> to vector<8x128xf32>
    %235 = math.tanh %234 : vector<8x128xf32>
    %236 = arith.mulf %232, %207 : vector<8x128xf32>
    %237 = arith.mulf %231, %235 : vector<8x128xf32>
    %238 = arith.addf %236, %237 : vector<8x128xf32>
    %239 = math.tanh %238 : vector<8x128xf32>
    %240 = arith.mulf %233, %239 : vector<8x128xf32>
    %241 = arith.index_cast %216 : i32 to index
    %c0_73 = arith.constant 0 : index
    %242 = vector.load %arg8[%241, %c0_73] : memref<64x256xf32, #tpu.memory_space<vmem>>, vector<8x128xf32>
    tpu.vector_store %arg8[%241, %c0_73], %240 {strides = array<i32>} : memref<64x256xf32, #tpu.memory_space<vmem>>, vector<8x128xf32>,
    %243 = arith.index_cast %218 : i32 to index
    %c128_74 = arith.constant 128 : index
    %244 = vector.load %arg8[%243, %c128_74] : memref<64x256xf32, #tpu.memory_space<vmem>>, vector<8x128xf32>
    tpu.vector_store %arg8[%243, %c128_74], %240 {strides = array<i32>} : memref<64x256xf32, #tpu.memory_space<vmem>>, vector<8x128xf32>,
    %c7_i32_75 = arith.constant 7 : i32
    %c7_i32_76 = arith.constant 7 : i32
    %245 = arith.subi %c7_i32_76, %c7_i32_75 : i32
    %c8_i32_77 = arith.constant 8 : i32
    %246 = arith.muli %c7_i32_75, %c8_i32_77 : i32
    %247 = tpu.assume_multiple %246, 8 : i32
    %c8_i32_78 = arith.constant 8 : i32
    %248 = arith.muli %245, %c8_i32_78 : i32
    %249 = tpu.assume_multiple %248, 8 : i32
    %250 = arith.index_cast %247 : i32 to index
    %c0_79 = arith.constant 0 : index
    %251 = vector.load %arg7[%250, %c0_79] : memref<64x512xf32, #tpu.memory_space<vmem>>, vector<8x512xf32>
    %252 = arith.index_cast %249 : i32 to index
    %c0_80 = arith.constant 0 : index
    %253 = vector.load %arg7[%252, %c0_80] : memref<64x512xf32, #tpu.memory_space<vmem>>, vector<8x512xf32>
    %254 = arith.select %26, %251, %253 : vector<8x512xi1>, vector<8x512xf32>
    %cst_81 = arith.constant dense<0.000000e+00> : vector<8x512xf32>
    %255 = tpu.matmul %240, %7, %cst_81 {dimension_numbers = #tpu.dot_dimension_numbers<[1], [0], [0], [1], [0, 0, 1, 1], [], []>} : vector<8x128xf32>, vector<128x512xf32>, vector<8x512xf32> -> vector<8x512xf32>
    %256 = arith.addf %254, %255 : vector<8x512xf32>
    %257 = arith.negf %256 : vector<8x512xf32>
    %258 = math.exp %257 : vector<8x512xf32>
    %cst_82 = arith.constant 1.000000e+00 : f32
    %259 = vector.broadcast %cst_82 : f32 to vector<8x512xf32>
    %260 = arith.addf %259, %258 : vector<8x512xf32>
    %261 = arith.divf %259, %260 : vector<8x512xf32>
    %262 = vector.extract_strided_slice %261 {offsets = [0, 0], sizes = [8, 128], strides = [1, 1]} : vector<8x512xf32> to vector<8x128xf32>
    %263 = vector.extract_strided_slice %261 {offsets = [0, 128], sizes = [8, 128], strides = [1, 1]} : vector<8x512xf32> to vector<8x128xf32>
    %264 = vector.extract_strided_slice %261 {offsets = [0, 384], sizes = [8, 128], strides = [1, 1]} : vector<8x512xf32> to vector<8x128xf32>
    %265 = vector.extract_strided_slice %256 {offsets = [0, 256], sizes = [8, 128], strides = [1, 1]} : vector<8x512xf32> to vector<8x128xf32>
    %266 = math.tanh %265 : vector<8x128xf32>
    %267 = arith.mulf %263, %238 : vector<8x128xf32>
    %268 = arith.mulf %262, %266 : vector<8x128xf32>
    %269 = arith.addf %267, %268 : vector<8x128xf32>
    %270 = math.tanh %269 : vector<8x128xf32>
    %271 = arith.mulf %264, %270 : vector<8x128xf32>
    %272 = arith.index_cast %247 : i32 to index
    %c0_83 = arith.constant 0 : index
    %273 = vector.load %arg8[%272, %c0_83] : memref<64x256xf32, #tpu.memory_space<vmem>>, vector<8x128xf32>
    tpu.vector_store %arg8[%272, %c0_83], %271 {strides = array<i32>} : memref<64x256xf32, #tpu.memory_space<vmem>>, vector<8x128xf32>,
    %274 = arith.index_cast %249 : i32 to index
    %c128_84 = arith.constant 128 : index
    %275 = vector.load %arg8[%274, %c128_84] : memref<64x256xf32, #tpu.memory_space<vmem>>, vector<8x128xf32>
    tpu.vector_store %arg8[%274, %c128_84], %271 {strides = array<i32>} : memref<64x256xf32, #tpu.memory_space<vmem>>, vector<8x128xf32>,
    %c8_i32_85 = arith.constant 8 : i32
    %c0_86 = arith.constant 0 : index
    %c0_87 = arith.constant 0 : index
    %276 = vector.load %arg8[%c0_86, %c0_87] : memref<64x256xf32, #tpu.memory_space<vmem>>, vector<64x256xf32>
    %277 = arith.truncf %276 : vector<64x256xf32> to vector<64x256xbf16>
    %c0_88 = arith.constant 0 : index
    %c0_89 = arith.constant 0 : index
    %278 = vector.load %arg4[%c0_88, %c0_89] : memref<256x128xbf16, #tpu.memory_space<vmem>>, vector<256x128xbf16>
    %cst_90 = arith.constant dense<0.000000e+00> : vector<64x128xf32>
    %279 = tpu.matmul %277, %278, %cst_90 {dimension_numbers = #tpu.dot_dimension_numbers<[1], [0], [0], [1], [0, 0, 1, 1], [], []>} : vector<64x256xbf16>, vector<256x128xbf16>, vector<64x128xf32> -> vector<64x128xf32>
    %c0_91 = arith.constant 0 : index
    %c0_92 = arith.constant 0 : index
    %280 = vector.load %arg5[%c0_91, %c0_92] : memref<1x128xf32, #tpu.memory_space<vmem>>, vector<1x128xf32>
    %281 = vector.broadcast %280 : vector<1x128xf32> to vector<64x128xf32>
    %282 = arith.addf %279, %281 : vector<64x128xf32>
    %c0_93 = arith.constant 0 : index
    %c0_94 = arith.constant 0 : index
    %283 = vector.load %arg6[%c0_93, %c0_94] : memref<64x128xf32, #tpu.memory_space<vmem>>, vector<64x128xf32>
    tpu.vector_store %arg6[%c0_93, %c0_94], %282 {strides = array<i32>} : memref<64x128xf32, #tpu.memory_space<vmem>>, vector<64x128xf32>,
    return
  }
}

</mosaic_0001>

<bundles_post_ra>
// kernel: bilstm_forward.1
= control target key start
LH: loop header
LB: loop body
LE: loop exit
PB: predicated region body
PF: predicated region fallthrough
CT: control target
= control target key end

     0   :  { %vm86_vm0 = vcmask 130048   ;;  %s4060_s1 = inlined_call_operand.vmem [shape: bf16[16,512], index: 1, kind: input, shape index: {}]   ;;  %s4061_s0 = inlined_call_operand.vmem [shape: bf16[64,16], index: 0, kind: input, shape index: {}]   ;;  %s4062_s3 = inlined_call_operand.vmem [shape: f32[128,512], index: 3, kind: input, shape index: {}]   ;;  %s4063_s2 = inlined_call_operand.vmem [shape: f32[1,512], index: 2, kind: input, shape index: {}]   ;;  %s4064_s4 = inlined_call_operand.vmem [shape: bf16[256,128], index: 4, kind: input, shape index: {}]   ;;  %s4065_s5 = inlined_call_operand.vmem [shape: f32[1,128], index: 5, kind: input, shape index: {}]   ;;  %s4066_s6 = inlined_call_operand.vmem [shape: f32[64,128], index: 6, kind: output, shape index: {}]  }
   0x1   :  { %v1962_v0 = vld [vmem:[%s4060_s1] sm:$0xf]  ;;  %v2086_v1 = vld [vmem:[%s4060_s1 + $0xc] sm:$0xf0]  ;;  %v2084_v2 = vld [vmem:[%s4060_s1 + $0x4] sm:$0xf] }
   0x2   :  { %v1963_v3 = vor.u32 %v2086_v1, %v1962_v0  ;;  %v1964_v4 = vld [vmem:[%s4060_s1 + $0x10] sm:$0xf0]  ;;  %v2351_v5 = vld [vmem:[%s4061_s0] sm:$0xff]  ;;  %v2085_v8 = vld [vmem:[%s4060_s1 + $0xc] sm:$0xf]  ;;  %v4067_v0 = vmov 0.0  }
   0x3   :  { %v2356_v6 = vld [vmem:[%s4061_s0 + $0x10] sm:$0xff]  ;;  %v1967_v7 = vor.u32 %v2084_v2, %v1964_v4  ;;  %v1972_v9 = vld [vmem:[%s4060_s1 + $0x18] sm:$0xf0]  ;;  %v2367_v10 = vld [vmem:[%s4062_s3 + $0x1e0] sm:$0xff] }
   0x4   :  { %106 = vmatpush.bf16.msra.mxu0 %v1963_v3  ;;  %2104 = vmatpush.bf16.msra.mxu2 %v1963_v3  ;;  %v1975_v11 = vor.u32 %v2085_v8, %v1972_v9  ;;  %v2372_v12 = vld [vmem:[%s4062_s3 + $0x1e8] sm:$0xff]  ;;  %v2378_v13 = vld [vmem:[%s4062_s3 + $0x1c0] sm:$0xff]  ;;  %v2087_v15 = vld [vmem:[%s4060_s1 + $0x14] sm:$0xf0] }
   0x5   :  { %135 = vmatpush.bf16.msra.mxu1 %v1967_v7  ;;  %2105 = vmatpush.bf16.msra.mxu3 %v1967_v7  ;;  %v1970_v14 = vld [vmem:[%s4060_s1 + $0x8] sm:$0xf]  ;;  %v2402_v18 = vld [vmem:[%s4062_s3 + $0x1a0] sm:$0xff]  ;;  %v2450_v26 = vld [vmem:[%s4062_s3 + $0x1f8] sm:$0xff] }
   0x6   :  { %v1971_v16 = vor.u32 %v2087_v15, %v1970_v14  ;;  %v2397_v17 = vld [vmem:[%s4062_s3 + $0x1c8] sm:$0xff]  ;;  %v2414_v20 = vld [vmem:[%s4062_s3 + $0x180] sm:$0xff]  ;;  %v2461_v28 = vld [vmem:[%s4062_s3 + $0x1d8] sm:$0xff] }
   0x7   :  { %1976 = vmatmul.msk.bf16.vlgmr.msra.gmra.mxu0 %vm86_vm0, %v2351_v5  ;;  %1978 = vmatmul.msk.bf16.vlgmr.msra.gmra.mxu2 %vm86_vm0, %v2356_v6  ;;  %v2409_v19 = vld [vmem:[%s4062_s3 + $0x1a8] sm:$0xff]  ;;  %v2426_v22 = vld [vmem:[%s4062_s3 + $0x160] sm:$0xff]  ;;  %v2466_v29 = vld [vmem:[%s4062_s3 + $0x1f0] sm:$0xff] }
   0x8   :  { %386 = vmatpush.msrb.mxu0 %v2367_v10  ;;  %1980 = vmatmul.msk.bf16.vlgmr.msra.gmra.mxu1 %vm86_vm0, %v2351_v5  ;;  %v2421_v21 = vld [vmem:[%s4062_s3 + $0x188] sm:$0xff]  ;;  %v2438_v24 = vld [vmem:[%s4062_s3 + $0x140] sm:$0xff]  ;;  %v2473_v30 = vld [vmem:[%s4062_s3 + $0x1b8] sm:$0xff] }
   0x9   :  { %193 = vmatpush.bf16.msrb.mxu3 %v1975_v11  ;;  %406 = vmatpush.msrb.mxu1 %v2372_v12  ;;  %v2433_v23 = vld [vmem:[%s4062_s3 + $0x168] sm:$0xff]  ;;  %v2455_v27 = vld [vmem:[%s4062_s3 + $0x120] sm:$0xff]  ;;  %v2478_v31 = vld [vmem:[%s4062_s3 + $0x1d0] sm:$0xff] }
   0xa   :  { %1982 = vmatmul.msk.bf16.vlgmr.msra.gmra.mxu3 %vm86_vm0, %v2356_v6  ;;  %387 = vmatpush.msrb.mxu0 %v2378_v13  ;;  %v2445_v25 = vld [vmem:[%s4062_s3 + $0x148] sm:$0xff]  ;;  %v2488_v33 = vld [vmem:[%s4062_s3 + $0x100] sm:$0xff]  ;;  %v2502_v35 = vld [vmem:[%s4061_s0 + $0x18] sm:$0xff] }
   0xb   :  { %164 = vmatpush.bf16.msrb.mxu2 %v1971_v16  ;;  %407 = vmatpush.msrb.mxu1 %v2397_v17  ;;  %v2483_v32 = vld [vmem:[%s4062_s3 + $0x128] sm:$0xff]  ;;  %4208 = vst [vmem:[#allocation4_spill] sm:$0xff] %v2488_v33  ;;  %v2507_v36 = vld [vmem:[%s4062_s3 + $0x198] sm:$0xff]  ;;  %v2521_v38 = vld [vmem:[%s4062_s3 + $0xe0] sm:$0xff] }
   0xc   :  { %388 = vmatpush.msrb.mxu0 %v2402_v18  ;;  %v2497_v34 = vld [vmem:[%s4061_s0 + $0x8] sm:$0xff]  ;;  %v2540_v40 = vld [vmem:[%s4062_s3 + $0xc0] sm:$0xff]  ;;  %v2545_v41 = vld [vmem:[%s4062_s3 + $0x178] sm:$0xff] }
   0xd   :  { %408 = vmatpush.msrb.mxu1 %v2409_v19  ;;  %446 = vmatpush.msra.mxu3 %v2450_v26  ;;  %v2516_v37 = vld [vmem:[%s4062_s3 + $0x108] sm:$0xff]  ;;  %4211 = vst [vmem:[#allocation7_spill] sm:$0xff] %v2540_v40  ;;  %v2550_v42 = vld [vmem:[%s4062_s3 + $0x1b0] sm:$0xff]  ;;  %v2557_v43 = vld [vmem:[%s4062_s3 + $0x158] sm:$0xff] }
   0xe   :  { %389 = vmatpush.msrb.mxu0 %v2414_v20  ;;  %4209 = vst [vmem:[#allocation5_spill] sm:$0xff] %v2516_v37  ;;  %v2531_v39 = vld [vmem:[%s4062_s3 + $0xe8] sm:$0xff]  ;;  %v2562_v44 = vld [vmem:[%s4062_s3 + $0x190] sm:$0xff]  ;;  %v2572_v46 = vld [vmem:[%s4062_s3 + $0xa0] sm:$0xff] }
   0xf   :  { %409 = vmatpush.msrb.mxu1 %v2421_v21  ;;  %447 = vmatpush.msra.mxu3 %v2461_v28  ;;  %4210 = vst [vmem:[#allocation6_spill] sm:$0xff] %v2531_v39  ;;  %v2567_v45 = vld [vmem:[%s4062_s3 + $0xc8] sm:$0xff]  ;;  %v2581_v47 = vld [vmem:[%s4062_s3 + $0x138] sm:$0xff]  ;;  %v2586_v48 = vld [vmem:[%s4062_s3 + $0x170] sm:$0xff] }
  0x10   :  { %390 = vmatpush.msrb.mxu0 %v2426_v22  ;;  %426 = vmatpush.msra.mxu2 %v2466_v29  ;;  %4212 = vst [vmem:[#allocation8_spill] sm:$0xff] %v2567_v45  ;;  %v2591_v49 = vld [vmem:[%s4062_s3 + $0xa8] sm:$0xff]  ;;  %v2596_v50 = vld [vmem:[%s4062_s3 + $0x80] sm:$0xff]  ;;  %v2605_v51 = vld [vmem:[%s4062_s3 + $0x118] sm:$0xff] }
  0x11   :  { %410 = vmatpush.msrb.mxu1 %v2433_v23  ;;  %448 = vmatpush.msra.mxu3 %v2473_v30  ;;  %4213 = vst [vmem:[#allocation9_spill] sm:$0xff] %v2572_v46  ;;  %v2610_v52 = vld [vmem:[%s4062_s3 + $0x150] sm:$0xff]  ;;  %v2615_v53 = vld [vmem:[%s4062_s3 + $0x88] sm:$0xff]  ;;  %v2620_v54 = vld [vmem:[%s4062_s3 + $0x60] sm:$0xff] }
  0x12   :  { %391 = vmatpush.msrb.mxu0 %v2438_v24  ;;  %427 = vmatpush.msra.mxu2 %v2478_v31  ;;  %4214 = vst [vmem:[#allocation10_spill] sm:$0xff] %v2591_v49  ;;  %v2629_v55 = vld [vmem:[%s4062_s3 + $0x68] sm:$0xff]  ;;  %v2634_v56 = vld [vmem:[%s4062_s3 + $0x40] sm:$0xff]  ;;  %v2678_v62 = vld [vmem:[%s4062_s3 + $0xf8] sm:$0xff] }
  0x13   :  { %411 = vmatpush.msrb.mxu1 %v2445_v25  ;;  %449 = vmatpush.msra.mxu3 %v2507_v36  ;;  %4215 = vst [vmem:[#allocation11_spill] sm:$0xff] %v2596_v50  ;;  %v2643_v57 = vld [vmem:[%s4062_s3 + $0x48] sm:$0xff]  ;;  %v2648_v58 = vld [vmem:[%s4062_s3 + $0x20] sm:$0xff]  ;;  %v2683_v63 = vld [vmem:[%s4062_s3 + $0x130] sm:$0xff] }
  0x14   :  { %392 = vmatpush.msrb.mxu0 %v2455_v27  ;;  %428 = vmatpush.msra.mxu2 %v2550_v42  ;;  %4216 = vst [vmem:[#allocation12_spill] sm:$0xff] %v2615_v53  ;;  %v2655_v59 = vld [vmem:[%s4062_s3 + $0x28] sm:$0xff]  ;;  %v2662_v60 = vld [vmem:[%s4062_s3] sm:$0xff]  ;;  %v2690_v1 = vld [vmem:[%s4062_s3 + $0xd8] sm:$0xff] }
  0x15   :  { %412 = vmatpush.msrb.mxu1 %v2483_v32  ;;  %450 = vmatpush.msra.mxu3 %v2545_v41  ;;  %4217 = vst [vmem:[#allocation13_spill] sm:$0xff] %v2620_v54  ;;  %v2667_v61 = vld [vmem:[%s4062_s3 + $0x8] sm:$0xff]  ;;  %v2697_v2 = vld [vmem:[%s4062_s3 + $0x110] sm:$0xff]  ;;  %v2703_v3 = vld [vmem:[%s4062_s3 + $0xb8] sm:$0xff] }
  0x16   :  { %393 = vmatpush.msrb.mxu0 %v2488_v33  ;;  %429 = vmatpush.msra.mxu2 %v2562_v44  ;;  %4218 = vst [vmem:[#allocation14_spill] sm:$0xff] %v2629_v55  ;;  %v2710_v4 = vld [vmem:[%s4062_s3 + $0xf0] sm:$0xff]  ;;  %v2746_v8 = vld [vmem:[%s4062_s3 + $0x78] sm:$0xff] }
  0x17   :  { %1977 = vmatmul.msk.bf16.gmra.mxu0 %vm86_vm0, %v2497_v34  ;;  %1979 = vmatmul.msk.bf16.gmra.mxu2 %vm86_vm0, %v2502_v35  ;;  %4219 = vst [vmem:[#allocation15_spill] sm:$0xff] %v2634_v56  ;;  %v2724_v7 = vld [vmem:[%s4062_s3 + $0xd0] sm:$0xff]  ;;  %v2756_v11 = vld [vmem:[%s4062_s3 + $0x58] sm:$0xff] }
  0x18   :  { %1981 = vmatmul.msk.bf16.gmra.mxu1 %vm86_vm0, %v2497_v34  ;;  %394 = vmatpush.msrb.mxu0 %v2521_v38  ;;  %4220 = vst [vmem:[#allocation16_spill] sm:$0xff] %v2643_v57  ;;  %v2751_v9 = vld [vmem:[%s4062_s3 + $0xb0] sm:$0xff]  ;;  %v2769_v15 = vld [vmem:[%s4062_s3 + $0x38] sm:$0xff] }
  0x19   :  { %413 = vmatpush.msrb.mxu1 %v2516_v37  ;;  %451 = vmatpush.msra.mxu3 %v2557_v43  ;;  %4221 = vst [vmem:[#allocation17_spill] sm:$0xff] %v2648_v58  ;;  %v2764_v14 = vld [vmem:[%s4062_s3 + $0x90] sm:$0xff] }
  0x1a   :  { %1983 = vmatmul.msk.bf16.gmra.mxu3 %vm86_vm0, %v2502_v35  ;;  %395 = vmatpush.msrb.mxu0 %v2540_v40  ;;  %4222 = vst [vmem:[#allocation18_spill] sm:$0xff] %v2655_v59  ;;  %v2774_v16 = vld [vmem:[%s4062_s3 + $0x70] sm:$0xff] }
  0x1b   :  { %414 = vmatpush.msrb.mxu1 %v2531_v39  ;;  %452 = vmatpush.msra.mxu3 %v2581_v47  ;;  %4223 = vst [vmem:[#allocation19_spill] sm:$0xff] %v2662_v60 }
  0x1c   :  { %396 = vmatpush.msrb.mxu0 %v2572_v46  ;;  %430 = vmatpush.msra.mxu2 %v2586_v48  ;;  %4224 = vst [vmem:[#allocation20_spill] sm:$0xff] %v2667_v61 }
  0x1d   :  { %415 = vmatpush.msrb.mxu1 %v2567_v45  ;;  %453 = vmatpush.msra.mxu3 %v2605_v51  ;;  %4225 = vst [vmem:[#allocation21_spill] sm:$0xff] %v2690_v1 }
  0x1e   :  { %397 = vmatpush.msrb.mxu0 %v2596_v50  ;;  %431 = vmatpush.msra.mxu2 %v2610_v52  ;;  %4226 = vst [vmem:[#allocation22_spill] sm:$0xff] %v2703_v3 }
  0x1f   :  { %416 = vmatpush.msrb.mxu1 %v2591_v49  ;;  %454 = vmatpush.msra.mxu3 %v2678_v62  ;;  %4228 = vst [vmem:[#allocation24_spill] sm:$0xff] %v2724_v7 }
  0x20   :  { %398 = vmatpush.msrb.mxu0 %v2620_v54  ;;  %432 = vmatpush.msra.mxu2 %v2683_v63  ;;  %4229 = vst [vmem:[#allocation25_spill] sm:$0xff] %v2746_v8 }
  0x21   :  { %417 = vmatpush.msrb.mxu1 %v2615_v53  ;;  %455 = vmatpush.msra.mxu3 %v2690_v1  ;;  %4230 = vst [vmem:[#allocation26_spill] sm:$0xff] %v2751_v9 }
  0x22   :  { %399 = vmatpush.msrb.mxu0 %v2634_v56  ;;  %433 = vmatpush.msra.mxu2 %v2697_v2  ;;  %4231 = vst [vmem:[#allocation27_spill] sm:$0xff] %v2756_v11 }
  0x23   :  { %418 = vmatpush.msrb.mxu1 %v2629_v55  ;;  %456 = vmatpush.msra.mxu3 %v2703_v3  ;;  %4232 = vst [vmem:[#allocation28_spill] sm:$0xff] %v2764_v14 }
  0x24   :  { %400 = vmatpush.msrb.mxu0 %v2648_v58  ;;  %434 = vmatpush.msra.mxu2 %v2710_v4  ;;  %4233 = vst [vmem:[#allocation29_spill] sm:$0xff] %v2769_v15 }
  0x25   :  { %419 = vmatpush.msrb.mxu1 %v2643_v57  ;;  %4234 = vst [vmem:[#allocation30_spill] sm:$0xff] %v2774_v16 }
  0x26   :  { %401 = vmatpush.msrb.mxu0 %v2662_v60  ;;  %435 = vmatpush.msra.mxu2 %v2724_v7 }
  0x27   :  { %420 = vmatpush.msrb.mxu1 %v2655_v59  ;;  %1984 = vmatmul.msk.bf16.vlgmr.msrb.gmra.mxu2 %vm86_vm0, %v2351_v5 }
  0x28   :  { %402 = vmatmul.f32.vlgmr.msrb.gmra.mxu0 %v4067_v0  ;;  %436 = vmatpush.msra.mxu2 %v2751_v9 }
  0x29   :  { %421 = vmatpush.msrb.mxu1 %v2667_v61  ;;  %559 = vmatpush.msra.mxu0 %v2367_v10 }
  0x2a   :  { %1988 = vmatmul.msk.bf16.vlgmr.msrb.gmra.mxu3 %vm86_vm0, %v2351_v5  ;;  %422 = vmatmul.f32.vlgmr.msrb.gmra.mxu1 %v4067_v0  ;;  %v2717_v5 = vld [vmem:[%s4062_s3 + $0x98] sm:$0xff] }
  0x2b   :  { %579 = vmatpush.msra.mxu1 %v2372_v12  ;;  %4227 = vst [vmem:[#allocation23_spill] sm:$0xff] %v2717_v5  ;;  %560 = vmatpush.msra.mxu0 %v2378_v13  ;;  %v2788_v0 = vld [vmem:[%s4062_s3 + $0x18] sm:$0xff] }
  0x2c   :  { %457 = vmatpush.msra.mxu3 %v2717_v5  ;;  %437 = vmatpush.msra.mxu2 %v2764_v14  ;;  %4236 = vst [vmem:[#allocation32_spill] sm:$0xff] %v2788_v0 }
  0x2d   :  { %580 = vmatpush.msra.mxu1 %v2397_v17  ;;  %561 = vmatpush.msra.mxu0 %v2402_v18 }
  0x2e   :  { %458 = vmatpush.msra.mxu3 %v2746_v8  ;;  %438 = vmatpush.msra.mxu2 %v2774_v16 }
  0x2f   :  { %581 = vmatpush.msra.mxu1 %v2409_v19  ;;  %562 = vmatpush.msra.mxu0 %v2414_v20 }
  0x30   :  { %459 = vmatpush.msra.mxu3 %v2756_v11 }
  0x31   :  { %582 = vmatpush.msra.mxu1 %v2421_v21  ;;  %563 = vmatpush.msra.mxu0 %v2426_v22 }
  0x32   :  { %460 = vmatpush.msra.mxu3 %v2769_v15 }
  0x33   :  { %583 = vmatpush.msra.mxu1 %v2433_v23  ;;  %564 = vmatpush.msra.mxu0 %v2438_v24 }
  0x34   :  { %461 = vmatpush.msra.mxu3 %v2788_v0 }
  0x35   :  { %584 = vmatpush.msra.mxu1 %v2445_v25  ;;  %565 = vmatpush.msra.mxu0 %v2455_v27 }
  0x36   :  { %619 = vmatpush.msrb.mxu3 %v2450_v26 }
  0x37   :  { %1985 = vmatmul.msk.bf16.gmra.mxu2 %vm86_vm0, %v2497_v34  ;;  %585 = vmatpush.msra.mxu1 %v2483_v32 }
  0x38   :  { %566 = vmatpush.msra.mxu0 %v2488_v33  ;;  %620 = vmatpush.msrb.mxu3 %v2461_v28 }
  0x39   :  { %586 = vmatpush.msra.mxu1 %v2516_v37  ;;  %v2797_v37 = vld [vmem:[%s4062_s3 + $0x30] sm:$0xff] }
  0x3a   :  { %1989 = vmatmul.msk.bf16.gmra.mxu3 %vm86_vm0, %v2497_v34  ;;  %v2783_v34 = vld [vmem:[%s4062_s3 + $0x50] sm:$0xff]  ;;  %567 = vmatpush.msra.mxu0 %v2521_v38  ;;  %4237 = vst [vmem:[#allocation33_spill] sm:$0xff] %v2797_v37 }
  0x3b   :  { %4235 = vst [vmem:[#allocation31_spill] sm:$0xff] %v2783_v34  ;;  %587 = vmatpush.msra.mxu1 %v2531_v39  ;;  %439 = vmatpush.msra.mxu2 %v2783_v34  ;;  %v2806_v39 = vld [vmem:[%s4062_s3 + $0x10] sm:$0xff] }
  0x3c   :  { %568 = vmatpush.msra.mxu0 %v2540_v40  ;;  %4238 = vst [vmem:[#allocation34_spill] sm:$0xff] %v2806_v39  ;;  %621 = vmatpush.msrb.mxu3 %v2473_v30 }
  0x3d   :  { %588 = vmatpush.msra.mxu1 %v2567_v45  ;;  %440 = vmatpush.msra.mxu2 %v2797_v37 }
  0x3e   :  { %569 = vmatpush.msra.mxu0 %v2572_v46  ;;  %622 = vmatpush.msrb.mxu3 %v2507_v36 }
  0x3f   :  { %589 = vmatpush.msra.mxu1 %v2591_v49  ;;  %441 = vmatpush.msra.mxu2 %v2806_v39 }
  0x40   :  { %570 = vmatpush.msra.mxu0 %v2596_v50  ;;  %623 = vmatpush.msrb.mxu3 %v2545_v41 }
  0x41   :  { %590 = vmatpush.msra.mxu1 %v2615_v53  ;;  %599 = vmatpush.msrb.mxu2 %v2466_v29 }
  0x42   :  { %571 = vmatpush.msra.mxu0 %v2620_v54  ;;  %624 = vmatpush.msrb.mxu3 %v2557_v43 }
  0x43   :  { %591 = vmatpush.msra.mxu1 %v2629_v55  ;;  %600 = vmatpush.msrb.mxu2 %v2478_v31 }
  0x44   :  { %572 = vmatpush.msra.mxu0 %v2634_v56  ;;  %625 = vmatpush.msrb.mxu3 %v2581_v47 }
  0x45   :  { %601 = vmatpush.msrb.mxu2 %v2550_v42  ;;  %592 = vmatpush.msra.mxu1 %v2643_v57 }
  0x46   :  { %573 = vmatpush.msra.mxu0 %v2648_v58  ;;  %626 = vmatpush.msrb.mxu3 %v2605_v51 }
  0x47   :  { %1986 = vmatmul.msk.bf16.gmra.mxu2 %vm86_vm0, %v2356_v6  ;;  %593 = vmatpush.msra.mxu1 %v2655_v59 }
  0x48   :  { %602 = vmatpush.msrb.mxu2 %v2562_v44  ;;  %574 = vmatpush.msra.mxu0 %v2662_v60 }
  0x49   :  { %594 = vmatpush.msra.mxu1 %v2667_v61  ;;  %627 = vmatpush.msrb.mxu3 %v2678_v62 }
  0x4a   :  { %1990 = vmatmul.msk.bf16.gmra.mxu3 %vm86_vm0, %v2356_v6  ;;  %603 = vmatpush.msrb.mxu2 %v2586_v48  ;;  %v4239_v6 = vld [vmem:[#allocation5_spill] sm:$0xff] }
  0x4b   :  { %732 = vmatpush.msrb.mxu0 %v2367_v10  ;;  %752 = vmatpush.msrb.mxu1 %v2372_v12 }
  0x4c   :  { %604 = vmatpush.msrb.mxu2 %v2610_v52  ;;  %628 = vmatpush.msrb.mxu3 %v2690_v1 }
  0x4d   :  { %733 = vmatpush.msrb.mxu0 %v2378_v13  ;;  %753 = vmatpush.msrb.mxu1 %v2397_v17 }
  0x4e   :  { %605 = vmatpush.msrb.mxu2 %v2683_v63  ;;  %629 = vmatpush.msrb.mxu3 %v2703_v3 }
  0x4f   :  { %734 = vmatpush.msrb.mxu0 %v2402_v18  ;;  %754 = vmatpush.msrb.mxu1 %v2409_v19 }
  0x50   :  { %606 = vmatpush.msrb.mxu2 %v2697_v2  ;;  %630 = vmatpush.msrb.mxu3 %v2717_v5 }
  0x51   :  { %735 = vmatpush.msrb.mxu0 %v2414_v20  ;;  %755 = vmatpush.msrb.mxu1 %v2421_v21 }
  0x52   :  { %607 = vmatpush.msrb.mxu2 %v2710_v4  ;;  %631 = vmatpush.msrb.mxu3 %v2746_v8 }
  0x53   :  { %736 = vmatpush.msrb.mxu0 %v2426_v22  ;;  %756 = vmatpush.msrb.mxu1 %v2433_v23 }
  0x54   :  { %608 = vmatpush.msrb.mxu2 %v2724_v7  ;;  %632 = vmatpush.msrb.mxu3 %v2756_v11 }
  0x55   :  { %737 = vmatpush.msrb.mxu0 %v2438_v24  ;;  %757 = vmatpush.msrb.mxu1 %v2445_v25 }
  0x56   :  { %609 = vmatpush.msrb.mxu2 %v2751_v9  ;;  %633 = vmatpush.msrb.mxu3 %v2769_v15 }
  0x57   :  { %1987 = vmatmul.msk.bf16.gmra.mxu2 %vm86_vm0, %v2502_v35  ;;  %738 = vmatpush.msrb.mxu0 %v2455_v27 }
  0x58   :  { %610 = vmatpush.msrb.mxu2 %v2764_v14  ;;  %758 = vmatpush.msrb.mxu1 %v2483_v32 }
  0x59   :  { %739 = vmatpush.msrb.mxu0 %v2488_v33  ;;  %634 = vmatpush.msrb.mxu3 %v2788_v0  ;;  %v4241_v33 = vmov 0.0  }
  0x5a   :  { %1991 = vmatmul.msk.bf16.gmra.mxu3 %vm86_vm0, %v2502_v35  ;;  %611 = vmatpush.msrb.mxu2 %v2774_v16  ;;  %v4240_v35 = vld [vmem:[#allocation6_spill] sm:$0xff] }
  0x5b   :  { %759 = vmatpush.msrb.mxu1 %v4239_v6  ;;  %740 = vmatpush.msrb.mxu0 %v2521_v38 }
  0x5c   :  { %612 = vmatpush.msrb.mxu2 %v2783_v34 }
  0x5d   :  { %760 = vmatpush.msrb.mxu1 %v4240_v35  ;;  %741 = vmatpush.msrb.mxu0 %v2540_v40  ;;  %v4266_v40 = vmov 0 }
  0x5e   :  { %613 = vmatpush.msrb.mxu2 %v2797_v37 }
  0x5f   :  { %761 = vmatpush.msrb.mxu1 %v2567_v45  ;;  %742 = vmatpush.msrb.mxu0 %v2572_v46 }
  0x60   :  { %614 = vmatpush.msrb.mxu2 %v2806_v39 }
  0x61   :  { %762 = vmatpush.msrb.mxu1 %v2591_v49  ;;  %743 = vmatpush.msrb.mxu0 %v2596_v50 }
  0x63   :  { %763 = vmatpush.msrb.mxu1 %v2615_v53  ;;  %744 = vmatpush.msrb.mxu0 %v2620_v54 }
  0x65   :  { %764 = vmatpush.msrb.mxu1 %v2629_v55  ;;  %745 = vmatpush.msrb.mxu0 %v2634_v56 }
  0x67   :  { %442 = vmatmul.f32.vlgmr.msra.gmra.mxu2 %v4241_v33  ;;  %765 = vmatpush.msrb.mxu1 %v2643_v57 }
  0x68   :  { %772 = vmatpush.msra.mxu2 %v2466_v29  ;;  %746 = vmatpush.msrb.mxu0 %v2648_v58 }
  0x69   :  { %766 = vmatpush.msrb.mxu1 %v2655_v59  ;;  %v311_v59 = vlaneseq }
  0x6a   :  { %462 = vmatmul.f32.vlgmr.msra.gmra.mxu3 %v4241_v33  ;;  %773 = vmatpush.msra.mxu2 %v2478_v31 }
  0x6b   :  { %792 = vmatpush.msra.mxu3 %v2450_v26  ;;  %747 = vmatpush.msrb.mxu0 %v2662_v60 }
  0x6c   :  { %774 = vmatpush.msra.mxu2 %v2550_v42  ;;  %767 = vmatpush.msrb.mxu1 %v2667_v61  ;;  %v36_v61 = vld [vmem:[%s4063_s2] sm:$0xf] }
  0x6d   :  { %793 = vmatpush.msra.mxu3 %v2461_v28  ;;  %v38_v58 = vperm.slane %v36_v61, 0  ;;  %v39_v57 = vperm.slane %v36_v61, 1 }
  0x6e   :  { %775 = vmatpush.msra.mxu2 %v2562_v44 }
  0x6f   :  { %794 = vmatpush.msra.mxu3 %v2473_v30 }
  0x70   :  { %776 = vmatpush.msra.mxu2 %v2586_v48 }
  0x71   :  { %795 = vmatpush.msra.mxu3 %v2507_v36 }
  0x72   :  { %777 = vmatpush.msra.mxu2 %v2610_v52 }
  0x73   :  { %796 = vmatpush.msra.mxu3 %v2545_v41 }
  0x74   :  { %778 = vmatpush.msra.mxu2 %v2683_v63 }
  0x75   :  { %797 = vmatpush.msra.mxu3 %v2557_v43 }
  0x76   :  { %779 = vmatpush.msra.mxu2 %v2697_v2 }
  0x77   :  { %798 = vmatpush.msra.mxu3 %v2581_v47 }
  0x78   :  { %780 = vmatpush.msra.mxu2 %v2710_v4 }
  0x79   :  { %799 = vmatpush.msra.mxu3 %v2605_v51 }
  0x7a   :  { %781 = vmatpush.msra.mxu2 %v2724_v7 }
  0x7b   :  { %800 = vmatpush.msra.mxu3 %v2678_v62 }
  0x7c   :  { %782 = vmatpush.msra.mxu2 %v2751_v9 }
  0x7d   :  { %801 = vmatpush.msra.mxu3 %v2690_v1 }
  0x7e   :  { %783 = vmatpush.msra.mxu2 %v2764_v14 }
  0x7f   :  { %802 = vmatpush.msra.mxu3 %v2703_v3 }
  0x80   :  { %784 = vmatpush.msra.mxu2 %v2774_v16 }
  0x81   :  { %803 = vmatpush.msra.mxu3 %v2717_v5 }
  0x82   :  { %785 = vmatpush.msra.mxu2 %v2783_v34  ;;  %v2931_v34 = vand.u32 127, %v311_v59 }
  0x83   :  { %804 = vmatpush.msra.mxu3 %v2746_v8 }
  0x84   :  { %v108_v33 = vpop.f32.mrf.mxu0  ;;  %786 = vmatpush.msra.mxu2 %v2797_v37  ;;  %v313_v5 = vadd.s32 128, %v2931_v34  ;;  %vm364_vm1 = vcmp.lt.s32.totalorder %v2931_v34, 64 }
  0x85   :  { %805 = vmatpush.msra.mxu3 %v2756_v11  ;;  %v137_v60 = vpop.f32.mrf.mxu1 }
  0x86   :  { %787 = vmatpush.msra.mxu2 %v2806_v39 }
  0x87   :  { %806 = vmatpush.msra.mxu3 %v2769_v15  ;;  %v327_v15 = vand.u32 127, %v313_v5  ;;  %v2999_v5 = vadd.f32 %v137_v60, %v39_v57  ;;  %v3015_v60 = vperm.slane %v36_v61, 2 }
  0x89   :  { %807 = vmatpush.msra.mxu3 %v2788_v0  ;;  %vm2941_vm2 = vcmp.lt.s32.totalorder %v327_v15, 64  ;;  %4257 = vst [vmem:[#allocation46_spill] sm:$0xff] %v2999_v5 }
  0x8a   :  { %v118_v11 = vpop.f32.mrf.mxu2 }
  0x8b   :  { %v119_v56 = vadd.f32 %v118_v11, %v38_v58 }
  0x8c   :  { %v110_v16 = vpop.f32.mrf.mxu0 }
  0x8d   :  { %v147_v8 = vpop.f32.mrf.mxu3  ;;  %v111_v55 = vadd.f32 %v110_v16, %v38_v58  ;;  %v139_v54 = vpop.f32.mrf.mxu1 }
  0x8e   :  { %v2933_v37 = vadd.f32 %v147_v8, %v39_v57  ;;  %v2936_v14 = vadd.f32 %v139_v54, %v39_v57  ;;  %v4245_v8 = vmov 0 }
  0x8f   :  { %v4246_v8 = vsel %vm2941_vm2, 4294967295, %v4245_v8 }
  0x90   :  { %4242 = vst [vmem:[#allocation5_spill] sm:$0xff] %v2933_v37 }
  0x91   :  { %4243 = vst [vmem:[#allocation6_spill] sm:$0xff] %v2936_v14 }
  0x92   :  { %v120_v39 = vpop.f32.mrf.mxu2  ;;  %4247 = vst [vmem:[#allocation36_spill] sm:$0xff] %v4246_v8 }
  0x93   :  { %v121_v53 = vadd.f32 %v120_v39, %v38_v58 }
  0x94   :  { %v113_v59 = vpop.f32.mrf.mxu0 }
  0x95   :  { %v149_v50 = vpop.f32.mrf.mxu3  ;;  %v114_v11 = vadd.f32 %v113_v59, %v38_v58  ;;  %v142_v3 = vpop.f32.mrf.mxu1 }
  0x96   :  { %v2938_v0 = vadd.f32 %v149_v50, %v39_v57  ;;  %v2945_v16 = vadd.f32 %v142_v3, %v39_v57 }
  0x97   :  { %v2949_v54 = vsel %vm364_vm1, %v114_v11, %v121_v53  ;;  %v2953_v39 = vsel %vm364_vm1, %v121_v53, %v114_v11 }
  0x98   :  { %4244 = vst [vmem:[#allocation35_spill] sm:$0xff] %v2938_v0 }
  0x99   :  { %4248 = vst [vmem:[#allocation37_spill] sm:$0xff] %v2945_v16  ;;  %v315_v16 = vadd.s32 384, %v2931_v34 }
  0x9a   :  { %4249 = vst [vmem:[#allocation38_spill] sm:$0xff] %v2949_v54  ;;  %v123_v3 = vpop.f32.mrf.mxu2 }
  0x9b   :  { %4250 = vst [vmem:[#allocation39_spill] sm:$0xff] %v2953_v39  ;;  %v124_v15 = vadd.f32 %v123_v3, %v38_v58  ;;  %v109_v3 = vadd.f32 %v108_v33, %v38_v58  ;;  %v3017_v33 = vperm.slane %v36_v61, 3  ;;  %v314_v61 = vadd.s32 256, %v2931_v34 }
  0x9c   :  { %v115_v54 = vpop.f32.mrf.mxu0  ;;  %v341_v1 = vand.u32 127, %v315_v16 }
  0x9d   :  { %v152_v59 = vpop.f32.mrf.mxu3  ;;  %v116_v49 = vadd.f32 %v115_v54, %v38_v58  ;;  %v144_v46 = vpop.f32.mrf.mxu1  ;;  %v2967_v53 = vsel %vm364_vm1, %v111_v55, %v124_v15  ;;  %v2971_v11 = vsel %vm364_vm1, %v124_v15, %v111_v55 }
  0x9e   :  { %v2963_v9 = vadd.f32 %v152_v59, %v39_v57  ;;  %4252 = vst [vmem:[#allocation41_spill] sm:$0xff] %v2967_v53  ;;  %v2973_v50 = vadd.f32 %v144_v46, %v39_v57  ;;  %v334_v53 = vand.u32 127, %v314_v61  ;;  %vm3052_vm4 = vcmp.lt.s32.totalorder %v341_v1, 64 }
  0x9f   :  { %4253 = vst [vmem:[#allocation42_spill] sm:$0xff] %v2971_v11  ;;  %v2985_v59 = vsel %vm364_vm1, %v116_v49, %v119_v56  ;;  %v2989_v55 = vsel %vm364_vm1, %v119_v56, %v116_v49 }
  0xa0   :  { %4251 = vst [vmem:[#allocation40_spill] sm:$0xff] %v2963_v9  ;;  %vm3045_vm3 = vcmp.lt.s32.totalorder %v334_v53, 64 }
  0xa1   :  { %4254 = vst [vmem:[#allocation43_spill] sm:$0xff] %v2973_v50  ;;  %v4267_v40 = vsel %vm3045_vm3, 4294967295, %v4266_v40 }
  0xa2   :  { %4255 = vst [vmem:[#allocation44_spill] sm:$0xff] %v2985_v59  ;;  %v125_v54 = vpop.f32.mrf.mxu2 }
  0xa3   :  { %4256 = vst [vmem:[#allocation45_spill] sm:$0xff] %v2989_v55  ;;  %v126_v11 = vadd.f32 %v125_v54, %v38_v58 }
  0xa4   :  { %4268 = vst [vmem:[#allocation55_spill] sm:$0xff] %v4267_v40 }
  0xa5   :  { %v154_v39 = vpop.f32.mrf.mxu3  ;;  %v3005_v49 = vsel %vm364_vm1, %v126_v11, %v109_v3  ;;  %v403_v9 = vpop.f32.mrf.mxu0 }
  0xa6   :  { %v3001_v59 = vadd.f32 %v154_v39, %v39_v57  ;;  %4259 = vst [vmem:[#allocation48_spill] sm:$0xff] %v3005_v49 }
  0xa7   :  { %v423_v14 = vpop.f32.mrf.mxu1 }
  0xa8   :  { %4258 = vst [vmem:[#allocation47_spill] sm:$0xff] %v3001_v59 }
  0xaa   :  { %v3011_v46 = vpop.f32.mrf.mxu2 }
  0xad   :  { %v3013_v15 = vpop.f32.mrf.mxu3 }
  0xb2   :  { %v168_v58 = vpop.f32.mrf.mxu2 }
  0xb3   :  { %v3020_v57 = vadd.f32 %v168_v58, %v3015_v60 }
  0xb5   :  { %4260 = vst [vmem:[#allocation49_spill] sm:$0xff] %v3020_v57  ;;  %v197_v39 = vpop.f32.mrf.mxu3 }
  0xb6   :  { %v3023_v54 = vadd.f32 %v197_v39, %v3017_v33 }
  0xb8   :  { %4261 = vst [vmem:[#allocation50_spill] sm:$0xff] %v3023_v54 }
  0xba   :  { %v171_v49 = vpop.f32.mrf.mxu2 }
  0xbb   :  { %v3026_v55 = vadd.f32 %v171_v49, %v3015_v60  ;;  %v382_v49 = vsel %vm364_vm1, %v109_v3, %v126_v11  ;;  %v4270_v11 = vmov 0 }
  0xbc   :  { %v4271_v11 = vsel %vm3052_vm4, 4294967295, %v4270_v11 }
  0xbd   :  { %4262 = vst [vmem:[#allocation51_spill] sm:$0xff] %v3026_v55  ;;  %v200_v56 = vpop.f32.mrf.mxu3 }
  0xbe   :  { %v3029_v37 = vadd.f32 %v200_v56, %v3017_v33  ;;  %v383_v56 = vsel %vm2941_vm2, %v2999_v5, %v3001_v59  ;;  %4272 = vst [vmem:[#allocation57_spill] sm:$0xff] %v4271_v11 }
  0xbf   :  { %v467_v7 = vadd.f32 %v423_v14, %v383_v56 }
  0xc0   :  { %4263 = vst [vmem:[#allocation52_spill] sm:$0xff] %v3029_v37 }
  0xc1   :  { %v1993_v16 = vmul.f32 -1.442695, %v467_v7 }
  0xc2   :  { %v173_v50 = vpop.f32.mrf.mxu2 }
  0xc3   :  { %v3033_v0 = vadd.f32 %v173_v50, %v3015_v60  ;;  %v466_v50 = vadd.f32 %v403_v9, %v382_v49 }
  0xc5   :  { %4264 = vst [vmem:[#allocation53_spill] sm:$0xff] %v3033_v0  ;;  %v202_v58 = vpop.f32.mrf.mxu3  ;;  %v1992_v3 = vmul.f32 -1.442695, %v466_v50 }
  0xc6   :  { %v3037_v39 = vadd.f32 %v202_v58, %v3017_v33 }
  0xc7   :  { %2108 = vpow2.f32 %v1992_v3  ;;  %v3121_v3 = vadd.f32 %v3011_v46, %v3015_v60 }
  0xc8   :  { %4265 = vst [vmem:[#allocation54_spill] sm:$0xff] %v3037_v39  ;;  %2110 = vpow2.f32 %v1993_v16 }
  0xc9   :  { %4278 = vst [vmem:[#allocation63_spill] sm:$0xff] %v3121_v3 }
  0xca   :  { %v176_v45 = vpop.f32.mrf.mxu2 }
  0xcb   :  { %v3050_v58 = vadd.f32 %v176_v45, %v3015_v60 }
  0xcd   :  { %4269 = vst [vmem:[#allocation56_spill] sm:$0xff] %v3050_v58  ;;  %v205_v34 = vpop.f32.mrf.mxu3  ;;  %v3128_v58 = vadd.f32 %v3013_v15, %v3017_v33 }
  0xce   :  { %v3057_v5 = vadd.f32 %v205_v34, %v3017_v33  ;;  %v2109_v34 = vpop.eup %2108 }
  0xcf   :  { %4280 = vst [vmem:[#allocation65_spill] sm:$0xff] %v3128_v58 }
  0xd0   :  { %4273 = vst [vmem:[#allocation58_spill] sm:$0xff] %v3057_v5 }
  0xd2   :  { %v178_v14 = vpop.f32.mrf.mxu2 }
  0xd3   :  { %v3076_v53 = vadd.f32 %v178_v14, %v3015_v60  ;;  %v2111_v14 = vpop.eup %2110 }
  0xd4   :  { %v480_v45 = vadd.f32 1.0, %v2111_v14 }
  0xd5   :  { %4274 = vst [vmem:[#allocation59_spill] sm:$0xff] %v3076_v53  ;;  %v207_v61 = vpop.f32.mrf.mxu3 }
  0xd6   :  { %v3079_v49 = vadd.f32 %v207_v61, %v3017_v33  ;;  %v479_v61 = vadd.f32 1.0, %v2109_v34  ;;  %v508_v37 = vand.u32 2147483648, %v480_v45  ;;  %vm502_vm8 = vweird.f32 %v480_v45 }
  0xd8   :  { %4275 = vst [vmem:[#allocation60_spill] sm:$0xff] %v3079_v49  ;;  %2112 = vrcp.f32 %v479_v61  ;;  %vm487_vm7 = vweird.f32 %v479_v61 }
  0xd9   :  { %2114 = vrcp.f32 %v480_v45 }
  0xda   :  { %v181_v7 = vpop.f32.mrf.mxu2 }
  0xdb   :  { %v3098_v9 = vadd.f32 %v181_v7, %v3015_v60 }
  0xdd   :  { %4276 = vst [vmem:[#allocation61_spill] sm:$0xff] %v3098_v9  ;;  %v210_v1 = vpop.f32.mrf.mxu3 }
  0xde   :  { %v3101_v50 = vadd.f32 %v210_v1, %v3017_v33  ;;  %v2113_v16 = vpop.eup %2112 }
  0xdf   :  { %v2115_v59 = vpop.eup %2114  ;;  %vm488_vm5 = vweird.f32 %v2113_v16 }
  0xe0   :  { %4277 = vst [vmem:[#allocation62_spill] sm:$0xff] %v3101_v50  ;;  %vm503_vm6 = vweird.f32 %v2115_v59  ;;  %vm489_vm9 = vmor %vm487_vm7, %vm488_vm5 }
  0xe1   :  { %vm504_vm10 = vmor %vm502_vm8, %vm503_vm6 }
  0xe2   :  { %v183_v14 = vpop.f32.mrf.mxu2 }
  0xe3   :  { %v3124_v56 = vadd.f32 %v183_v14, %v3015_v60  ;;  %v483_v60 = vmul.f32 %v2113_v16, %v479_v61  ;;  %v498_v14 = vmul.f32 %v2115_v59, %v480_v45 }
  0xe5   :  { %4279 = vst [vmem:[#allocation64_spill] sm:$0xff] %v3124_v56  ;;  %v212_v34 = vpop.f32.mrf.mxu3  ;;  %v484_v0 = vsub.f32 1.0, %v483_v60  ;;  %v499_v5 = vsub.f32 1.0, %v498_v14  ;;  %v384_v1 = vsel %vm3045_vm3, %v3121_v3, %v3124_v56 }
  0xe6   :  { %v3131_v7 = vadd.f32 %v212_v34, %v3017_v33 }
  0xe7   :  { %v500_v46 = vmul.f32 %v2115_v59, %v499_v5  ;;  %v485_v49 = vmul.f32 %v2113_v16, %v484_v0  ;;  %v509_v0 = vor.u32 1.1754944e-38, %v508_v37 }
  0xe8   :  { %4281 = vst [vmem:[#allocation66_spill] sm:$0xff] %v3131_v7  ;;  %v385_v15 = vsel %vm3052_vm4, %v3128_v58, %v3131_v7  ;;  %v493_v58 = vand.u32 2147483648, %v479_v61 }
  0xe9   :  { %v486_v60 = vadd.f32 %v2113_v16, %v485_v49  ;;  %v501_v14 = vadd.f32 %v2115_v59, %v500_v46 }
  0xea   :  { %v443_v39 = vpop.f32.mrf.mxu2 }
  0xeb   :  { %v468_v53 = vadd.f32 %v443_v39, %v384_v1  ;;  %v490_v3 = vsel %vm489_vm9, %v2113_v16, %v486_v60  ;;  %v505_v39 = vsel %vm504_vm10, %v2115_v59, %v501_v14 }
  0xed   :  { %v463_v33 = vpop.f32.mrf.mxu3 }
  0xee   :  { %v469_v34 = vadd.f32 %v463_v33, %v385_v15  ;;  %v491_v15 = vand.u32 2147483647, %v479_v61  ;;  %v506_v33 = vand.u32 2147483647, %v480_v45 }
  0xf0   :  { %v1994_v55 = vmul.f32 -1.442695, %v469_v34  ;;  %vm492_vm11 = vcmp.eq.f32.partialorder %v491_v15, 8.507059e+37  ;;  %vm507_vm12 = vcmp.eq.f32.partialorder %v506_v33, 8.507059e+37 }
  0xf1   :  { %v510_v49 = vsel %vm507_vm12, %v509_v0, %v505_v39  ;;  %v4316_v0 = vsel %vm3052_vm4, %v3023_v54, %v3101_v50  ;;  %v3581_v54 = vld [vmem:[%s4062_s3 + $0x58] sm:$0xff]  ;;  %v3587_v50 = vld [vmem:[%s4062_s3 + $0x20] sm:$0xff] }
  0xf2   :  { %2116 = vpow2.f32 %v1994_v55  ;;  %v494_v55 = vor.u32 1.1754944e-38, %v493_v58  ;;  %v528_v34 = vmul.f32 0.0, %v510_v49 }
  0xf3   :  { %2118 = vtanh.f32 %v468_v53 }
  0xf4   :  { %v495_v53 = vsel %vm492_vm11, %v494_v55, %v490_v3 }
  0xf8   :  { %v2117_v7 = vpop.eup %2116 }
  0xf9   :  { %v481_v1 = vadd.f32 1.0, %v2117_v7  ;;  %v2119_v5 = vpop.eup %2118 }
  0xfa   :  { %v529_v46 = vmul.f32 %v2119_v5, %v495_v53 }
  0xfb   :  { %2120 = vrcp.f32 %v481_v1  ;;  %v523_v16 = vand.u32 2147483648, %v481_v1  ;;  %v521_v7 = vand.u32 2147483647, %v481_v1  ;;  %vm517_vm14 = vweird.f32 %v481_v1 }
  0xfc   :  { %v3149_v9 = vadd.f32 %v529_v46, %v528_v34 }
  0xfd   :  { %v524_v58 = vor.u32 1.1754944e-38, %v523_v16  ;;  %vm522_vm0 = vcmp.eq.f32.partialorder %v521_v7, 8.507059e+37 }
  0xfe   :  { %2122 = vtanh.f32 %v3149_v9 }
 0x101   :  { %v2121_v56 = vpop.eup %2120 }
 0x102   :  { %v513_v61 = vmul.f32 %v2121_v56, %v481_v1  ;;  %vm518_vm13 = vweird.f32 %v2121_v56 }
 0x103   :  { %vm519_vm15 = vmor %vm517_vm14, %vm518_vm13 }
 0x104   :  { %v514_v45 = vsub.f32 1.0, %v513_v61  ;;  %v2123_v3 = vpop.eup %2122 }
 0x106   :  { %v515_v59 = vmul.f32 %v2121_v56, %v514_v45 }
 0x108   :  { %v516_v37 = vadd.f32 %v2121_v56, %v515_v59 }
 0x10a   :  { %v520_v60 = vsel %vm519_vm15, %v2121_v56, %v516_v37  ;;  %v4317_v37 = vld [vmem:[#allocation61_spill] sm:$0xff] }
 0x10b   :  { %v525_v14 = vsel %vm522_vm0, %v524_v58, %v520_v60  ;;  %v4318_v58 = vsel %vm3045_vm3, %v3020_v57, %v4317_v37  ;;  %v3569_v57 = vld [vmem:[%s4062_s3 + $0x48] sm:$0xff]  ;;  %v3575_v37 = vld [vmem:[%s4062_s3 + $0x50] sm:$0xff] }
 0x10c   :  { %v3152_v15 = vmul.f32 %v2123_v3, %v525_v14 }
 0x10e   :  { %4282 = vst [vmem:[#allocation67_spill] sm:$0xff] %v3152_v15  ;;  %575 = vmatmul.f32.vlgmr.msra.gmra.mxu0 %v3152_v15  ;;  %595 = vmatmul.f32.vlgmr.msra.gmra.mxu1 %v3152_v15 }
 0x10f   :  { %615 = vmatmul.f32.vlgmr.msrb.gmra.mxu2 %v3152_v15  ;;  %635 = vmatmul.f32.vlgmr.msrb.gmra.mxu3 %v3152_v15  ;;  %v3563_v15 = vld [vmem:[%s4062_s3 + $0x40] sm:$0xff] }
 0x110   :  { %905 = vmatpush.msra.mxu0 %v2367_v10  ;;  %925 = vmatpush.msra.mxu1 %v2372_v12  ;;  %v4283_v10 = vld [vmem:[#allocation4_spill] sm:$0xff]  ;;  %v4284_v12 = vld [vmem:[#allocation7_spill] sm:$0xff] }
 0x111   :  { %945 = vmatpush.msrb.mxu2 %v2466_v29  ;;  %965 = vmatpush.msrb.mxu3 %v2450_v26  ;;  %v4295_v26 = vld [vmem:[#allocation23_spill] sm:$0xff]  ;;  %v4298_v29 = vld [vmem:[#allocation30_spill] sm:$0xff] }
 0x112   :  { %906 = vmatpush.msra.mxu0 %v2378_v13  ;;  %926 = vmatpush.msra.mxu1 %v2397_v17  ;;  %v4285_v13 = vld [vmem:[#allocation8_spill] sm:$0xff]  ;;  %4334 = vst [vmem:[#allocation30_spill] sm:$0xff] %v3563_v15 }
 0x113   :  { %946 = vmatpush.msrb.mxu2 %v2478_v31  ;;  %966 = vmatpush.msrb.mxu3 %v2461_v28  ;;  %v4286_v17 = vld [vmem:[#allocation24_spill] sm:$0xff]  ;;  %v4297_v28 = vld [vmem:[#allocation14_spill] sm:$0xff]  ;;  %v4300_v31 = vld [vmem:[#allocation15_spill] sm:$0xff] }
 0x114   :  { %907 = vmatpush.msra.mxu0 %v2402_v18  ;;  %927 = vmatpush.msra.mxu1 %v2409_v19  ;;  %v4287_v18 = vld [vmem:[#allocation21_spill] sm:$0xff]  ;;  %4336 = vst [vmem:[#allocation15_spill] sm:$0xff] %v3575_v37 }
 0x115   :  { %947 = vmatpush.msrb.mxu2 %v2550_v42  ;;  %967 = vmatpush.msrb.mxu3 %v2473_v30  ;;  %v4288_v19 = vld [vmem:[#allocation9_spill] sm:$0xff]  ;;  %v4305_v42 = vld [vmem:[#allocation18_spill] sm:$0xff] }
 0x116   :  { %908 = vmatpush.msra.mxu0 %v2414_v20  ;;  %928 = vmatpush.msra.mxu1 %v2421_v21  ;;  %v4289_v20 = vld [vmem:[#allocation10_spill] sm:$0xff]  ;;  %v4299_v30 = vld [vmem:[#allocation25_spill] sm:$0xff] }
 0x117   :  { %948 = vmatpush.msrb.mxu2 %v2562_v44  ;;  %968 = vmatpush.msrb.mxu3 %v2507_v36  ;;  %v4290_v21 = vld [vmem:[#allocation26_spill] sm:$0xff]  ;;  %v4302_v36 = vld [vmem:[#allocation31_spill] sm:$0xff]  ;;  %v4307_v44 = vld [vmem:[#allocation29_spill] sm:$0xff]  ;;  %4335 = vst [vmem:[#allocation25_spill] sm:$0xff] %v3569_v57 }
 0x118   :  { %909 = vmatpush.msra.mxu0 %v2426_v22  ;;  %929 = vmatpush.msra.mxu1 %v2433_v23  ;;  %v4291_v22 = vld [vmem:[#allocation22_spill] sm:$0xff]  ;;  %v4292_v23 = vld [vmem:[#allocation11_spill] sm:$0xff]  ;;  %4338 = vst [vmem:[#allocation31_spill] sm:$0xff] %v3587_v50 }
 0x119   :  { %949 = vmatpush.msrb.mxu2 %v2586_v48  ;;  %969 = vmatpush.msrb.mxu3 %v2545_v41  ;;  %v4304_v41 = vld [vmem:[#allocation17_spill] sm:$0xff]  ;;  %v4309_v48 = vld [vmem:[#allocation20_spill] sm:$0xff] }
 0x11a   :  { %910 = vmatpush.msra.mxu0 %v2438_v24  ;;  %930 = vmatpush.msra.mxu1 %v2445_v25  ;;  %v4293_v24 = vld [vmem:[#allocation12_spill] sm:$0xff] }
 0x11b   :  { %950 = vmatpush.msrb.mxu2 %v2610_v52  ;;  %970 = vmatpush.msrb.mxu3 %v2557_v43  ;;  %v4294_v25 = vld [vmem:[#allocation28_spill] sm:$0xff]  ;;  %v4306_v43 = vld [vmem:[#allocation33_spill] sm:$0xff] }
 0x11c   :  { %911 = vmatpush.msra.mxu0 %v2455_v27  ;;  %931 = vmatpush.msra.mxu1 %v2483_v32  ;;  %v4296_v27 = vld [vmem:[#allocation13_spill] sm:$0xff]  ;;  %v4301_v32 = vld [vmem:[#allocation16_spill] sm:$0xff] }
 0x11d   :  { %951 = vmatpush.msrb.mxu2 %v2683_v63  ;;  %971 = vmatpush.msrb.mxu3 %v2581_v47  ;;  %v4308_v47 = vld [vmem:[#allocation19_spill] sm:$0xff]  ;;  %v4311_v52 = vld [vmem:[#allocation32_spill] sm:$0xff]  ;;  %4337 = vst [vmem:[#allocation16_spill] sm:$0xff] %v3581_v54 }
 0x11e   :  { %912 = vmatpush.msra.mxu0 %v4283_v10  ;;  %932 = vmatpush.msra.mxu1 %v4239_v6  ;;  %v4313_v6 = vld [vmem:[#allocation6_spill] sm:$0xff] }
 0x11f   :  { %952 = vmatpush.msrb.mxu2 %v2697_v2  ;;  %972 = vmatpush.msrb.mxu3 %v2605_v51  ;;  %v4310_v51 = vld [vmem:[#allocation34_spill] sm:$0xff]  ;;  %v4312_v2 = vld [vmem:[#allocation41_spill] sm:$0xff] }
 0x120   :  { %913 = vmatpush.msra.mxu0 %v2521_v38  ;;  %933 = vmatpush.msra.mxu1 %v4240_v35  ;;  %v4303_v38 = vld [vmem:[#allocation27_spill] sm:$0xff]  ;;  %v4314_v35 = vld [vmem:[#allocation40_spill] sm:$0xff] }
 0x121   :  { %953 = vmatpush.msrb.mxu2 %v2710_v4  ;;  %973 = vmatpush.msrb.mxu3 %v2678_v62  ;;  %v4315_v56 = vsel %vm2941_vm2, %v4313_v6, %v4314_v35  ;;  %v3593_v6 = vld [vmem:[%s4062_s3 + $0x28] sm:$0xff]  ;;  %v3599_v35 = vld [vmem:[%s4062_s3 + $0x30] sm:$0xff] }
 0x122   :  { %914 = vmatpush.msra.mxu0 %v4284_v12  ;;  %934 = vmatpush.msra.mxu1 %v4285_v13  ;;  %4339 = vst [vmem:[#allocation27_spill] sm:$0xff] %v3593_v6 }
 0x123   :  { %954 = vmatpush.msrb.mxu2 %v4286_v17  ;;  %974 = vmatpush.msrb.mxu3 %v4287_v18  ;;  %4340 = vst [vmem:[#allocation17_spill] sm:$0xff] %v3599_v35 }
 0x124   :  { %915 = vmatpush.msra.mxu0 %v4288_v19  ;;  %935 = vmatpush.msra.mxu1 %v4289_v20 }
 0x125   :  { %955 = vmatpush.msrb.mxu2 %v4290_v21  ;;  %975 = vmatpush.msrb.mxu3 %v4291_v22 }
 0x126   :  { %916 = vmatpush.msra.mxu0 %v4292_v23  ;;  %936 = vmatpush.msra.mxu1 %v4293_v24 }
 0x127   :  { %956 = vmatpush.msrb.mxu2 %v4294_v25  ;;  %976 = vmatpush.msrb.mxu3 %v4295_v26 }
 0x128   :  { %917 = vmatpush.msra.mxu0 %v4296_v27  ;;  %937 = vmatpush.msra.mxu1 %v4297_v28 }
 0x129   :  { %957 = vmatpush.msrb.mxu2 %v4298_v29  ;;  %977 = vmatpush.msrb.mxu3 %v4299_v30 }
 0x12a   :  { %918 = vmatpush.msra.mxu0 %v4300_v31  ;;  %938 = vmatpush.msra.mxu1 %v4301_v32 }
 0x12b   :  { %958 = vmatpush.msrb.mxu2 %v4302_v36  ;;  %978 = vmatpush.msrb.mxu3 %v4303_v38 }
 0x12c   :  { %919 = vmatpush.msra.mxu0 %v4304_v41  ;;  %939 = vmatpush.msra.mxu1 %v4305_v42 }
 0x12d   :  { %959 = vmatpush.msrb.mxu2 %v4306_v43  ;;  %979 = vmatpush.msrb.mxu3 %v4307_v44 }
 0x12e   :  { %920 = vmatpush.msra.mxu0 %v4308_v47  ;;  %940 = vmatpush.msra.mxu1 %v4309_v48 }
 0x12f   :  { %960 = vmatpush.msrb.mxu2 %v4310_v51  ;;  %980 = vmatpush.msrb.mxu3 %v4311_v52 }
 0x18b   :  { %v576_v62 = vpop.f32.mrf.mxu0  ;;  %v596_v63 = vpop.f32.mrf.mxu1 }
 0x18c   :  { %v639_v4 = vadd.f32 %v576_v62, %v4312_v2  ;;  %v640_v33 = vadd.f32 %v596_v63, %v4315_v56 }
 0x18e   :  { %v1995_v39 = vmul.f32 -1.442695, %v639_v4  ;;  %v1996_v1 = vmul.f32 -1.442695, %v640_v33  ;;  %v3257_v33 = vld [vmem:[%s4062_s3 + $0x1e8] sm:$0xff] }
 0x190   :  { %2124 = vpow2.f32 %v1995_v39  ;;  %v3263_v39 = vld [vmem:[%s4062_s3 + $0x1f0] sm:$0xff] }
 0x191   :  { %2126 = vpow2.f32 %v1996_v1  ;;  %v3269_v1 = vld [vmem:[%s4062_s3 + $0x1f8] sm:$0xff] }
 0x192   :  { %v636_v5 = vpop.f32.mrf.mxu3  ;;  %v616_v45 = vpop.f32.mrf.mxu2 }
 0x193   :  { %v642_v55 = vadd.f32 %v636_v5, %v4316_v0  ;;  %v641_v60 = vadd.f32 %v616_v45, %v4318_v58  ;;  %v3275_v5 = vld [vmem:[%s4062_s3 + $0x1c0] sm:$0xff]  ;;  %v3281_v0 = vld [vmem:[%s4062_s3 + $0x1c8] sm:$0xff] }
 0x194   :  { %v3323_v45 = vld [vmem:[%s4062_s3 + $0x180] sm:$0xff] }
 0x195   :  { %v1997_v53 = vmul.f32 -1.442695, %v642_v55  ;;  %v3287_v55 = vld [vmem:[%s4062_s3 + $0x1d0] sm:$0xff]  ;;  %v3347_v58 = vld [vmem:[%s4062_s3 + $0x160] sm:$0xff] }
 0x196   :  { %v2125_v49 = vpop.eup %2124 }
 0x197   :  { %v2127_v46 = vpop.eup %2126  ;;  %v652_v34 = vadd.f32 1.0, %v2125_v49  ;;  %2128 = vpow2.f32 %v1997_v53  ;;  %v3293_v53 = vld [vmem:[%s4062_s3 + $0x1d8] sm:$0xff]  ;;  %v3299_v49 = vld [vmem:[%s4062_s3 + $0x1a0] sm:$0xff] }
 0x198   :  { %v653_v61 = vadd.f32 1.0, %v2127_v46  ;;  %v3305_v46 = vld [vmem:[%s4062_s3 + $0x1a8] sm:$0xff] }
 0x199   :  { %2130 = vrcp.f32 %v652_v34  ;;  %v666_v17 = vand.u32 2147483648, %v652_v34  ;;  %v664_v20 = vand.u32 2147483647, %v652_v34  ;;  %vm660_vm6 = vweird.f32 %v652_v34 }
 0x19a   :  { %2132 = vrcp.f32 %v653_v61  ;;  %v681_v18 = vand.u32 2147483648, %v653_v61  ;;  %v679_v22 = vand.u32 2147483647, %v653_v61  ;;  %vm675_vm7 = vweird.f32 %v653_v61 }
 0x19b   :  { %v667_v25 = vor.u32 1.1754944e-38, %v666_v17  ;;  %vm665_vm10 = vcmp.eq.f32.partialorder %v664_v20, 8.507059e+37  ;;  %v3389_v17 = vld [vmem:[%s4062_s3 + $0x158] sm:$0xff]  ;;  %v3407_v20 = vld [vmem:[%s4062_s3 + $0x130] sm:$0xff] }
 0x19c   :  { %v682_v28 = vor.u32 1.1754944e-38, %v681_v18  ;;  %vm680_vm11 = vcmp.eq.f32.partialorder %v679_v22, 8.507059e+37  ;;  %v3395_v18 = vld [vmem:[%s4062_s3 + $0x120] sm:$0xff] }
 0x19d   :  { %v2129_v16 = vpop.eup %2128  ;;  %v3419_v22 = vld [vmem:[%s4062_s3 + $0x100] sm:$0xff] }
 0x19e   :  { %v654_v59 = vadd.f32 1.0, %v2129_v16  ;;  %v3329_v16 = vld [vmem:[%s4062_s3 + $0x188] sm:$0xff] }
 0x19f   :  { %v2131_v7 = vpop.eup %2130 }
 0x1a0   :  { %v2133_v3 = vpop.eup %2132  ;;  %v656_v14 = vmul.f32 %v2131_v7, %v652_v34  ;;  %2134 = vrcp.f32 %v654_v59  ;;  %vm661_vm1 = vweird.f32 %v2131_v7  ;;  %v696_v48 = vand.u32 2147483648, %v654_v59  ;;  %v3311_v34 = vld [vmem:[%s4062_s3 + $0x1b0] sm:$0xff] }
 0x1a1   :  { %v671_v10 = vmul.f32 %v2133_v3, %v653_v61  ;;  %2136 = vtanh.f32 %v641_v60  ;;  %vm676_vm5 = vweird.f32 %v2133_v3  ;;  %vm662_vm8 = vmor %vm660_vm6, %vm661_vm1  ;;  %vm690_vm13 = vweird.f32 %v654_v59  ;;  %v3317_v61 = vld [vmem:[%s4062_s3 + $0x1b8] sm:$0xff]  ;;  %v3353_v60 = vld [vmem:[%s4062_s3 + $0x168] sm:$0xff] }
 0x1a2   :  { %v657_v12 = vsub.f32 1.0, %v656_v14  ;;  %vm677_vm9 = vmor %vm675_vm7, %vm676_vm5  ;;  %v694_v52 = vand.u32 2147483647, %v654_v59  ;;  %v697_v63 = vor.u32 1.1754944e-38, %v696_v48  ;;  %v3365_v14 = vld [vmem:[%s4062_s3 + $0x178] sm:$0xff]  ;;  %v3521_v48 = vld [vmem:[%s4062_s3 + $0x88] sm:$0xff] }
 0x1a3   :  { %v672_v13 = vsub.f32 1.0, %v671_v10  ;;  %v3371_v10 = vld [vmem:[%s4062_s3 + $0x140] sm:$0xff]  ;;  %4327 = vst [vmem:[#allocation22_spill] sm:$0xff] %v3521_v48 }
 0x1a4   :  { %v658_v19 = vmul.f32 %v2131_v7, %v657_v12  ;;  %vm695_vm15 = vcmp.eq.f32.partialorder %v694_v52, 8.507059e+37  ;;  %v3377_v12 = vld [vmem:[%s4062_s3 + $0x148] sm:$0xff]  ;;  %v3527_v52 = vld [vmem:[%s4062_s3 + $0x90] sm:$0xff] }
 0x1a5   :  { %v673_v21 = vmul.f32 %v2133_v3, %v672_v13  ;;  %v3383_v13 = vld [vmem:[%s4062_s3 + $0x150] sm:$0xff]  ;;  %4328 = vst [vmem:[#allocation11_spill] sm:$0xff] %v3527_v52 }
 0x1a6   :  { %v2135_v23 = vpop.eup %2134  ;;  %v659_v24 = vadd.f32 %v2131_v7, %v658_v19  ;;  %v3401_v19 = vld [vmem:[%s4062_s3 + $0x128] sm:$0xff] }
 0x1a7   :  { %v674_v26 = vadd.f32 %v2133_v3, %v673_v21  ;;  %v686_v27 = vmul.f32 %v2135_v23, %v654_v59  ;;  %v2137_v30 = vpop.eup %2136  ;;  %vm691_vm12 = vweird.f32 %v2135_v23  ;;  %v3335_v59 = vld [vmem:[%s4062_s3 + $0x190] sm:$0xff]  ;;  %v3413_v21 = vld [vmem:[%s4062_s3 + $0x138] sm:$0xff] }
 0x1a8   :  { %v663_v29 = vsel %vm662_vm8, %v2131_v7, %v659_v24  ;;  %vm692_vm14 = vmor %vm690_vm13, %vm691_vm12  ;;  %v3341_v7 = vld [vmem:[%s4062_s3 + $0x198] sm:$0xff]  ;;  %v3431_v24 = vld [vmem:[%s4062_s3 + $0x110] sm:$0xff] }
 0x1a9   :  { %v668_v31 = vsel %vm665_vm10, %v667_v25, %v663_v29  ;;  %v678_v32 = vsel %vm677_vm9, %v2133_v3, %v674_v26  ;;  %v687_v36 = vsub.f32 1.0, %v686_v27  ;;  %v3359_v3 = vld [vmem:[%s4062_s3 + $0x170] sm:$0xff]  ;;  %v3437_v25 = vld [vmem:[%s4062_s3 + $0x118] sm:$0xff]  ;;  %v3443_v26 = vld [vmem:[%s4062_s3 + $0xe0] sm:$0xff] }
 0x1aa   :  { %v683_v38 = vsel %vm680_vm11, %v682_v28, %v678_v32  ;;  %v702_v41 = vmul.f32 %v2137_v30, %v668_v31  ;;  %v3449_v27 = vld [vmem:[%s4062_s3 + $0xe8] sm:$0xff]  ;;  %v3455_v28 = vld [vmem:[%s4062_s3 + $0xf0] sm:$0xff]  ;;  %v3461_v29 = vld [vmem:[%s4062_s3 + $0xf8] sm:$0xff] }
 0x1ab   :  { %v701_v42 = vmul.f32 %v683_v38, %v3149_v9  ;;  %v688_v43 = vmul.f32 %v2135_v23, %v687_v36  ;;  %v3251_v9 = vld [vmem:[%s4062_s3 + $0x1e0] sm:$0xff]  ;;  %v3473_v31 = vld [vmem:[%s4062_s3 + $0xc8] sm:$0xff]  ;;  %v3479_v32 = vld [vmem:[%s4062_s3 + $0xd0] sm:$0xff] }
 0x1ac   :  { %v3467_v30 = vld [vmem:[%s4062_s3 + $0xc0] sm:$0xff]  ;;  %4320 = vst [vmem:[#allocation7_spill] sm:$0xff] %v3479_v32  ;;  %v3485_v36 = vld [vmem:[%s4062_s3 + $0xd8] sm:$0xff] }
 0x1ad   :  { %v3239_v44 = vadd.f32 %v702_v41, %v701_v42  ;;  %v689_v47 = vadd.f32 %v2135_v23, %v688_v43  ;;  %4321 = vst [vmem:[#allocation8_spill] sm:$0xff] %v3485_v36  ;;  %v3491_v38 = vld [vmem:[%s4062_s3 + $0xa0] sm:$0xff]  ;;  %v3497_v41 = vld [vmem:[%s4062_s3 + $0xa8] sm:$0xff]  ;;  %v3503_v42 = vld [vmem:[%s4062_s3 + $0xb0] sm:$0xff] }
 0x1ae   :  { %4322 = vst [vmem:[#allocation24_spill] sm:$0xff] %v3491_v38  ;;  %v3509_v43 = vld [vmem:[%s4062_s3 + $0xb8] sm:$0xff] }
 0x1af   :  { %2138 = vtanh.f32 %v3239_v44  ;;  %v693_v62 = vsel %vm692_vm14, %v2135_v23, %v689_v47  ;;  %v3425_v23 = vld [vmem:[%s4062_s3 + $0x108] sm:$0xff]  ;;  %4323 = vst [vmem:[#allocation21_spill] sm:$0xff] %v3497_v41  ;;  %v3515_v47 = vld [vmem:[%s4062_s3 + $0x80] sm:$0xff] }
 0x1b0   :  { %v698_v4 = vsel %vm695_vm15, %v697_v63, %v693_v62  ;;  %4324 = vst [vmem:[#allocation9_spill] sm:$0xff] %v3503_v42  ;;  %v3533_v62 = vld [vmem:[%s4062_s3 + $0x98] sm:$0xff]  ;;  %v3539_v63 = vld [vmem:[%s4062_s3 + $0x60] sm:$0xff] }
 0x1b1   :  { %4325 = vst [vmem:[#allocation10_spill] sm:$0xff] %v3509_v43 }
 0x1b2   :  { %4326 = vst [vmem:[#allocation26_spill] sm:$0xff] %v3515_v47 }
 0x1b3   :  { %4329 = vst [vmem:[#allocation12_spill] sm:$0xff] %v3533_v62 }
 0x1b4   :  { %4330 = vst [vmem:[#allocation28_spill] sm:$0xff] %v3539_v63 }
 0x1b5   :  { %v2139_v2 = vpop.eup %2138 }
 0x1b6   :  { %v3242_v56 = vmul.f32 %v2139_v2, %v698_v4  ;;  %v3545_v2 = vld [vmem:[%s4062_s3 + $0x68] sm:$0xff]  ;;  %v3551_v4 = vld [vmem:[%s4062_s3 + $0x70] sm:$0xff] }
 0x1b7   :  { %4331 = vst [vmem:[#allocation23_spill] sm:$0xff] %v3545_v2 }
 0x1b8   :  { %4319 = vst [vmem:[#allocation4_spill] sm:$0xff] %v3242_v56  ;;  %748 = vmatmul.f32.vlgmr.msrb.gmra.mxu0 %v3242_v56  ;;  %768 = vmatmul.f32.vlgmr.msrb.gmra.mxu1 %v3242_v56 }
 0x1b9   :  { %788 = vmatmul.f32.vlgmr.msra.gmra.mxu2 %v3242_v56  ;;  %808 = vmatmul.f32.vlgmr.msra.gmra.mxu3 %v3242_v56  ;;  %4332 = vst [vmem:[#allocation13_spill] sm:$0xff] %v3551_v4  ;;  %v3557_v56 = vld [vmem:[%s4062_s3 + $0x78] sm:$0xff] }
 0x1ba   :  { %1072 = vmatpush.msrb.mxu0 %v3251_v9  ;;  %1092 = vmatpush.msrb.mxu1 %v3257_v33  ;;  %4333 = vst [vmem:[#allocation14_spill] sm:$0xff] %v3557_v56 }
 0x1bb   :  { %1112 = vmatpush.msra.mxu2 %v3263_v39  ;;  %1132 = vmatpush.msra.mxu3 %v3269_v1 }
 0x1bc   :  { %1073 = vmatpush.msrb.mxu0 %v3275_v5  ;;  %1093 = vmatpush.msrb.mxu1 %v3281_v0 }
 0x1bd   :  { %1113 = vmatpush.msra.mxu2 %v3287_v55  ;;  %1133 = vmatpush.msra.mxu3 %v3293_v53 }
 0x1be   :  { %1074 = vmatpush.msrb.mxu0 %v3299_v49  ;;  %1094 = vmatpush.msrb.mxu1 %v3305_v46 }
 0x1bf   :  { %1114 = vmatpush.msra.mxu2 %v3311_v34  ;;  %1134 = vmatpush.msra.mxu3 %v3317_v61 }
 0x1c0   :  { %1075 = vmatpush.msrb.mxu0 %v3323_v45  ;;  %1095 = vmatpush.msrb.mxu1 %v3329_v16 }
 0x1c1   :  { %1115 = vmatpush.msra.mxu2 %v3335_v59  ;;  %1135 = vmatpush.msra.mxu3 %v3341_v7 }
 0x1c2   :  { %1076 = vmatpush.msrb.mxu0 %v3347_v58  ;;  %1096 = vmatpush.msrb.mxu1 %v3353_v60 }
 0x1c3   :  { %1116 = vmatpush.msra.mxu2 %v3359_v3  ;;  %1136 = vmatpush.msra.mxu3 %v3365_v14 }
 0x1c4   :  { %1077 = vmatpush.msrb.mxu0 %v3371_v10  ;;  %1097 = vmatpush.msrb.mxu1 %v3377_v12 }
 0x1c5   :  { %1117 = vmatpush.msra.mxu2 %v3383_v13  ;;  %1137 = vmatpush.msra.mxu3 %v3389_v17 }
 0x1c6   :  { %1078 = vmatpush.msrb.mxu0 %v3395_v18  ;;  %1098 = vmatpush.msrb.mxu1 %v3401_v19 }
 0x1c7   :  { %1118 = vmatpush.msra.mxu2 %v3407_v20  ;;  %1138 = vmatpush.msra.mxu3 %v3413_v21 }
 0x1c8   :  { %1079 = vmatpush.msrb.mxu0 %v3419_v22  ;;  %1099 = vmatpush.msrb.mxu1 %v3425_v23 }
 0x1c9   :  { %1119 = vmatpush.msra.mxu2 %v3431_v24  ;;  %1139 = vmatpush.msra.mxu3 %v3437_v25 }
 0x1ca   :  { %1080 = vmatpush.msrb.mxu0 %v3443_v26  ;;  %1100 = vmatpush.msrb.mxu1 %v3449_v27 }
 0x1cb   :  { %1120 = vmatpush.msra.mxu2 %v3455_v28  ;;  %1140 = vmatpush.msra.mxu3 %v3461_v29 }
 0x1cc   :  { %1081 = vmatpush.msrb.mxu0 %v3467_v30  ;;  %1101 = vmatpush.msrb.mxu1 %v3473_v31 }
 0x1cd   :  { %1121 = vmatpush.msra.mxu2 %v3479_v32  ;;  %1141 = vmatpush.msra.mxu3 %v3485_v36 }
 0x1ce   :  { %1082 = vmatpush.msrb.mxu0 %v3491_v38  ;;  %1102 = vmatpush.msrb.mxu1 %v3497_v41 }
 0x1cf   :  { %1122 = vmatpush.msra.mxu2 %v3503_v42  ;;  %1142 = vmatpush.msra.mxu3 %v3509_v43 }
 0x1d0   :  { %1083 = vmatpush.msrb.mxu0 %v3515_v47  ;;  %1103 = vmatpush.msrb.mxu1 %v3521_v48 }
 0x1d1   :  { %1123 = vmatpush.msra.mxu2 %v3527_v52  ;;  %1143 = vmatpush.msra.mxu3 %v3533_v62  ;;  %v4349_v62 = vld [vmem:[#allocation52_spill] sm:$0xff] }
 0x1d2   :  { %1084 = vmatpush.msrb.mxu0 %v3539_v63  ;;  %1104 = vmatpush.msrb.mxu1 %v3545_v2  ;;  %v4350_v52 = vld [vmem:[#allocation60_spill] sm:$0xff] }
 0x1d3   :  { %1124 = vmatpush.msra.mxu2 %v3551_v4  ;;  %1144 = vmatpush.msra.mxu3 %v3557_v56  ;;  %v4347_v56 = vld [vmem:[#allocation35_spill] sm:$0xff] }
 0x1d4   :  { %1085 = vmatpush.msrb.mxu0 %v3563_v15  ;;  %1105 = vmatpush.msrb.mxu1 %v3569_v57  ;;  %v4345_v57 = vld [vmem:[#allocation38_spill] sm:$0xff]  ;;  %v4346_v15 = vld [vmem:[#allocation37_spill] sm:$0xff] }
 0x1d5   :  { %1125 = vmatpush.msra.mxu2 %v3575_v37  ;;  %1145 = vmatpush.msra.mxu3 %v3581_v54  ;;  %v3605_v54 = vld [vmem:[%s4062_s3 + $0x38] sm:$0xff]  ;;  %v4348_v4 = vsel %vm2941_vm2, %v4346_v15, %v4347_v56 }
 0x1d6   :  { %1086 = vmatpush.msrb.mxu0 %v3587_v50  ;;  %1106 = vmatpush.msrb.mxu1 %v3593_v6  ;;  %4341 = vst [vmem:[#allocation18_spill] sm:$0xff] %v3605_v54  ;;  %v3611_v50 = vld [vmem:[%s4062_s3] sm:$0xff]  ;;  %v3617_v6 = vld [vmem:[%s4062_s3 + $0x8] sm:$0xff] }
 0x1d7   :  { %1126 = vmatpush.msra.mxu2 %v3599_v35  ;;  %1146 = vmatpush.msra.mxu3 %v3605_v54  ;;  %4342 = vst [vmem:[#allocation33_spill] sm:$0xff] %v3611_v50  ;;  %v3624_v54 = vld [vmem:[%s4062_s3 + $0x18] sm:$0xff] }
 0x1d8   :  { %1087 = vmatpush.msrb.mxu0 %v3611_v50  ;;  %4343 = vst [vmem:[#allocation29_spill] sm:$0xff] %v3617_v6  ;;  %1107 = vmatpush.msrb.mxu1 %v3617_v6 }
 0x1d9   :  { %1127 = vmatpush.msra.mxu2 %v4310_v51  ;;  %4344 = vst [vmem:[#allocation19_spill] sm:$0xff] %v3624_v54  ;;  %1147 = vmatpush.msra.mxu3 %v3624_v54  ;;  %v4351_v54 = vsel %vm3052_vm4, %v4349_v62, %v4350_v52 }
 0x235   :  { %v749_v35 = vpop.f32.mrf.mxu0  ;;  %v769_v37 = vpop.f32.mrf.mxu1 }
 0x236   :  { %v812_v50 = vadd.f32 %v749_v35, %v4345_v57  ;;  %v813_v2 = vadd.f32 %v769_v37, %v4348_v4  ;;  %v4353_v4 = vld [vmem:[#allocation59_spill] sm:$0xff] }
 0x238   :  { %v1998_v6 = vmul.f32 -1.442695, %v812_v50  ;;  %v1999_v63 = vmul.f32 -1.442695, %v813_v2 }
 0x23a   :  { %2140 = vpow2.f32 %v1998_v6 }
 0x23b   :  { %2142 = vpow2.f32 %v1999_v63  ;;  %v4352_v63 = vld [vmem:[#allocation51_spill] sm:$0xff] }
 0x23c   :  { %v809_v51 = vpop.f32.mrf.mxu3  ;;  %v789_v37 = vpop.f32.mrf.mxu2  ;;  %v4354_v15 = vsel %vm3045_vm3, %v4352_v63, %v4353_v4 }
 0x23d   :  { %v815_v48 = vadd.f32 %v809_v51, %v4351_v54  ;;  %v814_v56 = vadd.f32 %v789_v37, %v4354_v15 }
 0x23f   :  { %v2000_v47 = vmul.f32 -1.442695, %v815_v48 }
 0x240   :  { %v2141_v43 = vpop.eup %2140 }
 0x241   :  { %v2143_v57 = vpop.eup %2142  ;;  %v825_v35 = vadd.f32 1.0, %v2141_v43  ;;  %2144 = vpow2.f32 %v2000_v47 }
 0x242   :  { %v826_v8 = vadd.f32 1.0, %v2143_v57 }
 0x243   :  { %2146 = vrcp.f32 %v825_v35  ;;  %v839_v47 = vand.u32 2147483648, %v825_v35  ;;  %v837_v11 = vand.u32 2147483647, %v825_v35  ;;  %vm833_vm5 = vweird.f32 %v825_v35 }
 0x244   :  { %2148 = vrcp.f32 %v826_v8  ;;  %v854_v57 = vand.u32 2147483648, %v826_v8  ;;  %v852_v42 = vand.u32 2147483647, %v826_v8  ;;  %vm848_vm6 = vweird.f32 %v826_v8 }
 0x245   :  { %v840_v15 = vor.u32 1.1754944e-38, %v839_v47  ;;  %vm838_vm9 = vcmp.eq.f32.partialorder %v837_v11, 8.507059e+37 }
 0x246   :  { %vm853_vm10 = vcmp.eq.f32.partialorder %v852_v42, 8.507059e+37 }
 0x247   :  { %v2145_v50 = vpop.eup %2144 }
 0x248   :  { %v827_v2 = vadd.f32 1.0, %v2145_v50 }
 0x249   :  { %v2147_v6 = vpop.eup %2146 }
 0x24a   :  { %v2149_v62 = vpop.eup %2148  ;;  %v829_v54 = vmul.f32 %v2147_v6, %v825_v35  ;;  %2150 = vrcp.f32 %v827_v2  ;;  %vm834_vm0 = vweird.f32 %v2147_v6  ;;  %v869_v47 = vand.u32 2147483648, %v827_v2 }
 0x24b   :  { %v844_v48 = vmul.f32 %v2149_v62, %v826_v8  ;;  %2152 = vtanh.f32 %v814_v56  ;;  %vm849_vm1 = vweird.f32 %v2149_v62  ;;  %vm835_vm7 = vmor %vm833_vm5, %vm834_vm0  ;;  %vm863_vm12 = vweird.f32 %v827_v2 }
 0x24c   :  { %v830_v51 = vsub.f32 1.0, %v829_v54  ;;  %vm850_vm8 = vmor %vm848_vm6, %vm849_vm1  ;;  %v855_v54 = vor.u32 1.1754944e-38, %v854_v57  ;;  %v4363_v57 = vld [vmem:[#allocation22_spill] sm:$0xff] }
 0x24d   :  { %v845_v43 = vsub.f32 1.0, %v844_v48 }
 0x24e   :  { %v831_v52 = vmul.f32 %v2147_v6, %v830_v51 }
 0x24f   :  { %v846_v50 = vmul.f32 %v2149_v62, %v845_v43 }
 0x250   :  { %v2151_v40 = vpop.eup %2150  ;;  %v832_v41 = vadd.f32 %v2147_v6, %v831_v52 }
 0x251   :  { %v847_v37 = vadd.f32 %v2149_v62, %v846_v50  ;;  %v859_v63 = vmul.f32 %v2151_v40, %v827_v2  ;;  %v2153_v56 = vpop.eup %2152  ;;  %vm864_vm11 = vweird.f32 %v2151_v40  ;;  %v4364_v50 = vld [vmem:[#allocation11_spill] sm:$0xff] }
 0x252   :  { %v836_v48 = vsel %vm835_vm7, %v2147_v6, %v832_v41  ;;  %v867_v41 = vand.u32 2147483647, %v827_v2  ;;  %vm865_vm13 = vmor %vm863_vm12, %vm864_vm11  ;;  %v870_v6 = vor.u32 1.1754944e-38, %v869_v47  ;;  %v4361_v2 = vld [vmem:[#allocation10_spill] sm:$0xff]  ;;  %v4374_v47 = vld [vmem:[#allocation31_spill] sm:$0xff] }
 0x253   :  { %v841_v4 = vsel %vm838_vm9, %v840_v15, %v836_v48  ;;  %v851_v51 = vsel %vm850_vm8, %v2149_v62, %v847_v37  ;;  %v860_v38 = vsub.f32 1.0, %v859_v63  ;;  %v4365_v15 = vld [vmem:[#allocation12_spill] sm:$0xff]  ;;  %v4368_v48 = vld [vmem:[#allocation13_spill] sm:$0xff] }
 0x254   :  { %v856_v43 = vsel %vm853_vm10, %v855_v54, %v851_v51  ;;  %v875_v36 = vmul.f32 %v2153_v56, %v841_v4  ;;  %vm868_vm14 = vcmp.eq.f32.partialorder %v867_v41, 8.507059e+37  ;;  %v4362_v4 = vld [vmem:[#allocation26_spill] sm:$0xff]  ;;  %v4366_v37 = vld [vmem:[#allocation28_spill] sm:$0xff]  ;;  %v4367_v54 = vld [vmem:[#allocation23_spill] sm:$0xff] }
 0x255   :  { %v874_v32 = vmul.f32 %v856_v43, %v3239_v44  ;;  %v861_v52 = vmul.f32 %v2151_v40, %v860_v38  ;;  %v4357_v44 = vld [vmem:[#allocation8_spill] sm:$0xff]  ;;  %v4360_v38 = vld [vmem:[#allocation9_spill] sm:$0xff]  ;;  %v4369_v56 = vld [vmem:[#allocation14_spill] sm:$0xff] }
 0x256   :  { %v4370_v51 = vld [vmem:[#allocation30_spill] sm:$0xff]  ;;  %v4371_v43 = vld [vmem:[#allocation25_spill] sm:$0xff]  ;;  %v4375_v41 = vld [vmem:[#allocation27_spill] sm:$0xff] }
 0x257   :  { %v3644_v35 = vadd.f32 %v875_v36, %v874_v32  ;;  %v862_v8 = vadd.f32 %v2151_v40, %v861_v52  ;;  %v4358_v32 = vld [vmem:[#allocation24_spill] sm:$0xff]  ;;  %v4359_v36 = vld [vmem:[#allocation21_spill] sm:$0xff]  ;;  %v4372_v52 = vld [vmem:[#allocation15_spill] sm:$0xff] }
 0x259   :  { %2154 = vtanh.f32 %v3644_v35  ;;  %v866_v11 = vsel %vm865_vm13, %v2151_v40, %v862_v8  ;;  %v4356_v40 = vld [vmem:[#allocation7_spill] sm:$0xff]  ;;  %v4373_v8 = vld [vmem:[#allocation16_spill] sm:$0xff] }
 0x25a   :  { %v871_v62 = vsel %vm868_vm14, %v870_v6, %v866_v11  ;;  %v4376_v11 = vld [vmem:[#allocation17_spill] sm:$0xff]  ;;  %v4377_v6 = vld [vmem:[#allocation18_spill] sm:$0xff] }
 0x25f   :  { %v2155_v42 = vpop.eup %2154 }
 0x260   :  { %v3647_v63 = vmul.f32 %v2155_v42, %v871_v62  ;;  %v4378_v42 = vld [vmem:[#allocation33_spill] sm:$0xff] }
 0x261   :  { %v4379_v62 = vld [vmem:[#allocation29_spill] sm:$0xff] }
 0x262   :  { %4355 = vst [vmem:[#allocation20_spill] sm:$0xff] %v3647_v63  ;;  %921 = vmatmul.f32.vlgmr.msra.gmra.mxu0 %v3647_v63  ;;  %941 = vmatmul.f32.vlgmr.msra.gmra.mxu1 %v3647_v63 }
 0x263   :  { %961 = vmatmul.f32.vlgmr.msrb.gmra.mxu2 %v3647_v63  ;;  %981 = vmatmul.f32.vlgmr.msrb.gmra.mxu3 %v3647_v63  ;;  %v3718_v63 = vld [vmem:[%s4062_s3 + $0x10] sm:$0xff] }
 0x264   :  { %1233 = vmatpush.msra.mxu0 %v3251_v9  ;;  %1253 = vmatpush.msra.mxu1 %v3257_v33  ;;  %4380 = vst [vmem:[#allocation34_spill] sm:$0xff] %v3718_v63 }
 0x265   :  { %1273 = vmatpush.msrb.mxu2 %v3263_v39  ;;  %1293 = vmatpush.msrb.mxu3 %v3269_v1 }
 0x266   :  { %1234 = vmatpush.msra.mxu0 %v3275_v5  ;;  %1254 = vmatpush.msra.mxu1 %v3281_v0 }
 0x267   :  { %1274 = vmatpush.msrb.mxu2 %v3287_v55  ;;  %1294 = vmatpush.msrb.mxu3 %v3293_v53 }
 0x268   :  { %1235 = vmatpush.msra.mxu0 %v3299_v49  ;;  %1255 = vmatpush.msra.mxu1 %v3305_v46 }
 0x269   :  { %1275 = vmatpush.msrb.mxu2 %v3311_v34  ;;  %1295 = vmatpush.msrb.mxu3 %v3317_v61 }
 0x26a   :  { %1236 = vmatpush.msra.mxu0 %v3323_v45  ;;  %1256 = vmatpush.msra.mxu1 %v3329_v16 }
 0x26b   :  { %1276 = vmatpush.msrb.mxu2 %v3335_v59  ;;  %1296 = vmatpush.msrb.mxu3 %v3341_v7 }
 0x26c   :  { %1237 = vmatpush.msra.mxu0 %v3347_v58  ;;  %1257 = vmatpush.msra.mxu1 %v3353_v60 }
 0x26d   :  { %1277 = vmatpush.msrb.mxu2 %v3359_v3  ;;  %1297 = vmatpush.msrb.mxu3 %v3365_v14 }
 0x26e   :  { %1238 = vmatpush.msra.mxu0 %v3371_v10  ;;  %1258 = vmatpush.msra.mxu1 %v3377_v12 }
 0x26f   :  { %1278 = vmatpush.msrb.mxu2 %v3383_v13  ;;  %1298 = vmatpush.msrb.mxu3 %v3389_v17 }
 0x270   :  { %1239 = vmatpush.msra.mxu0 %v3395_v18  ;;  %1259 = vmatpush.msra.mxu1 %v3401_v19 }
 0x271   :  { %1279 = vmatpush.msrb.mxu2 %v3407_v20  ;;  %1299 = vmatpush.msrb.mxu3 %v3413_v21 }
 0x272   :  { %1240 = vmatpush.msra.mxu0 %v3419_v22  ;;  %1260 = vmatpush.msra.mxu1 %v3425_v23 }
 0x273   :  { %1280 = vmatpush.msrb.mxu2 %v3431_v24  ;;  %1300 = vmatpush.msrb.mxu3 %v3437_v25 }
 0x274   :  { %1241 = vmatpush.msra.mxu0 %v3443_v26  ;;  %1261 = vmatpush.msra.mxu1 %v3449_v27 }
 0x275   :  { %1281 = vmatpush.msrb.mxu2 %v3455_v28  ;;  %1301 = vmatpush.msrb.mxu3 %v3461_v29 }
 0x276   :  { %1242 = vmatpush.msra.mxu0 %v3467_v30  ;;  %1262 = vmatpush.msra.mxu1 %v3473_v31 }
 0x277   :  { %1282 = vmatpush.msrb.mxu2 %v4356_v40  ;;  %1302 = vmatpush.msrb.mxu3 %v4357_v44 }
 0x278   :  { %1243 = vmatpush.msra.mxu0 %v4358_v32  ;;  %1263 = vmatpush.msra.mxu1 %v4359_v36 }
 0x279   :  { %1283 = vmatpush.msrb.mxu2 %v4360_v38  ;;  %1303 = vmatpush.msrb.mxu3 %v4361_v2 }
 0x27a   :  { %1244 = vmatpush.msra.mxu0 %v4362_v4  ;;  %1264 = vmatpush.msra.mxu1 %v4363_v57 }
 0x27b   :  { %1284 = vmatpush.msrb.mxu2 %v4364_v50  ;;  %1304 = vmatpush.msrb.mxu3 %v4365_v15  ;;  %v4389_v15 = vld [vmem:[#allocation58_spill] sm:$0xff] }
 0x27c   :  { %1245 = vmatpush.msra.mxu0 %v4366_v37  ;;  %1265 = vmatpush.msra.mxu1 %v4367_v54  ;;  %v4393_v37 = vld [vmem:[#allocation56_spill] sm:$0xff] }
 0x27d   :  { %1285 = vmatpush.msrb.mxu2 %v4368_v48  ;;  %1305 = vmatpush.msrb.mxu3 %v4369_v56 }
 0x27e   :  { %1246 = vmatpush.msra.mxu0 %v4370_v51  ;;  %1266 = vmatpush.msra.mxu1 %v4371_v43  ;;  %v4385_v51 = vld [vmem:[#allocation5_spill] sm:$0xff] }
 0x27f   :  { %1286 = vmatpush.msrb.mxu2 %v4372_v52  ;;  %1306 = vmatpush.msrb.mxu3 %v4373_v8  ;;  %v4381_v8 = vld [vmem:[#allocation19_spill] sm:$0xff] }
 0x280   :  { %1247 = vmatpush.msra.mxu0 %v4374_v47  ;;  %1267 = vmatpush.msra.mxu1 %v4375_v41  ;;  %v4382_v41 = vld [vmem:[#allocation44_spill] sm:$0xff] }
 0x281   :  { %1287 = vmatpush.msrb.mxu2 %v4376_v11  ;;  %1307 = vmatpush.msrb.mxu3 %v4377_v6  ;;  %v4384_v6 = vld [vmem:[#allocation43_spill] sm:$0xff] }
 0x282   :  { %1248 = vmatpush.msra.mxu0 %v4378_v42  ;;  %1268 = vmatpush.msra.mxu1 %v4379_v62  ;;  %v4386_v42 = vsel %vm2941_vm2, %v4384_v6, %v4385_v51 }
 0x283   :  { %1288 = vmatpush.msrb.mxu2 %v3718_v63  ;;  %1308 = vmatpush.msrb.mxu3 %v4381_v8  ;;  %v4388_v63 = vld [vmem:[#allocation54_spill] sm:$0xff] }
 0x284   :  { %v4390_v8 = vsel %vm3052_vm4, %v4388_v63, %v4389_v15 }
 0x2df   :  { %v922_v47 = vpop.f32.mrf.mxu0  ;;  %v942_v52 = vpop.f32.mrf.mxu1 }
 0x2e0   :  { %v985_v43 = vadd.f32 %v922_v47, %v4382_v41  ;;  %v986_v56 = vadd.f32 %v942_v52, %v4386_v42 }
 0x2e2   :  { %v2001_v62 = vmul.f32 -1.442695, %v985_v43  ;;  %v2002_v48 = vmul.f32 -1.442695, %v986_v56 }
 0x2e4   :  { %2156 = vpow2.f32 %v2001_v62  ;;  %v4392_v62 = vld [vmem:[#allocation53_spill] sm:$0xff] }
 0x2e5   :  { %2158 = vpow2.f32 %v2002_v48  ;;  %v4394_v6 = vsel %vm3045_vm3, %v4392_v62, %v4393_v37 }
 0x2e6   :  { %v982_v54 = vpop.f32.mrf.mxu3  ;;  %v962_v52 = vpop.f32.mrf.mxu2 }
 0x2e7   :  { %v988_v50 = vadd.f32 %v982_v54, %v4390_v8  ;;  %v987_v51 = vadd.f32 %v962_v52, %v4394_v6 }
 0x2e9   :  { %v2003_v57 = vmul.f32 -1.442695, %v988_v50 }
 0x2ea   :  { %v2157_v4 = vpop.eup %2156 }
 0x2eb   :  { %v2159_v47 = vpop.eup %2158  ;;  %v998_v41 = vadd.f32 1.0, %v2157_v4  ;;  %2160 = vpow2.f32 %v2003_v57 }
 0x2ec   :  { %v999_v11 = vadd.f32 1.0, %v2159_v47 }
 0x2ed   :  { %2162 = vrcp.f32 %v998_v41  ;;  %v1012_v57 = vand.u32 2147483648, %v998_v41  ;;  %v1010_v2 = vand.u32 2147483647, %v998_v41  ;;  %vm1006_vm1 = vweird.f32 %v998_v41 }
 0x2ee   :  { %2164 = vrcp.f32 %v999_v11  ;;  %v1027_v47 = vand.u32 2147483648, %v999_v11  ;;  %v1025_v38 = vand.u32 2147483647, %v999_v11  ;;  %vm1021_vm5 = vweird.f32 %v999_v11 }
 0x2ef   :  { %v1013_v6 = vor.u32 1.1754944e-38, %v1012_v57  ;;  %vm1011_vm8 = vcmp.eq.f32.partialorder %v1010_v2, 8.507059e+37 }
 0x2f0   :  { %vm1026_vm9 = vcmp.eq.f32.partialorder %v1025_v38, 8.507059e+37 }
 0x2f1   :  { %v2161_v43 = vpop.eup %2160 }
 0x2f2   :  { %v1000_v56 = vadd.f32 1.0, %v2161_v43 }
 0x2f3   :  { %v2163_v42 = vpop.eup %2162 }
 0x2f4   :  { %v2165_v63 = vpop.eup %2164  ;;  %v1002_v54 = vmul.f32 %v2163_v42, %v998_v41  ;;  %2166 = vrcp.f32 %v1000_v56  ;;  %vm1007_vm15 = vweird.f32 %v2163_v42  ;;  %v1042_v57 = vand.u32 2147483648, %v1000_v56 }
 0x2f5   :  { %v1017_v50 = vmul.f32 %v2165_v63, %v999_v11  ;;  %2168 = vtanh.f32 %v987_v51  ;;  %vm1022_vm0 = vweird.f32 %v2165_v63  ;;  %vm1008_vm6 = vmor %vm1006_vm1, %vm1007_vm15  ;;  %vm1036_vm11 = vweird.f32 %v1000_v56 }
 0x2f6   :  { %v1003_v8 = vsub.f32 1.0, %v1002_v54  ;;  %vm1023_vm7 = vmor %vm1021_vm5, %vm1022_vm0  ;;  %v1028_v54 = vor.u32 1.1754944e-38, %v1027_v47  ;;  %v4403_v47 = vld [vmem:[#allocation22_spill] sm:$0xff] }
 0x2f7   :  { %v1018_v4 = vsub.f32 1.0, %v1017_v50 }
 0x2f8   :  { %v1004_v15 = vmul.f32 %v2163_v42, %v1003_v8 }
 0x2f9   :  { %v1019_v43 = vmul.f32 %v2165_v63, %v1018_v4 }
 0x2fa   :  { %v2167_v48 = vpop.eup %2166  ;;  %v1005_v36 = vadd.f32 %v2163_v42, %v1004_v15 }
 0x2fb   :  { %v1020_v52 = vadd.f32 %v2165_v63, %v1019_v43  ;;  %v1032_v62 = vmul.f32 %v2167_v48, %v1000_v56  ;;  %v2169_v51 = vpop.eup %2168  ;;  %vm1037_vm10 = vweird.f32 %v2167_v48  ;;  %v4404_v43 = vld [vmem:[#allocation11_spill] sm:$0xff] }
 0x2fc   :  { %v1009_v50 = vsel %vm1008_vm6, %v2163_v42, %v1005_v36  ;;  %v1040_v36 = vand.u32 2147483647, %v1000_v56  ;;  %vm1038_vm12 = vmor %vm1036_vm11, %vm1037_vm10  ;;  %v1043_v42 = vor.u32 1.1754944e-38, %v1042_v57  ;;  %v4401_v56 = vld [vmem:[#allocation10_spill] sm:$0xff]  ;;  %v4414_v57 = vld [vmem:[#allocation31_spill] sm:$0xff] }
 0x2fd   :  { %v1014_v37 = vsel %vm1011_vm8, %v1013_v6, %v1009_v50  ;;  %v1024_v8 = vsel %vm1023_vm7, %v2165_v63, %v1020_v52  ;;  %v1033_v32 = vsub.f32 1.0, %v1032_v62  ;;  %v4405_v6 = vld [vmem:[#allocation12_spill] sm:$0xff]  ;;  %v4408_v50 = vld [vmem:[#allocation13_spill] sm:$0xff] }
 0x2fe   :  { %v1029_v4 = vsel %vm1026_vm9, %v1028_v54, %v1024_v8  ;;  %v1048_v44 = vmul.f32 %v2169_v51, %v1014_v37  ;;  %vm1041_vm13 = vcmp.eq.f32.partialorder %v1040_v36, 8.507059e+37  ;;  %v4400_v37 = vld [vmem:[#allocation9_spill] sm:$0xff]  ;;  %v4406_v52 = vld [vmem:[#allocation28_spill] sm:$0xff]  ;;  %v4407_v54 = vld [vmem:[#allocation23_spill] sm:$0xff] }
 0x2ff   :  { %v1047_v40 = vmul.f32 %v1029_v4, %v3644_v35  ;;  %v1034_v15 = vmul.f32 %v2167_v48, %v1033_v32  ;;  %v4396_v35 = vld [vmem:[#allocation7_spill] sm:$0xff]  ;;  %v4399_v32 = vld [vmem:[#allocation21_spill] sm:$0xff]  ;;  %v4409_v51 = vld [vmem:[#allocation14_spill] sm:$0xff] }
 0x300   :  { %v4410_v8 = vld [vmem:[#allocation30_spill] sm:$0xff]  ;;  %v4411_v4 = vld [vmem:[#allocation25_spill] sm:$0xff]  ;;  %v4415_v36 = vld [vmem:[#allocation27_spill] sm:$0xff] }
 0x301   :  { %v3739_v41 = vadd.f32 %v1048_v44, %v1047_v40  ;;  %v1035_v11 = vadd.f32 %v2167_v48, %v1034_v15  ;;  %v4397_v40 = vld [vmem:[#allocation8_spill] sm:$0xff]  ;;  %v4412_v15 = vld [vmem:[#allocation15_spill] sm:$0xff] }
 0x302   :  { %v4398_v44 = vld [vmem:[#allocation24_spill] sm:$0xff] }
 0x303   :  { %2170 = vtanh.f32 %v3739_v41  ;;  %v1039_v2 = vsel %vm1038_vm12, %v2167_v48, %v1035_v11  ;;  %v4402_v48 = vld [vmem:[#allocation26_spill] sm:$0xff]  ;;  %v4413_v11 = vld [vmem:[#allocation16_spill] sm:$0xff] }
 0x304   :  { %v1044_v38 = vsel %vm1041_vm13, %v1043_v42, %v1039_v2  ;;  %v4416_v2 = vld [vmem:[#allocation17_spill] sm:$0xff]  ;;  %v4417_v42 = vld [vmem:[#allocation18_spill] sm:$0xff] }
 0x309   :  { %v2171_v63 = vpop.eup %2170 }
 0x30a   :  { %v3742_v62 = vmul.f32 %v2171_v63, %v1044_v38  ;;  %v4418_v63 = vld [vmem:[#allocation33_spill] sm:$0xff] }
 0x30b   :  { %v4419_v38 = vld [vmem:[#allocation29_spill] sm:$0xff] }
 0x30c   :  { %4395 = vst [vmem:[#allocation32_spill] sm:$0xff] %v3742_v62  ;;  %1088 = vmatmul.f32.vlgmr.msrb.gmra.mxu0 %v3742_v62  ;;  %1108 = vmatmul.f32.vlgmr.msrb.gmra.mxu1 %v3742_v62 }
 0x30d   :  { %1128 = vmatmul.f32.vlgmr.msra.gmra.mxu2 %v3742_v62  ;;  %1148 = vmatmul.f32.vlgmr.msra.gmra.mxu3 %v3742_v62  ;;  %v4420_v62 = vld [vmem:[#allocation34_spill] sm:$0xff] }
 0x30e   :  { %1394 = vmatpush.msrb.mxu0 %v3251_v9  ;;  %1414 = vmatpush.msrb.mxu1 %v3257_v33 }
 0x30f   :  { %1434 = vmatpush.msra.mxu2 %v3263_v39  ;;  %1454 = vmatpush.msra.mxu3 %v3269_v1 }
 0x310   :  { %1395 = vmatpush.msrb.mxu0 %v3275_v5  ;;  %1415 = vmatpush.msrb.mxu1 %v3281_v0 }
 0x311   :  { %1435 = vmatpush.msra.mxu2 %v3287_v55  ;;  %1455 = vmatpush.msra.mxu3 %v3293_v53 }
 0x312   :  { %1396 = vmatpush.msrb.mxu0 %v3299_v49  ;;  %1416 = vmatpush.msrb.mxu1 %v3305_v46 }
 0x313   :  { %1436 = vmatpush.msra.mxu2 %v3311_v34  ;;  %1456 = vmatpush.msra.mxu3 %v3317_v61 }
 0x314   :  { %1397 = vmatpush.msrb.mxu0 %v3323_v45  ;;  %1417 = vmatpush.msrb.mxu1 %v3329_v16 }
 0x315   :  { %1437 = vmatpush.msra.mxu2 %v3335_v59  ;;  %1457 = vmatpush.msra.mxu3 %v3341_v7 }
 0x316   :  { %1398 = vmatpush.msrb.mxu0 %v3347_v58  ;;  %1418 = vmatpush.msrb.mxu1 %v3353_v60 }
 0x317   :  { %1438 = vmatpush.msra.mxu2 %v3359_v3  ;;  %1458 = vmatpush.msra.mxu3 %v3365_v14 }
 0x318   :  { %1399 = vmatpush.msrb.mxu0 %v3371_v10  ;;  %1419 = vmatpush.msrb.mxu1 %v3377_v12 }
 0x319   :  { %1439 = vmatpush.msra.mxu2 %v3383_v13  ;;  %1459 = vmatpush.msra.mxu3 %v3389_v17 }
 0x31a   :  { %1400 = vmatpush.msrb.mxu0 %v3395_v18  ;;  %1420 = vmatpush.msrb.mxu1 %v3401_v19 }
 0x31b   :  { %1440 = vmatpush.msra.mxu2 %v3407_v20  ;;  %1460 = vmatpush.msra.mxu3 %v3413_v21 }
 0x31c   :  { %1401 = vmatpush.msrb.mxu0 %v3419_v22  ;;  %1421 = vmatpush.msrb.mxu1 %v3425_v23 }
 0x31d   :  { %1441 = vmatpush.msra.mxu2 %v3431_v24  ;;  %1461 = vmatpush.msra.mxu3 %v3437_v25 }
 0x31e   :  { %1402 = vmatpush.msrb.mxu0 %v3443_v26  ;;  %1422 = vmatpush.msrb.mxu1 %v3449_v27 }
 0x31f   :  { %1442 = vmatpush.msra.mxu2 %v3455_v28  ;;  %1462 = vmatpush.msra.mxu3 %v3461_v29 }
 0x320   :  { %1403 = vmatpush.msrb.mxu0 %v3467_v30  ;;  %1423 = vmatpush.msrb.mxu1 %v3473_v31 }
 0x321   :  { %1443 = vmatpush.msra.mxu2 %v4396_v35  ;;  %1463 = vmatpush.msra.mxu3 %v4397_v40 }
 0x322   :  { %1404 = vmatpush.msrb.mxu0 %v4398_v44  ;;  %1424 = vmatpush.msrb.mxu1 %v4399_v32 }
 0x323   :  { %1444 = vmatpush.msra.mxu2 %v4400_v37  ;;  %1464 = vmatpush.msra.mxu3 %v4401_v56 }
 0x324   :  { %1405 = vmatpush.msrb.mxu0 %v4402_v48  ;;  %1425 = vmatpush.msrb.mxu1 %v4403_v47 }
 0x325   :  { %1445 = vmatpush.msra.mxu2 %v4404_v43  ;;  %1465 = vmatpush.msra.mxu3 %v4405_v6  ;;  %v4429_v6 = vld [vmem:[#allocation54_spill] sm:$0xff] }
 0x326   :  { %1406 = vmatpush.msrb.mxu0 %v4406_v52  ;;  %1426 = vmatpush.msrb.mxu1 %v4407_v54 }
 0x327   :  { %1446 = vmatpush.msra.mxu2 %v4408_v50  ;;  %1466 = vmatpush.msra.mxu3 %v4409_v51  ;;  %v4422_v51 = vld [vmem:[#allocation45_spill] sm:$0xff] }
 0x328   :  { %1407 = vmatpush.msrb.mxu0 %v4410_v8  ;;  %1427 = vmatpush.msrb.mxu1 %v4411_v4  ;;  %v4421_v8 = vld [vmem:[#allocation19_spill] sm:$0xff] }
 0x329   :  { %1447 = vmatpush.msra.mxu2 %v4412_v15  ;;  %1467 = vmatpush.msra.mxu3 %v4413_v11 }
 0x32a   :  { %1408 = vmatpush.msrb.mxu0 %v4414_v57  ;;  %1428 = vmatpush.msrb.mxu1 %v4415_v36  ;;  %v4424_v57 = vld [vmem:[#allocation5_spill] sm:$0xff]  ;;  %v4425_v36 = vld [vmem:[#allocation43_spill] sm:$0xff] }
 0x32b   :  { %1448 = vmatpush.msra.mxu2 %v4416_v2  ;;  %1468 = vmatpush.msra.mxu3 %v4417_v42  ;;  %v4426_v54 = vsel %vm2941_vm2, %v4424_v57, %v4425_v36  ;;  %v4432_v36 = vld [vmem:[#allocation56_spill] sm:$0xff] }
 0x32c   :  { %1409 = vmatpush.msrb.mxu0 %v4418_v63  ;;  %1429 = vmatpush.msrb.mxu1 %v4419_v38 }
 0x32d   :  { %1449 = vmatpush.msra.mxu2 %v4420_v62  ;;  %1469 = vmatpush.msra.mxu3 %v4421_v8  ;;  %v4428_v62 = vld [vmem:[#allocation58_spill] sm:$0xff] }
 0x32e   :  { %v4430_v8 = vsel %vm3052_vm4, %v4428_v62, %v4429_v6 }
 0x389   :  { %v1089_v4 = vpop.f32.mrf.mxu0  ;;  %v1109_v15 = vpop.f32.mrf.mxu1 }
 0x38a   :  { %v1152_v11 = vadd.f32 %v1089_v4, %v4422_v51  ;;  %v1153_v2 = vadd.f32 %v1109_v15, %v4426_v54 }
 0x38c   :  { %v2004_v52 = vmul.f32 -1.442695, %v1152_v11  ;;  %v2005_v42 = vmul.f32 -1.442695, %v1153_v2  ;;  %v4433_v2 = vld [vmem:[#allocation53_spill] sm:$0xff] }
 0x38e   :  { %2172 = vpow2.f32 %v2004_v52 }
 0x38f   :  { %2174 = vpow2.f32 %v2005_v42  ;;  %v4434_v42 = vsel %vm3045_vm3, %v4432_v36, %v4433_v2 }
 0x390   :  { %v1149_v63 = vpop.f32.mrf.mxu3  ;;  %v1129_v54 = vpop.f32.mrf.mxu2 }
 0x391   :  { %v1155_v43 = vadd.f32 %v1149_v63, %v4430_v8  ;;  %v1154_v38 = vadd.f32 %v1129_v54, %v4434_v42 }
 0x393   :  { %v2006_v47 = vmul.f32 -1.442695, %v1155_v43 }
 0x394   :  { %v2173_v48 = vpop.eup %2172 }
 0x395   :  { %v2175_v51 = vpop.eup %2174  ;;  %v1165_v4 = vadd.f32 1.0, %v2173_v48  ;;  %2176 = vpow2.f32 %v2006_v47 }
 0x396   :  { %v1166_v50 = vadd.f32 1.0, %v2175_v51 }
 0x397   :  { %2178 = vrcp.f32 %v1165_v4  ;;  %v1179_v47 = vand.u32 2147483648, %v1165_v4  ;;  %v1177_v56 = vand.u32 2147483647, %v1165_v4  ;;  %vm1173_vm0 = vweird.f32 %v1165_v4 }
 0x398   :  { %2180 = vrcp.f32 %v1166_v50  ;;  %v1194_v63 = vand.u32 2147483648, %v1166_v50  ;;  %v1192_v37 = vand.u32 2147483647, %v1166_v50  ;;  %vm1188_vm1 = vweird.f32 %v1166_v50 }
 0x399   :  { %v1180_v54 = vor.u32 1.1754944e-38, %v1179_v47  ;;  %vm1178_vm7 = vcmp.eq.f32.partialorder %v1177_v56, 8.507059e+37 }
 0x39a   :  { %v1195_v42 = vor.u32 1.1754944e-38, %v1194_v63  ;;  %vm1193_vm8 = vcmp.eq.f32.partialorder %v1192_v37, 8.507059e+37 }
 0x39b   :  { %v2177_v15 = vpop.eup %2176 }
 0x39c   :  { %v1167_v11 = vadd.f32 1.0, %v2177_v15 }
 0x39d   :  { %v2179_v52 = vpop.eup %2178 }
 0x39e   :  { %v2181_v62 = vpop.eup %2180  ;;  %v1169_v6 = vmul.f32 %v2179_v52, %v1165_v4  ;;  %2182 = vrcp.f32 %v1167_v11  ;;  %vm1174_vm14 = vweird.f32 %v2179_v52  ;;  %v1209_v47 = vand.u32 2147483648, %v1167_v11 }
 0x39f   :  { %v1184_v43 = vmul.f32 %v2181_v62, %v1166_v50  ;;  %2184 = vtanh.f32 %v1154_v38  ;;  %vm1189_vm15 = vweird.f32 %v2181_v62  ;;  %vm1175_vm5 = vmor %vm1173_vm0, %vm1174_vm14  ;;  %vm1203_vm10 = vweird.f32 %v1167_v11 }
 0x3a0   :  { %v1170_v8 = vsub.f32 1.0, %v1169_v6  ;;  %vm1190_vm6 = vmor %vm1188_vm1, %vm1189_vm15 }
 0x3a1   :  { %v1185_v48 = vsub.f32 1.0, %v1184_v43 }
 0x3a2   :  { %v1171_v51 = vmul.f32 %v2179_v52, %v1170_v8 }
 0x3a3   :  { %v1186_v15 = vmul.f32 %v2181_v62, %v1185_v48 }
 0x3a4   :  { %v2183_v57 = vpop.eup %2182  ;;  %v1172_v32 = vadd.f32 %v2179_v52, %v1171_v51 }
 0x3a5   :  { %v1187_v36 = vadd.f32 %v2181_v62, %v1186_v15  ;;  %v1199_v2 = vmul.f32 %v2183_v57, %v1167_v11  ;;  %v2185_v38 = vpop.eup %2184  ;;  %vm1204_vm9 = vweird.f32 %v2183_v57 }
 0x3a6   :  { %v1176_v6 = vsel %vm1175_vm5, %v2179_v52, %v1172_v32  ;;  %v1207_v32 = vand.u32 2147483647, %v1167_v11  ;;  %vm1205_vm11 = vmor %vm1203_vm10, %vm1204_vm9  ;;  %v1210_v52 = vor.u32 1.1754944e-38, %v1209_v47 }
 0x3a7   :  { %v1181_v43 = vsel %vm1178_vm7, %v1180_v54, %v1176_v6  ;;  %v1191_v8 = vsel %vm1190_vm6, %v2181_v62, %v1187_v36  ;;  %v1200_v44 = vsub.f32 1.0, %v1199_v2 }
 0x3a8   :  { %v1196_v48 = vsel %vm1193_vm8, %v1195_v42, %v1191_v8  ;;  %v1215_v40 = vmul.f32 %v2185_v38, %v1181_v43  ;;  %vm1208_vm12 = vcmp.eq.f32.partialorder %v1207_v32, 8.507059e+37 }
 0x3a9   :  { %v1214_v35 = vmul.f32 %v1196_v48, %v3739_v41  ;;  %v1201_v51 = vmul.f32 %v2183_v57, %v1200_v44  ;;  %v4471_v48 = vld [vmem:[#allocation59_spill] sm:$0xff] }
 0x3ab   :  { %v3829_v4 = vadd.f32 %v1215_v40, %v1214_v35  ;;  %v1202_v50 = vadd.f32 %v2183_v57, %v1201_v51  ;;  %v4467_v35 = vld [vmem:[#allocation60_spill] sm:$0xff]  ;;  %v4472_v51 = vld [vmem:[#allocation51_spill] sm:$0xff] }
 0x3ac   :  { %v4468_v40 = vld [vmem:[#allocation52_spill] sm:$0xff] }
 0x3ad   :  { %2186 = vtanh.f32 %v3829_v4  ;;  %v1206_v56 = vsel %vm1205_vm11, %v2183_v57, %v1202_v50  ;;  %v4469_v44 = vsel %vm3052_vm4, %v4467_v35, %v4468_v40  ;;  %v4473_v50 = vsel %vm3045_vm3, %v4471_v48, %v4472_v51  ;;  %v4476_v35 = vld [vmem:[#allocation6_spill] sm:$0xff] }
 0x3ae   :  { %v1211_v62 = vsel %vm1208_vm12, %v1210_v52, %v1206_v56 }
 0x3b3   :  { %v2187_v37 = vpop.eup %2186 }
 0x3b4   :  { %v3832_v63 = vmul.f32 %v2187_v37, %v1211_v62 }
 0x3b6   :  { %1249 = vmatmul.f32.vlgmr.msra.gmra.mxu0 %v3832_v63  ;;  %1269 = vmatmul.f32.vlgmr.msra.gmra.mxu1 %v3832_v63 }
 0x3b7   :  { %1289 = vmatmul.f32.vlgmr.msrb.gmra.mxu2 %v3832_v63  ;;  %1309 = vmatmul.f32.vlgmr.msrb.gmra.mxu3 %v3832_v63 }
 0x3b8   :  { %1555 = vmatpush.msra.mxu0 %v3251_v9  ;;  %1575 = vmatpush.msra.mxu1 %v3257_v33  ;;  %v4435_v9 = vld [vmem:[#allocation7_spill] sm:$0xff]  ;;  %v4436_v33 = vld [vmem:[#allocation8_spill] sm:$0xff] }
 0x3b9   :  { %1595 = vmatpush.msrb.mxu2 %v3263_v39  ;;  %1615 = vmatpush.msrb.mxu3 %v3269_v1  ;;  %v4437_v39 = vld [vmem:[#allocation24_spill] sm:$0xff]  ;;  %v4438_v1 = vld [vmem:[#allocation21_spill] sm:$0xff] }
 0x3ba   :  { %1556 = vmatpush.msra.mxu0 %v3275_v5  ;;  %1576 = vmatpush.msra.mxu1 %v3281_v0  ;;  %v4439_v5 = vld [vmem:[#allocation9_spill] sm:$0xff]  ;;  %v4440_v0 = vld [vmem:[#allocation10_spill] sm:$0xff] }
 0x3bb   :  { %1596 = vmatpush.msrb.mxu2 %v3287_v55  ;;  %1616 = vmatpush.msrb.mxu3 %v3293_v53  ;;  %v4441_v55 = vld [vmem:[#allocation26_spill] sm:$0xff] }
 0x3bc   :  { %1557 = vmatpush.msra.mxu0 %v3299_v49  ;;  %1577 = vmatpush.msra.mxu1 %v3305_v46  ;;  %v4442_v53 = vld [vmem:[#allocation22_spill] sm:$0xff]  ;;  %v4443_v49 = vld [vmem:[#allocation11_spill] sm:$0xff]  ;;  %v4444_v46 = vld [vmem:[#allocation12_spill] sm:$0xff] }
 0x3bd   :  { %1597 = vmatpush.msrb.mxu2 %v3311_v34  ;;  %1617 = vmatpush.msrb.mxu3 %v3317_v61  ;;  %v4445_v34 = vld [vmem:[#allocation28_spill] sm:$0xff]  ;;  %v4446_v61 = vld [vmem:[#allocation23_spill] sm:$0xff] }
 0x3be   :  { %1558 = vmatpush.msra.mxu0 %v3323_v45  ;;  %1578 = vmatpush.msra.mxu1 %v3329_v16  ;;  %v4447_v45 = vld [vmem:[#allocation13_spill] sm:$0xff]  ;;  %v4448_v16 = vld [vmem:[#allocation14_spill] sm:$0xff] }
 0x3bf   :  { %1598 = vmatpush.msrb.mxu2 %v3335_v59  ;;  %1618 = vmatpush.msrb.mxu3 %v3341_v7  ;;  %v4449_v59 = vld [vmem:[#allocation30_spill] sm:$0xff]  ;;  %v4450_v7 = vld [vmem:[#allocation25_spill] sm:$0xff] }
 0x3c0   :  { %1559 = vmatpush.msra.mxu0 %v3347_v58  ;;  %1579 = vmatpush.msra.mxu1 %v3353_v60  ;;  %v4451_v58 = vld [vmem:[#allocation15_spill] sm:$0xff]  ;;  %v4452_v60 = vld [vmem:[#allocation16_spill] sm:$0xff] }
 0x3c1   :  { %1599 = vmatpush.msrb.mxu2 %v3359_v3  ;;  %1619 = vmatpush.msrb.mxu3 %v3365_v14  ;;  %v4453_v3 = vld [vmem:[#allocation31_spill] sm:$0xff] }
 0x3c2   :  { %1560 = vmatpush.msra.mxu0 %v3371_v10  ;;  %1580 = vmatpush.msra.mxu1 %v3377_v12  ;;  %v4454_v14 = vld [vmem:[#allocation27_spill] sm:$0xff]  ;;  %v4455_v10 = vld [vmem:[#allocation17_spill] sm:$0xff]  ;;  %v4456_v12 = vld [vmem:[#allocation18_spill] sm:$0xff] }
 0x3c3   :  { %1600 = vmatpush.msrb.mxu2 %v3383_v13  ;;  %1620 = vmatpush.msrb.mxu3 %v3389_v17  ;;  %v4457_v13 = vld [vmem:[#allocation33_spill] sm:$0xff] }
 0x3c4   :  { %1561 = vmatpush.msra.mxu0 %v3395_v18  ;;  %1581 = vmatpush.msra.mxu1 %v3401_v19  ;;  %v4458_v17 = vld [vmem:[#allocation29_spill] sm:$0xff]  ;;  %v4459_v18 = vld [vmem:[#allocation34_spill] sm:$0xff]  ;;  %v4460_v19 = vld [vmem:[#allocation19_spill] sm:$0xff] }
 0x3c5   :  { %1601 = vmatpush.msrb.mxu2 %v3407_v20  ;;  %1621 = vmatpush.msrb.mxu3 %v3413_v21 }
 0x3c6   :  { %1562 = vmatpush.msra.mxu0 %v3419_v22  ;;  %1582 = vmatpush.msra.mxu1 %v3425_v23  ;;  %v4461_v22 = vld [vmem:[#allocation39_spill] sm:$0xff] }
 0x3c7   :  { %1602 = vmatpush.msrb.mxu2 %v3431_v24  ;;  %1622 = vmatpush.msrb.mxu3 %v3437_v25  ;;  %v4463_v25 = vld [vmem:[#allocation35_spill] sm:$0xff]  ;;  %v4492_v24 = vld [vmem:[#allocation66_spill] sm:$0xff] }
 0x3c8   :  { %1563 = vmatpush.msra.mxu0 %v3443_v26  ;;  %1583 = vmatpush.msra.mxu1 %v3449_v27  ;;  %v4464_v26 = vld [vmem:[#allocation37_spill] sm:$0xff] }
 0x3c9   :  { %1603 = vmatpush.msrb.mxu2 %v3455_v28  ;;  %1623 = vmatpush.msrb.mxu3 %v3461_v29  ;;  %v4465_v27 = vsel %vm2941_vm2, %v4463_v25, %v4464_v26  ;;  %v2094_v25 = vld [vmem:[%s4064_s4 + $0x30] sm:$0xff]  ;;  %v2093_v26 = vld [vmem:[%s4064_s4 + $0x28] sm:$0xff] }
 0x3ca   :  { %1564 = vmatpush.msra.mxu0 %v3467_v30  ;;  %1584 = vmatpush.msra.mxu1 %v3473_v31 }
 0x3cb   :  { %1604 = vmatpush.msrb.mxu2 %v4435_v9  ;;  %1624 = vmatpush.msrb.mxu3 %v4436_v33 }
 0x3cc   :  { %1565 = vmatpush.msra.mxu0 %v4437_v39  ;;  %1585 = vmatpush.msra.mxu1 %v4438_v1 }
 0x3cd   :  { %1605 = vmatpush.msrb.mxu2 %v4439_v5  ;;  %1625 = vmatpush.msrb.mxu3 %v4440_v0 }
 0x3ce   :  { %1566 = vmatpush.msra.mxu0 %v4441_v55  ;;  %1586 = vmatpush.msra.mxu1 %v4442_v53 }
 0x3cf   :  { %1606 = vmatpush.msrb.mxu2 %v4443_v49  ;;  %1626 = vmatpush.msrb.mxu3 %v4444_v46 }
 0x3d0   :  { %1567 = vmatpush.msra.mxu0 %v4445_v34  ;;  %1587 = vmatpush.msra.mxu1 %v4446_v61 }
 0x3d1   :  { %1607 = vmatpush.msrb.mxu2 %v4447_v45  ;;  %1627 = vmatpush.msrb.mxu3 %v4448_v16 }
 0x3d2   :  { %1568 = vmatpush.msra.mxu0 %v4449_v59  ;;  %1588 = vmatpush.msra.mxu1 %v4450_v7 }
 0x3d3   :  { %1608 = vmatpush.msrb.mxu2 %v4451_v58  ;;  %1628 = vmatpush.msrb.mxu3 %v4452_v60 }
 0x3d4   :  { %1569 = vmatpush.msra.mxu0 %v4453_v3  ;;  %1589 = vmatpush.msra.mxu1 %v4454_v14 }
 0x3d5   :  { %1609 = vmatpush.msrb.mxu2 %v4455_v10  ;;  %1629 = vmatpush.msrb.mxu3 %v4456_v12 }
 0x3d6   :  { %1570 = vmatpush.msra.mxu0 %v4457_v13  ;;  %1590 = vmatpush.msra.mxu1 %v4458_v17 }
 0x3d7   :  { %1610 = vmatpush.msrb.mxu2 %v4459_v18  ;;  %1630 = vmatpush.msrb.mxu3 %v4460_v19 }
 0x433   :  { %v1250_v20 = vpop.f32.mrf.mxu0  ;;  %v1270_v21 = vpop.f32.mrf.mxu1 }
 0x434   :  { %v1313_v23 = vadd.f32 %v1250_v20, %v4461_v22  ;;  %v1314_v28 = vadd.f32 %v1270_v21, %v4465_v27 }
 0x436   :  { %v2007_v29 = vmul.f32 -1.442695, %v1313_v23  ;;  %v2008_v30 = vmul.f32 -1.442695, %v1314_v28 }
 0x438   :  { %2188 = vpow2.f32 %v2007_v29  ;;  %v4474_v29 = vld [vmem:[#allocation42_spill] sm:$0xff] }
 0x439   :  { %2190 = vpow2.f32 %v2008_v30 }
 0x43a   :  { %v1310_v31 = vpop.f32.mrf.mxu3  ;;  %v1290_v42 = vpop.f32.mrf.mxu2 }
 0x43b   :  { %v1316_v11 = vadd.f32 %v1310_v31, %v4469_v44  ;;  %v1315_v47 = vadd.f32 %v1290_v42, %v4473_v50  ;;  %v4475_v31 = vld [vmem:[#allocation40_spill] sm:$0xff]  ;;  %v4478_v42 = vld [vmem:[#allocation62_spill] sm:$0xff] }
 0x43c   :  { %v4477_v40 = vsel %vm2941_vm2, %v4475_v31, %v4476_v35 }
 0x43d   :  { %v2009_v57 = vmul.f32 -1.442695, %v1316_v11  ;;  %v2092_v11 = vld [vmem:[%s4064_s4 + $0x20] sm:$0xff] }
 0x43e   :  { %v2189_v15 = vpop.eup %2188 }
 0x43f   :  { %v2191_v54 = vpop.eup %2190  ;;  %v1326_v36 = vadd.f32 1.0, %v2189_v15  ;;  %2192 = vpow2.f32 %v2009_v57 }
 0x440   :  { %v1327_v2 = vadd.f32 1.0, %v2191_v54  ;;  %v2091_v54 = vld [vmem:[%s4064_s4 + $0x18] sm:$0xff] }
 0x441   :  { %2194 = vrcp.f32 %v1326_v36  ;;  %v1340_v9 = vand.u32 2147483648, %v1326_v36  ;;  %v1338_v1 = vand.u32 2147483647, %v1326_v36  ;;  %vm1334_vm15 = vweird.f32 %v1326_v36 }
 0x442   :  { %2196 = vrcp.f32 %v1327_v2  ;;  %v1355_v33 = vand.u32 2147483648, %v1327_v2  ;;  %v1353_v0 = vand.u32 2147483647, %v1327_v2  ;;  %vm1349_vm0 = vweird.f32 %v1327_v2 }
 0x443   :  { %v1341_v49 = vor.u32 1.1754944e-38, %v1340_v9  ;;  %vm1339_vm6 = vcmp.eq.f32.partialorder %v1338_v1, 8.507059e+37  ;;  %v4482_v1 = vld [vmem:[#allocation49_spill] sm:$0xff] }
 0x444   :  { %v1356_v61 = vor.u32 1.1754944e-38, %v1355_v33  ;;  %vm1354_vm7 = vcmp.eq.f32.partialorder %v1353_v0, 8.507059e+37 }
 0x445   :  { %v2193_v6 = vpop.eup %2192 }
 0x446   :  { %v1328_v38 = vadd.f32 1.0, %v2193_v6  ;;  %v4479_v6 = vld [vmem:[#allocation50_spill] sm:$0xff] }
 0x447   :  { %v2195_v43 = vpop.eup %2194 }
 0x448   :  { %v2197_v32 = vpop.eup %2196  ;;  %v1330_v56 = vmul.f32 %v2195_v43, %v1326_v36  ;;  %2198 = vrcp.f32 %v1328_v38  ;;  %vm1335_vm13 = vweird.f32 %v2195_v43  ;;  %v1370_v17 = vand.u32 2147483648, %v1328_v38 }
 0x449   :  { %v1345_v52 = vmul.f32 %v2197_v32, %v1327_v2  ;;  %2200 = vtanh.f32 %v1315_v47  ;;  %vm1350_vm14 = vweird.f32 %v2197_v32  ;;  %vm1336_vm1 = vmor %vm1334_vm15, %vm1335_vm13  ;;  %vm1364_vm9 = vweird.f32 %v1328_v38  ;;  %v2090_v2 = vld [vmem:[%s4064_s4 + $0x10] sm:$0xff] }
 0x44a   :  { %v1331_v37 = vsub.f32 1.0, %v1330_v56  ;;  %vm1351_vm5 = vmor %vm1349_vm0, %vm1350_vm14  ;;  %v1368_v18 = vand.u32 2147483647, %v1328_v38  ;;  %v1371_v20 = vor.u32 1.1754944e-38, %v1370_v17  ;;  %v2089_v56 = vld [vmem:[%s4064_s4 + $0x8] sm:$0xff] }
 0x44b   :  { %v1346_v62 = vsub.f32 1.0, %v1345_v52  ;;  %v2088_v52 = vld [vmem:[%s4064_s4] sm:$0xff] }
 0x44c   :  { %v1332_v39 = vmul.f32 %v2195_v43, %v1331_v37  ;;  %vm1369_vm11 = vcmp.eq.f32.partialorder %v1368_v18, 8.507059e+37 }
 0x44d   :  { %v1347_v5 = vmul.f32 %v2197_v32, %v1346_v62 }
 0x44e   :  { %v2199_v55 = vpop.eup %2198  ;;  %v1333_v53 = vadd.f32 %v2195_v43, %v1332_v39  ;;  %v4481_v39 = vld [vmem:[#allocation61_spill] sm:$0xff] }
 0x44f   :  { %v1348_v46 = vadd.f32 %v2197_v32, %v1347_v5  ;;  %v1360_v34 = vmul.f32 %v2199_v55, %v1328_v38  ;;  %v2201_v16 = vpop.eup %2200  ;;  %vm1365_vm8 = vweird.f32 %v2199_v55  ;;  %v4480_v38 = vsel %vm3052_vm4, %v4478_v42, %v4479_v6 }
 0x450   :  { %v1337_v45 = vsel %vm1336_vm1, %v2195_v43, %v1333_v53  ;;  %vm1366_vm10 = vmor %vm1364_vm9, %vm1365_vm8  ;;  %v4483_v5 = vsel %vm3045_vm3, %v4481_v39, %v4482_v1  ;;  %v2098_v39 = vld [vmem:[%s4064_s4 + $0x50] sm:$0xff] }
 0x451   :  { %v1342_v59 = vsel %vm1339_vm6, %v1341_v49, %v1337_v45  ;;  %v1352_v7 = vsel %vm1351_vm5, %v2197_v32, %v1348_v46  ;;  %v1361_v58 = vsub.f32 1.0, %v1360_v34 }
 0x452   :  { %v1357_v60 = vsel %vm1354_vm7, %v1356_v61, %v1352_v7  ;;  %v1376_v3 = vmul.f32 %v2201_v16, %v1342_v59 }
 0x453   :  { %v1375_v14 = vmul.f32 %v1357_v60, %v3829_v4  ;;  %v1362_v10 = vmul.f32 %v2199_v55, %v1361_v58  ;;  %v2095_v4 = vld [vmem:[%s4064_s4 + $0x38] sm:$0xff] }
 0x455   :  { %v3919_v12 = vadd.f32 %v1376_v3, %v1375_v14  ;;  %v1363_v13 = vadd.f32 %v2199_v55, %v1362_v10 }
 0x457   :  { %2202 = vtanh.f32 %v3919_v12  ;;  %v1367_v19 = vsel %vm1366_vm10, %v2199_v55, %v1363_v13 }
 0x458   :  { %v1372_v22 = vsel %vm1369_vm11, %v1371_v20, %v1367_v19 }
 0x45d   :  { %v2203_v21 = vpop.eup %2202 }
 0x45e   :  { %v3922_v23 = vmul.f32 %v2203_v21, %v1372_v22 }
 0x460   :  { %1410 = vmatmul.f32.vlgmr.msrb.gmra.mxu0 %v3922_v23  ;;  %1430 = vmatmul.f32.vlgmr.msrb.gmra.mxu1 %v3922_v23  ;;  %v1724_v6 = vpack.c.bf16 %v3922_v23, %v3832_v63 }
 0x461   :  { %1450 = vmatmul.f32.vlgmr.msra.gmra.mxu2 %v3922_v23  ;;  %1470 = vmatmul.f32.vlgmr.msra.gmra.mxu3 %v3922_v23 }
 0x462   :  { %1860 = vmatpush.bf16.msrb.mxu0 %v2095_v4 }
 0x466   :  { %1861 = vmatpush.bf16.msrb.mxu0 %v2094_v25 }
 0x46a   :  { %1862 = vmatpush.bf16.msrb.mxu0 %v2093_v26 }
 0x46e   :  { %1863 = vmatpush.bf16.msrb.mxu0 %v2092_v11 }
 0x472   :  { %1864 = vmatpush.bf16.msrb.mxu0 %v2091_v54 }
 0x476   :  { %1865 = vmatpush.bf16.msrb.mxu0 %v2090_v2  ;;  %v4487_v2 = vld [vmem:[#allocation32_spill] sm:$0xff] }
 0x47a   :  { %1866 = vmatpush.bf16.msrb.mxu0 %v2089_v56  ;;  %v4488_v56 = vld [vmem:[#allocation48_spill] sm:$0xff] }
 0x47e   :  { %1867 = vmatpush.bf16.msrb.mxu0 %v2088_v52 }
 0x4dd   :  { %v1411_v27 = vpop.f32.mrf.mxu0  ;;  %v1431_v28 = vpop.f32.mrf.mxu1 }
 0x4de   :  { %v1474_v30 = vadd.f32 %v1411_v27, %v4474_v29  ;;  %v1475_v44 = vadd.f32 %v1431_v28, %v4477_v40 }
 0x4e0   :  { %v2010_v57 = vmul.f32 -1.442695, %v1474_v30  ;;  %v2011_v15 = vmul.f32 -1.442695, %v1475_v44 }
 0x4e2   :  { %2204 = vpow2.f32 %v2010_v57 }
 0x4e3   :  { %2206 = vpow2.f32 %v2011_v15  ;;  %v4485_v15 = vld [vmem:[#allocation4_spill] sm:$0xff] }
 0x4e4   :  { %v1471_v36 = vpop.f32.mrf.mxu3  ;;  %v1451_v37 = vpop.f32.mrf.mxu2 }
 0x4e5   :  { %v1477_v43 = vadd.f32 %v1471_v36, %v4480_v38  ;;  %v1476_v0 = vadd.f32 %v1451_v37, %v4483_v5  ;;  %v4486_v36 = vld [vmem:[#allocation20_spill] sm:$0xff]  ;;  %v2103_v38 = vld [vmem:[%s4064_s4 + $0x78] sm:$0xff] }
 0x4e6   :  { %v1722_v42 = vpack.c.bf16 %v4487_v2, %v4486_v36  ;;  %1889 = vmatpush.bf16.msrb.mxu1 %v2103_v38  ;;  %v4489_v37 = vld [vmem:[#allocation47_spill] sm:$0xff] }
 0x4e7   :  { %v2012_v48 = vmul.f32 -1.442695, %v1477_v43  ;;  %v2102_v43 = vld [vmem:[%s4064_s4 + $0x70] sm:$0xff] }
 0x4e8   :  { %v2205_v51 = vpop.eup %2204 }
 0x4e9   :  { %v2207_v50 = vpop.eup %2206  ;;  %v1487_v47 = vadd.f32 1.0, %v2205_v51  ;;  %2208 = vpow2.f32 %v2012_v48  ;;  %v2101_v48 = vld [vmem:[%s4064_s4 + $0x68] sm:$0xff]  ;;  %v2100_v51 = vld [vmem:[%s4064_s4 + $0x60] sm:$0xff] }
 0x4ea   :  { %v1488_v32 = vadd.f32 1.0, %v2207_v50  ;;  %1890 = vmatpush.bf16.msrb.mxu1 %v2102_v43  ;;  %v2099_v50 = vld [vmem:[%s4064_s4 + $0x58] sm:$0xff] }
 0x4eb   :  { %2210 = vrcp.f32 %v1487_v47  ;;  %v1501_v61 = vand.u32 2147483648, %v1487_v47  ;;  %v1499_v59 = vand.u32 2147483647, %v1487_v47  ;;  %vm1495_vm14 = vweird.f32 %v1487_v47 }
 0x4ec   :  { %2212 = vrcp.f32 %v1488_v32  ;;  %v1516_v45 = vand.u32 2147483648, %v1488_v32  ;;  %v1514_v58 = vand.u32 2147483647, %v1488_v32  ;;  %vm1510_vm15 = vweird.f32 %v1488_v32 }
 0x4ed   :  { %v1502_v14 = vor.u32 1.1754944e-38, %v1501_v61  ;;  %vm1500_vm5 = vcmp.eq.f32.partialorder %v1499_v59, 8.507059e+37 }
 0x4ee   :  { %v1517_v17 = vor.u32 1.1754944e-38, %v1516_v45  ;;  %vm1515_vm6 = vcmp.eq.f32.partialorder %v1514_v58, 8.507059e+37  ;;  %1891 = vmatpush.bf16.msrb.mxu1 %v2101_v48 }
 0x4ef   :  { %v2209_v62 = vpop.eup %2208 }
 0x4f0   :  { %v1489_v9 = vadd.f32 1.0, %v2209_v62  ;;  %v4490_v62 = vld [vmem:[#allocation46_spill] sm:$0xff] }
 0x4f1   :  { %v2211_v33 = vpop.eup %2210 }
 0x4f2   :  { %v2213_v55 = vpop.eup %2212  ;;  %v1491_v53 = vmul.f32 %v2211_v33, %v1487_v47  ;;  %2214 = vrcp.f32 %v1489_v9  ;;  %vm1496_vm12 = vweird.f32 %v2211_v33  ;;  %v1531_v30 = vand.u32 2147483648, %v1489_v9  ;;  %1892 = vmatpush.bf16.msrb.mxu1 %v2100_v51 }
 0x4f3   :  { %v1506_v49 = vmul.f32 %v2213_v55, %v1488_v32  ;;  %2216 = vtanh.f32 %v1476_v0  ;;  %vm1511_vm13 = vweird.f32 %v2213_v55  ;;  %vm1497_vm0 = vmor %vm1495_vm14, %vm1496_vm12  ;;  %vm1525_vm8 = vweird.f32 %v1489_v9  ;;  %v2097_v0 = vld [vmem:[%s4064_s4 + $0x48] sm:$0xff] }
 0x4f4   :  { %v1492_v46 = vsub.f32 1.0, %v1491_v53  ;;  %vm1512_vm1 = vmor %vm1510_vm15, %vm1511_vm13  ;;  %v1529_v31 = vand.u32 2147483647, %v1489_v9  ;;  %v1532_v40 = vor.u32 1.1754944e-38, %v1531_v30  ;;  %v4493_v53 = vld [vmem:[#allocation65_spill] sm:$0xff] }
 0x4f5   :  { %v1507_v34 = vsub.f32 1.0, %v1506_v49  ;;  %v4494_v49 = vsel %vm3052_vm4, %v4492_v24, %v4493_v53 }
 0x4f6   :  { %v1493_v16 = vmul.f32 %v2211_v33, %v1492_v46  ;;  %vm1530_vm10 = vcmp.eq.f32.partialorder %v1529_v31, 8.507059e+37  ;;  %1893 = vmatpush.bf16.msrb.mxu1 %v2099_v50 }
 0x4f7   :  { %v1508_v7 = vmul.f32 %v2213_v55, %v1507_v34  ;;  %v2096_v34 = vld [vmem:[%s4064_s4 + $0x40] sm:$0xff] }
 0x4f8   :  { %v2215_v60 = vpop.eup %2214  ;;  %v1494_v3 = vadd.f32 %v2211_v33, %v1493_v16 }
 0x4f9   :  { %v1509_v10 = vadd.f32 %v2213_v55, %v1508_v7  ;;  %v1521_v13 = vmul.f32 %v2215_v60, %v1489_v9  ;;  %v2217_v19 = vpop.eup %2216  ;;  %vm1526_vm7 = vweird.f32 %v2215_v60  ;;  %v4491_v9 = vsel %vm2941_vm2, %v4489_v37, %v4490_v62 }
 0x4fa   :  { %v1498_v18 = vsel %vm1497_vm0, %v2211_v33, %v1494_v3  ;;  %vm1527_vm9 = vmor %vm1525_vm8, %vm1526_vm7  ;;  %1894 = vmatpush.bf16.msrb.mxu1 %v2098_v39 }
 0x4fb   :  { %v1503_v20 = vsel %vm1500_vm5, %v1502_v14, %v1498_v18  ;;  %v1513_v21 = vsel %vm1512_vm1, %v2213_v55, %v1509_v10  ;;  %v1522_v22 = vsub.f32 1.0, %v1521_v13  ;;  %v4495_v14 = vld [vmem:[#allocation64_spill] sm:$0xff]  ;;  %v4496_v10 = vld [vmem:[#allocation63_spill] sm:$0xff] }
 0x4fc   :  { %v1518_v4 = vsel %vm1515_vm6, %v1517_v17, %v1513_v21  ;;  %v1537_v25 = vmul.f32 %v2217_v19, %v1503_v20  ;;  %v4497_v13 = vsel %vm3045_vm3, %v4495_v14, %v4496_v10 }
 0x4fd   :  { %v1536_v26 = vmul.f32 %v1518_v4, %v3919_v12  ;;  %v1523_v27 = vmul.f32 %v2215_v60, %v1522_v22  ;;  %v4484_v12 = vld [vmem:[#allocation67_spill] sm:$0xff] }
 0x4fe   :  { %v1720_v54 = vpack.c.bf16 %v4485_v15, %v4484_v12  ;;  %1895 = vmatpush.bf16.msrb.mxu1 %v2097_v0  ;;  %v1727_v24 = vpack.c.bf16 %v4484_v12, %v4485_v15 }
 0x4ff   :  { %v3969_v28 = vadd.f32 %v1537_v25, %v1536_v26  ;;  %v1524_v29 = vadd.f32 %v2215_v60, %v1523_v27 }
 0x501   :  { %2218 = vtanh.f32 %v3969_v28  ;;  %v1528_v35 = vsel %vm1527_vm9, %v2215_v60, %v1524_v29 }
 0x502   :  { %v1533_v11 = vsel %vm1530_vm10, %v1532_v40, %v1528_v35  ;;  %1896 = vmatpush.bf16.msrb.mxu1 %v2096_v34 }
 0x507   :  { %v2219_v44 = vpop.eup %2218 }
 0x508   :  { %v3972_v57 = vmul.f32 %v2219_v44, %v1533_v11 }
 0x50a   :  { %1571 = vmatmul.f32.vlgmr.msra.gmra.mxu0 %v3972_v57  ;;  %1591 = vmatmul.f32.vlgmr.msra.gmra.mxu1 %v3972_v57 }
 0x50b   :  { %1611 = vmatmul.f32.vlgmr.msrb.gmra.mxu2 %v3972_v57  ;;  %1631 = vmatmul.f32.vlgmr.msrb.gmra.mxu3 %v3972_v57 }
 0x512   :  { %1868 = vmatmul.bf16.vlgmr.msrb.gmra.mxu0 %v1720_v54 }
 0x522   :  { %1873 = vmatmul.bf16.gmra.mxu0 %v1722_v42 }
 0x532   :  { %1878 = vmatmul.bf16.gmra.mxu0 %v1724_v6 }
 0x587   :  { %v1572_v47 = vpop.f32.mrf.mxu0  ;;  %v1592_v32 = vpop.f32.mrf.mxu1 }
 0x588   :  { %v1635_v52 = vadd.f32 %v1572_v47, %v4488_v56  ;;  %v1636_v33 = vadd.f32 %v1592_v32, %v4491_v9 }
 0x58a   :  { %v2013_v1 = vmul.f32 -1.442695, %v1635_v52  ;;  %v2014_v5 = vmul.f32 -1.442695, %v1636_v33 }
 0x58c   :  { %2220 = vpow2.f32 %v2013_v1 }
 0x58d   :  { %2222 = vpow2.f32 %v2014_v5 }
 0x58e   :  { %v1632_v55 = vpop.f32.mrf.mxu3  ;;  %v1612_v58 = vpop.f32.mrf.mxu2 }
 0x58f   :  { %v1638_v46 = vadd.f32 %v1632_v55, %v4494_v49  ;;  %v1637_v17 = vadd.f32 %v1612_v58, %v4497_v13  ;;  %v1725_v55 = vpack.c.bf16 %v4486_v36, %v4487_v2  ;;  %v1869_v53 = vpop.f32.mrf.mxu0 }
 0x591   :  { %v2015_v61 = vmul.f32 -1.442695, %v1638_v46 }
 0x592   :  { %v2221_v45 = vpop.eup %2220 }
 0x593   :  { %v2223_v16 = vpop.eup %2222  ;;  %v1648_v59 = vadd.f32 1.0, %v2221_v45  ;;  %2224 = vpow2.f32 %v2015_v61 }
 0x594   :  { %v1649_v7 = vadd.f32 1.0, %v2223_v16 }
 0x595   :  { %2226 = vrcp.f32 %v1648_v59  ;;  %v1662_v4 = vand.u32 2147483648, %v1648_v59  ;;  %v1660_v27 = vand.u32 2147483647, %v1648_v59  ;;  %vm1656_vm11 = vweird.f32 %v1648_v59 }
 0x596   :  { %2228 = vrcp.f32 %v1649_v7  ;;  %v1677_v25 = vand.u32 2147483648, %v1649_v7  ;;  %v1675_v30 = vand.u32 2147483647, %v1649_v7  ;;  %vm1671_vm3 = vweird.f32 %v1649_v7 }
 0x597   :  { %v1663_v35 = vor.u32 1.1754944e-38, %v1662_v4  ;;  %vm1661_vm14 = vcmp.eq.f32.partialorder %v1660_v27, 8.507059e+37  ;;  %v1871_v49 = vpop.f32.mrf.mxu0 }
 0x598   :  { %v1678_v11 = vor.u32 1.1754944e-38, %v1677_v25  ;;  %vm1676_vm15 = vcmp.eq.f32.partialorder %v1675_v30, 8.507059e+37 }
 0x599   :  { %v2225_v41 = vpop.eup %2224 }
 0x59a   :  { %v1650_v60 = vadd.f32 1.0, %v2225_v41 }
 0x59b   :  { %v2227_v3 = vpop.eup %2226 }
 0x59c   :  { %v2229_v18 = vpop.eup %2228  ;;  %v1652_v19 = vmul.f32 %v2227_v3, %v1648_v59  ;;  %2230 = vrcp.f32 %v1650_v60  ;;  %vm1657_vm2 = vweird.f32 %v2227_v3  ;;  %v1692_v52 = vand.u32 2147483648, %v1650_v60 }
 0x59d   :  { %v1667_v20 = vmul.f32 %v2229_v18, %v1649_v7  ;;  %2232 = vtanh.f32 %v1637_v17  ;;  %vm1672_vm4 = vweird.f32 %v2229_v18  ;;  %vm1658_vm12 = vmor %vm1656_vm11, %vm1657_vm2  ;;  %vm1686_vm1 = vweird.f32 %v1650_v60 }
 0x59e   :  { %v1653_v21 = vsub.f32 1.0, %v1652_v19  ;;  %vm1673_vm13 = vmor %vm1671_vm3, %vm1672_vm4  ;;  %v1690_v37 = vand.u32 2147483647, %v1650_v60  ;;  %v1693_v9 = vor.u32 1.1754944e-38, %v1692_v52 }
 0x59f   :  { %v1668_v22 = vsub.f32 1.0, %v1667_v20 }
 0x5a0   :  { %v1654_v26 = vmul.f32 %v2227_v3, %v1653_v21  ;;  %vm1691_vm6 = vcmp.eq.f32.partialorder %v1690_v37, 8.507059e+37 }
 0x5a1   :  { %v1669_v29 = vmul.f32 %v2229_v18, %v1668_v22 }
 0x5a2   :  { %v2231_v8 = vpop.eup %2230  ;;  %v1655_v31 = vadd.f32 %v2227_v3, %v1654_v26 }
 0x5a3   :  { %v1670_v40 = vadd.f32 %v2229_v18, %v1669_v29  ;;  %v1682_v44 = vmul.f32 %v2231_v8, %v1650_v60  ;;  %v2233_v42 = vpop.eup %2232  ;;  %vm1687_vm0 = vweird.f32 %v2231_v8 }
 0x5a4   :  { %v1659_v54 = vsel %vm1658_vm12, %v2227_v3, %v1655_v31  ;;  %vm1688_vm5 = vmor %vm1686_vm1, %vm1687_vm0 }
 0x5a5   :  { %v1664_v6 = vsel %vm1661_vm14, %v1663_v35, %v1659_v54  ;;  %v1674_v38 = vsel %vm1673_vm13, %v2229_v18, %v1670_v40  ;;  %v1683_v43 = vsub.f32 1.0, %v1682_v44 }
 0x5a6   :  { %v1679_v48 = vsel %vm1676_vm15, %v1678_v11, %v1674_v38  ;;  %v1698_v51 = vmul.f32 %v2233_v42, %v1664_v6 }
 0x5a7   :  { %v1697_v50 = vmul.f32 %v1679_v48, %v3969_v28  ;;  %v1684_v47 = vmul.f32 %v2231_v8, %v1683_v43  ;;  %v1723_v28 = vpack.c.bf16 %v3832_v63, %v3922_v23  ;;  %v1874_v63 = vpop.f32.mrf.mxu0 }
 0x5a9   :  { %v1699_v32 = vadd.f32 %v1698_v51, %v1697_v50  ;;  %v1685_v56 = vadd.f32 %v2231_v8, %v1684_v47 }
 0x5ab   :  { %2234 = vtanh.f32 %v1699_v32  ;;  %v1689_v62 = vsel %vm1688_vm5, %v2231_v8, %v1685_v56 }
 0x5ac   :  { %v1694_v39 = vsel %vm1691_vm6, %v1693_v9, %v1689_v62 }
 0x5af   :  { %v1876_v12 = vpop.f32.mrf.mxu0 }
 0x5b1   :  { %v2235_v33 = vpop.eup %2234 }
 0x5b2   :  { %v1701_v1 = vmul.f32 %v2235_v33, %v1694_v39 }
 0x5b4   :  { %v1721_v5 = vpack.c.bf16 %v3972_v57, %v1701_v1  ;;  %v1726_v0 = vpack.c.bf16 %v1701_v1, %v3972_v57  ;;  %v2107_v57 = vld [vmem:[%s4065_s5] ss:$0 sm:$0xff] }
 0x5b5   :  { %v1870_v46 = vadd.f32 %v2107_v57, %v1869_v53  ;;  %v1872_v23 = vadd.f32 %v2107_v57, %v1871_v49  ;;  %v1875_v15 = vadd.f32 %v2107_v57, %v1874_v63  ;;  %v1877_v59 = vadd.f32 %v2107_v57, %v1876_v12 }
 0x5b6   :  { %1883 = vmatmul.bf16.gmra.mxu0 %v1726_v0  ;;  %1897 = vmatmul.bf16.vlgmr.msrb.gmra.mxu1 %v1721_v5 }
 0x5b7   :  { %v1879_v7 = vpop.f32.mrf.mxu0 }
 0x5b8   :  { %v1880_v60 = vadd.f32 %v2107_v57, %v1879_v7 }
 0x5bf   :  { %v1881_v10 = vpop.f32.mrf.mxu0 }
 0x5c0   :  { %v1882_v13 = vadd.f32 %v2107_v57, %v1881_v10 }
 0x5c6   :  { %1902 = vmatmul.bf16.gmra.mxu1 %v1723_v28 }
 0x5d6   :  { %1907 = vmatmul.bf16.gmra.mxu1 %v1725_v55 }
 0x5e6   :  { %1912 = vmatmul.bf16.gmra.mxu1 %v1727_v24 }
 0x633   :  { %v1898_v34 = vpop.f32.mrf.mxu1  ;;  %v1884_v19 = vpop.f32.mrf.mxu0 }
 0x634   :  { %v1899_v61 = vadd.f32 %v1898_v34, %v1870_v46  ;;  %v1885_v20 = vadd.f32 %v2107_v57, %v1884_v19 }
 0x636   :  { %1918 = vst [vmem:[%s4066_s6] sm:$0xff] %v1899_v61 }
 0x63b   :  { %v1900_v36 = vpop.f32.mrf.mxu1  ;;  %v1886_v4 = vpop.f32.mrf.mxu0 }
 0x63c   :  { %v1901_v2 = vadd.f32 %v1900_v36, %v1872_v23  ;;  %v1887_v25 = vadd.f32 %v2107_v57, %v1886_v4 }
 0x63e   :  { %1919 = vst [vmem:[%s4066_s6 + $0x8] sm:$0xff] %v1901_v2 }
 0x643   :  { %v1903_v45 = vpop.f32.mrf.mxu1 }
 0x644   :  { %v1904_v16 = vadd.f32 %v1903_v45, %v1875_v15 }
 0x646   :  { %1920 = vst [vmem:[%s4066_s6 + $0x10] sm:$0xff] %v1904_v16 }
 0x64b   :  { %v1905_v58 = vpop.f32.mrf.mxu1 }
 0x64c   :  { %v1906_v41 = vadd.f32 %v1905_v58, %v1877_v59 }
 0x64e   :  { %1921 = vst [vmem:[%s4066_s6 + $0x18] sm:$0xff] %v1906_v41 }
 0x653   :  { %v1908_v3 = vpop.f32.mrf.mxu1 }
 0x654   :  { %v1909_v14 = vadd.f32 %v1908_v3, %v1880_v60 }
 0x656   :  { %1922 = vst [vmem:[%s4066_s6 + $0x20] sm:$0xff] %v1909_v14 }
 0x65b   :  { %v1910_v17 = vpop.f32.mrf.mxu1 }
 0x65c   :  { %v1911_v18 = vadd.f32 %v1910_v17, %v1882_v13 }
 0x65e   :  { %1923 = vst [vmem:[%s4066_s6 + $0x28] sm:$0xff] %v1911_v18 }
 0x663   :  { %v1913_v21 = vpop.f32.mrf.mxu1 }
 0x664   :  { %v1914_v22 = vadd.f32 %v1913_v21, %v1885_v20 }
 0x666   :  { %1924 = vst [vmem:[%s4066_s6 + $0x30] sm:$0xff] %v1914_v22 }
 0x66b   :  { %v1915_v26 = vpop.f32.mrf.mxu1 }
 0x66c   :  { %v1916_v27 = vadd.f32 %v1915_v26, %v1887_v25 }
 0x66e   :  { %1925 = vst [vmem:[%s4066_s6 + $0x38] sm:$0xff] %v1916_v27 }

</bundles_post_ra>
